<compile_context>
chip_gen: v7x
topology: tpu7x:2x2x1
jax: 0.10.0
libtpu: 0.0.40
codegen_flags: <defaults>
</compile_context>

<pallas_src>
import functools
import math

import jax
import jax.numpy as jnp
from jax.experimental import pallas as pl
from jax.experimental.pallas import tpu as pltpu

DTYPE = jnp.bfloat16


def _vmem_budget_bytes():
    """Generation-aware scoped-VMEM budget (~48 MiB v7x, ~96 MiB v5e/v6e)."""
    cap = 64 * 1024 * 1024
    try:
        info = pltpu.get_tpu_info()
        cap = int(getattr(info, "vmem_capacity_bytes", cap))
    except Exception:
        pass
    return int(max(min((cap * 3) // 4, 100 * 1024 * 1024), 32 * 1024 * 1024))


VMEM_BUDGET = _vmem_budget_bytes()


def _cparams(*sems):
    return pltpu.CompilerParams(dimension_semantics=sems,
                                vmem_limit_bytes=VMEM_BUDGET)


def _cost(flops, bytes_accessed, transcendentals=0):
    return pl.CostEstimate(flops=int(flops), transcendentals=int(transcendentals),
                           bytes_accessed=int(bytes_accessed))


# ----------------------------------------------------------------------------
# Tile pickers (bf16-aware: sublane tiles are multiples of 16)
# ----------------------------------------------------------------------------

def _pick_seq_tile(S, cap=512):
    if S <= cap:
        return S
    t = min((cap // 16) * 16, S)
    while t >= 16:
        if S % t == 0:
            return t
        t -= 16
    return S


def _pick_row_tile(M, cap=512):
    if M <= cap:
        return M
    t = (cap // 16) * 16
    while t >= 16:
        if M % t == 0:
            return t
        t -= 16
    return M


def _pick_inter_tile(D, I, TS, budget):
    """VMEM-aware intermediate tile for the SwiGLU MLP kernel."""
    if I <= 128:
        return I
    fixed = TS * D * 6                     # xn bf16 + acc f32 scratch
    fixed += 4 * TS * D * 2                # double-buffered h-in + out bf16 blocks
    avail = max(budget - fixed, 0)
    per_col = 2 * 3 * D * 2                # 2 buffers x (wg + wu + wd) bf16 per column
    ti = max((avail // max(per_col, 1)) // 128 * 128, 128)
    ti = min(ti, I)
    while ti > 128 and I % ti != 0:
        ti -= 128
    if I % ti != 0:
        ti = I
    return int(ti)


# ----------------------------------------------------------------------------
# Kernel 1: input RMSNorm + fused QKV projection (+bias) + RoPE
#           (scale 1/sqrt(hd) folded into q; per-head direct stores)
# ----------------------------------------------------------------------------

def _ln_qkv_rope_kernel(h_ref, g_ref, wqkv_ref, bqkv_ref, cos_ref, sin_ref,
                        q_ref, k_ref, v_ref,
                        *, eps, num_heads, num_kv_heads, head_dim, q_scale):
    x = h_ref[...].astype(jnp.float32)                        # (TS, D)
    var = jnp.mean(x * x, axis=-1, keepdims=True)
    xn = (x * jax.lax.rsqrt(var + eps)).astype(h_ref.dtype) * g_ref[...]

    # Single fused MXU pass over concat([wq, wk, wv]); biases added from the
    # concatenated bias row.
    qkv = jnp.dot(xn, wqkv_ref[...], preferred_element_type=jnp.float32)
    qkv = qkv + bqkv_ref[...].astype(jnp.float32)             # (TS, qd + 2*kvd)

    cos = cos_ref[...]                                        # (TS, hd) f32
    sin = sin_ref[...]                                        # (TS, hd) f32, first half pre-negated
    qd = num_heads * head_dim
    kvd = num_kv_heads * head_dim

    # rotate_half implemented as an XLU roll by hd/2; sign is folded into `sin`.
    for h in range(num_heads):
        ph = qkv[:, h * head_dim:(h + 1) * head_dim]
        rot = ph * cos + pltpu.roll(ph, head_dim // 2, 1) * sin
        q_ref[:, h * head_dim:(h + 1) * head_dim] = (rot * q_scale).astype(q_ref.dtype)
    for h in range(num_kv_heads):
        ph = qkv[:, qd + h * head_dim:qd + (h + 1) * head_dim]
        rot = ph * cos + pltpu.roll(ph, head_dim // 2, 1) * sin
        k_ref[:, h * head_dim:(h + 1) * head_dim] = rot.astype(k_ref.dtype)
    v_ref[...] = qkv[:, qd + kvd:].astype(v_ref.dtype)


def ln_qkv_rope(h, gamma, wqkv, bqkv, cos, sin, cfg):
    B, S, D = h.shape
    H, KVH, hd = cfg["heads"], cfg["kv_heads"], cfg["head_dim"]
    qd, kvd = H * hd, KVH * hd
    tot = qd + 2 * kvd
    TS = _pick_seq_tile(S)
    nS = S // TS
    kernel = functools.partial(_ln_qkv_rope_kernel, eps=cfg["eps"],
                               num_heads=H, num_kv_heads=KVH, head_dim=hd,
                               q_scale=1.0 / math.sqrt(hd))
    const = lambda b, si: (0, 0)
    row = lambda b, si: (b, si, 0)
    seq = lambda b, si: (si, 0)
    # TODO(synk): for realistic D (>= 4096) add an N-tile grid axis over wqkv
    # columns so only (D, TN) weight slabs are resident on v7x's 64 MiB VMEM.
    return pl.pallas_call(
        kernel,
        grid=(B, nS),
        in_specs=[
            pl.BlockSpec((None, TS, D), row),
            pl.BlockSpec((1, D), const),
            pl.BlockSpec((D, tot), const),
            pl.BlockSpec((1, tot), const),
            pl.BlockSpec((TS, hd), seq),
            pl.BlockSpec((TS, hd), seq),
        ],
        out_specs=(
            pl.BlockSpec((None, TS, qd), row),
            pl.BlockSpec((None, TS, kvd), row),
            pl.BlockSpec((None, TS, kvd), row),
        ),
        out_shape=(
            jax.ShapeDtypeStruct((B, S, qd), h.dtype),
            jax.ShapeDtypeStruct((B, S, kvd), h.dtype),
            jax.ShapeDtypeStruct((B, S, kvd), h.dtype),
        ),
        compiler_params=_cparams("parallel", "parallel"),
        cost_estimate=_cost(2 * B * S * D * tot,
                            2 * (B * S * (D + tot) + D * tot)),
    )(h, gamma.reshape(1, D), wqkv, bqkv.reshape(1, tot), cos, sin)


# ----------------------------------------------------------------------------
# Kernel 2: GQA causal attention + o_proj + residual (fused)
#           mask built in-kernel; group query heads stacked per KV head;
#           per-head o_proj slabs accumulated in f32, no (B,S,qd) round trip.
# ----------------------------------------------------------------------------

def _attn_oproj_kernel(q_ref, k_ref, v_ref, m_ref, wo_ref, res_ref, o_ref,
                       *, num_heads, num_kv_heads, head_dim, q_tile):
    group = num_heads // num_kv_heads
    Skv = k_ref.shape[0]
    D = res_ref.shape[-1]
    TQ = q_tile
    q0 = pl.program_id(1) * TQ

    # Causal + padding bias for the stacked (group*TQ, Skv) score tile.
    qrow = q0 + (jax.lax.broadcasted_iota(jnp.int32, (group * TQ, Skv), 0) % TQ)
    kcol = jax.lax.broadcasted_iota(jnp.int32, (group * TQ, Skv), 1)
    keep = (kcol <= qrow) & (m_ref[...] > 0.5)                # (1,S) mask broadcast
    bias = jnp.where(keep, 0.0, -1e30).astype(jnp.float32)

    acc = jnp.zeros((TQ, D), jnp.float32)
    for kvh in range(num_kv_heads):
        kh = k_ref[:, kvh * head_dim:(kvh + 1) * head_dim]
        vh = v_ref[:, kvh * head_dim:(kvh + 1) * head_dim]
        # Stack the group's query heads -> one q@k^T and one p@v per KV head.
        qg = jnp.concatenate(
            [q_ref[:, (kvh * group + g) * head_dim:(kvh * group + g + 1) * head_dim]
             for g in range(group)], axis=0)                  # (group*TQ, hd)
        s = jax.lax.dot_general(qg, kh, (((1,), (1,)), ((), ())),
                                preferred_element_type=jnp.float32)
        s = s + bias                                          # scale folded into q
        s_max = jnp.max(s, axis=-1, keepdims=True)
        e = jnp.exp(s - s_max)
        p = (e * pl.reciprocal(jnp.sum(e, axis=-1, keepdims=True),
                               approx=True)).astype(vh.dtype)
        ctx = jnp.dot(p, vh, preferred_element_type=jnp.float32)   # (group*TQ, hd)
        for g in range(group):
            hh = kvh * group + g
            wo_h = wo_ref[hh * head_dim:(hh + 1) * head_dim, :]
            acc = acc + jnp.dot(ctx[g * TQ:(g + 1) * TQ, :].astype(wo_ref.dtype),
                                wo_h, preferred_element_type=jnp.float32)
    o_ref[...] = (res_ref[...].astype(jnp.float32) + acc).astype(o_ref.dtype)


def attention_oproj_residual(q, k, v, mask, wo, resid, cfg):
    """q: (B,S,H*hd)  k,v: (B,S,KVH*hd)  mask: (B,1,S) f32 (1=attend)."""
    B, S, qd = q.shape
    H, KVH, hd = cfg["heads"], cfg["kv_heads"], cfg["head_dim"]
    kvd = KVH * hd
    D = resid.shape[-1]
    TQ = _pick_seq_tile(S)
    nQ = S // TQ
    kernel = functools.partial(_attn_oproj_kernel, num_heads=H,
                               num_kv_heads=KVH, head_dim=hd, q_tile=TQ)
    qrow = lambda b, qi: (b, qi, 0)
    kvrow = lambda b, qi: (b, 0, 0)
    # TODO(synk): for long sequences convert to a KV-blocked online-softmax
    # (flash) grid axis so the (group*TQ, S) f32 scores never fully materialize
    # in VMEM, and N-tile wo for v7x once qd*D no longer fits comfortably.
    return pl.pallas_call(
        kernel,
        grid=(B, nQ),
        in_specs=[
            pl.BlockSpec((None, TQ, qd), qrow),
            pl.BlockSpec((None, S, kvd), kvrow),
            pl.BlockSpec((None, S, kvd), kvrow),
            pl.BlockSpec((None, 1, S), kvrow),
            pl.BlockSpec((qd, D), lambda b, qi: (0, 0)),
            pl.BlockSpec((None, TQ, D), qrow),
        ],
        out_specs=pl.BlockSpec((None, TQ, D), qrow),
        out_shape=jax.ShapeDtypeStruct((B, S, D), resid.dtype),
        compiler_params=_cparams("parallel", "parallel"),
        cost_estimate=_cost(4 * B * H * S * S * hd + 2 * B * S * qd * D,
                            2 * (B * S * (qd + 2 * kvd + 2 * D) + qd * D),
                            transcendentals=B * H * S * S),
    )(q, k, v, mask, wo, resid)


# ----------------------------------------------------------------------------
# Kernel 3: post RMSNorm + SwiGLU MLP (intermediate dim tiled) + residual add
# ----------------------------------------------------------------------------

def _ln_mlp_residual_kernel(h_ref, g_ref, wg_ref, wu_ref, wd_ref, o_ref,
                            xn_ref, acc_ref, *, eps):
    j = pl.program_id(2)

    @pl.when(j == 0)
    def _():
        x = h_ref[...].astype(jnp.float32)
        var = jnp.mean(x * x, axis=-1, keepdims=True)
        xn_ref[...] = (x * jax.lax.rsqrt(var + eps)).astype(h_ref.dtype) * g_ref[...]
        acc_ref[...] = jnp.zeros_like(acc_ref)

    xn = xn_ref[...]
    g = jnp.dot(xn, wg_ref[...], preferred_element_type=jnp.float32)
    u = jnp.dot(xn, wu_ref[...], preferred_element_type=jnp.float32)
    hcur = ((g * jax.nn.sigmoid(g)) * u).astype(h_ref.dtype)   # SwiGLU
    acc_ref[...] += jnp.dot(hcur, wd_ref[...], preferred_element_type=jnp.float32)

    @pl.when(j == pl.num_programs(2) - 1)
    def _():
        o_ref[...] = (h_ref[...].astype(jnp.float32) + acc_ref[...]).astype(o_ref.dtype)


def ln_mlp_residual(h, gamma, wg, wu, wd, cfg):
    B, S, D = h.shape
    I = wg.shape[1]
    TS = _pick_seq_tile(S)
    nS = S // TS
    TI = _pick_inter_tile(D, I, TS, VMEM_BUDGET)
    nI = I // TI
    row = lambda b, si, j: (b, si, 0)
    return pl.pallas_call(
        functools.partial(_ln_mlp_residual_kernel, eps=cfg["eps"]),
        grid=(B, nS, nI),
        in_specs=[
            pl.BlockSpec((None, TS, D), row),
            pl.BlockSpec((1, D), lambda b, si, j: (0, 0)),
            pl.BlockSpec((D, TI), lambda b, si, j: (0, j)),
            pl.BlockSpec((D, TI), lambda b, si, j: (0, j)),
            pl.BlockSpec((TI, D), lambda b, si, j: (j, 0)),
        ],
        out_specs=pl.BlockSpec((None, TS, D), row),
        out_shape=jax.ShapeDtypeStruct((B, S, D), h.dtype),
        scratch_shapes=[pltpu.VMEM((TS, D), h.dtype),
                        pltpu.VMEM((TS, D), jnp.float32)],
        compiler_params=_cparams("parallel", "parallel", "arbitrary"),
        cost_estimate=_cost(6 * B * S * D * I,
                            2 * (2 * B * S * D + 3 * D * I),
                            transcendentals=B * S * I),
    )(h, gamma.reshape(1, D), wg, wu, wd)


# ----------------------------------------------------------------------------
# Kernel 4: final RMSNorm + projector (applied to the gathered memory tokens)
# ----------------------------------------------------------------------------

def _ln_proj_kernel(x_ref, g_ref, w_ref, b_ref, o_ref, *, eps):
    x = x_ref[...].astype(jnp.float32)
    var = jnp.mean(x * x, axis=-1, keepdims=True)
    xn = (x * jax.lax.rsqrt(var + eps)).astype(x_ref.dtype) * g_ref[...]
    acc = jnp.dot(xn, w_ref[...], preferred_element_type=jnp.float32)
    o_ref[...] = (acc + b_ref[...].astype(jnp.float32)).astype(o_ref.dtype)


def ln_proj(x, gamma, w, b, eps):
    M, D = x.shape
    P = w.shape[1]
    TM = _pick_row_tile(M)
    return pl.pallas_call(
        functools.partial(_ln_proj_kernel, eps=eps),
        grid=(M // TM,),
        in_specs=[
            pl.BlockSpec((TM, D), lambda i: (i, 0)),
            pl.BlockSpec((1, D), lambda i: (0, 0)),
            pl.BlockSpec((D, P), lambda i: (0, 0)),
            pl.BlockSpec((1, P), lambda i: (0, 0)),
        ],
        out_specs=pl.BlockSpec((TM, P), lambda i: (i, 0)),
        out_shape=jax.ShapeDtypeStruct((M, P), x.dtype),
        compiler_params=_cparams("parallel"),
        cost_estimate=_cost(2 * M * D * P, 2 * (M * (D + P) + D * P)),
    )(x, gamma.reshape(1, D), w, b.reshape(1, P))


# ----------------------------------------------------------------------------
# Model glue (plain JAX: embedding gather, RoPE tables, memory-token gather)
# ----------------------------------------------------------------------------

def rope_tables(S, hd, base):
    inv_freq = 1.0 / (base ** (jnp.arange(0, hd, 2, dtype=jnp.float32) / hd))
    t = jnp.arange(S, dtype=jnp.float32)
    freqs = jnp.outer(t, inv_freq)                       # (S, hd//2)
    emb = jnp.concatenate([freqs, freqs], axis=-1)       # (S, hd)
    cos = jnp.cos(emb)
    sin = jnp.sin(emb)
    # Fold rotate_half's sign into the sin table: rotate_half(q)*sin ==
    # roll(q, hd//2) * concat([-sin_lo, sin_hi]).
    sin_signed = jnp.concatenate([-sin[:, :hd // 2], sin[:, hd // 2:]], axis=-1)
    return cos, sin_signed


def decoder_layer(h, p, mask, cos, sin, cfg):
    q, k, v = ln_qkv_rope(h, p["input_ln"], p["wqkv"], p["bqkv"], cos, sin, cfg)
    h = attention_oproj_residual(q, k, v, mask, p["wo"], h, cfg)
    h = ln_mlp_residual(h, p["post_ln"], p["wg"], p["wu"], p["wd"], cfg)
    return h


def context_embd_forward(params, input_ids, attention_mask, cfg):
    B, S = input_ids.shape
    D = cfg["hidden"]

    # token embedding gather (plain JAX)
    h = params["embed"][input_ids]                            # (B, S, D) bf16
    cos, sin = rope_tables(S, cfg["head_dim"], cfg["rope_theta"])
    mask = attention_mask.astype(jnp.float32).reshape(B, 1, S)

    for lp in params["layers"]:
        h = decoder_layer(h, lp, mask, cos, sin, cfg)

    # Qwen2ForMemoryOutput: MEM_SIZE tokens ending at the first pad token.
    # `% S` reproduces PyTorch's negative-index wraparound for unpadded rows.
    pad_id = cfg["pad_token_id"]
    seq_lengths = jnp.argmax((input_ids == pad_id).astype(jnp.int32), axis=-1) % S
    starts = seq_lengths - cfg["mem_size"]
    idx = (starts[:, None] + jnp.arange(cfg["mem_size"], dtype=jnp.int32)[None, :]) % S
    memory = jnp.take_along_axis(h, idx[:, :, None], axis=1)  # (B, MEM, D)

    # final RMSNorm + Projector, fused, on memory tokens only
    out = ln_proj(memory.reshape(B * cfg["mem_size"], D),
                  params["final_ln"], params["proj_w"], params["proj_b"],
                  cfg["eps"])
    return out.reshape(B, cfg["mem_size"], cfg["proj_dim"])


# ----------------------------------------------------------------------------
# Deterministic synthetic parameters (weights stored K-major, i.e. (in, out))
# ----------------------------------------------------------------------------

def _w(key, shape):
    return (0.02 * jax.random.normal(key, shape, dtype=jnp.float32)).astype(DTYPE)


def init_params(key, cfg):
    D, I, hd = cfg["hidden"], cfg["inter"], cfg["head_dim"]
    H, KVH = cfg["heads"], cfg["kv_heads"]
    qd, kvd = H * hd, KVH * hd
    keys = iter(jax.random.split(key, 3 + 10 * cfg["layers"]))
    params = {
        "embed": _w(next(keys), (cfg["vocab"], D)),
        "final_ln": jnp.ones((D,), DTYPE),
        "proj_w": _w(next(keys), (D, cfg["proj_dim"])),
        "proj_b": _w(next(keys), (cfg["proj_dim"],)),
        "layers": [],
    }
    for _ in range(cfg["layers"]):
        wq, bq = _w(next(keys), (D, qd)), _w(next(keys), (qd,))
        wk, bk = _w(next(keys), (D, kvd)), _w(next(keys), (kvd,))
        wv, bv = _w(next(keys), (D, kvd)), _w(next(keys), (kvd,))
        params["layers"].append({
            "input_ln": jnp.ones((D,), DTYPE),
            "post_ln": jnp.ones((D,), DTYPE),
            # fused QKV: one MXU pass, one resident weight (concat done once here)
            "wqkv": jnp.concatenate([wq, wk, wv], axis=1),    # (D, qd + 2*kvd)
            "bqkv": jnp.concatenate([bq, bk, bv], axis=0),    # (qd + 2*kvd,)
            "wo": _w(next(keys), (qd, D)),                    # o_proj has no bias
            "wg": _w(next(keys), (D, I)),
            "wu": _w(next(keys), (D, I)),
            "wd": _w(next(keys), (I, D)),
        })
    return params


# ----------------------------------------------------------------------------

if __name__ == "__main__":
    cfg = dict(hidden=256, inter=512, heads=2, kv_heads=1, head_dim=128,
               layers=2, vocab=256, eps=1e-6, rope_theta=10000.0,
               pad_token_id=2, mem_size=32, proj_dim=256)

    key = jax.random.PRNGKey(0)
    pkey, dkey = jax.random.split(key)
    params = init_params(pkey, cfg)

    B, S = 2, 64
    ids = jax.random.randint(dkey, (B, S), 3, cfg["vocab"], dtype=jnp.int32)
    # row 0: no padding (exercises PyTorch-style wraparound of memory indices),
    # row 1: padded after 40 valid tokens (>= MEM_SIZE).
    valid_len = jnp.array([S, 40], dtype=jnp.int32)
    pos = jnp.arange(S)[None, :]
    attn_mask = (pos < valid_len[:, None]).astype(jnp.int32)
    ids = jnp.where(attn_mask == 1, ids, cfg["pad_token_id"])

    fwd = jax.jit(functools.partial(context_embd_forward, cfg=cfg))
    out = jax.block_until_ready(fwd(params, ids, attn_mask))

    assert out.shape == (B, cfg["mem_size"], cfg["proj_dim"]), out.shape
    assert out.dtype == DTYPE, out.dtype
    assert bool(jnp.all(jnp.isfinite(out.astype(jnp.float32))))
    print("KERNEL_OK")
</pallas_src>

<mosaic_0001>
module attributes {stable_mosaic.version = 11 : i64} {
  func.func @_attn_oproj_kernel(%arg0: i32, %arg1: i32, %arg2: memref<1x64x256xbf16, #tpu.memory_space<vmem>>, %arg3: memref<1x64x128xbf16, #tpu.memory_space<vmem>>, %arg4: memref<1x64x128xbf16, #tpu.memory_space<vmem>>, %arg5: memref<1x1x64xf32, #tpu.memory_space<vmem>>, %arg6: memref<256x256xbf16, #tpu.memory_space<vmem>>, %arg7: memref<1x64x256xbf16, #tpu.memory_space<vmem>>, %arg8: memref<1x64x256xbf16, #tpu.memory_space<vmem>>) attributes {dimension_semantics = [#tpu.dimension_semantics<parallel>, #tpu.dimension_semantics<parallel>], iteration_bounds = array<i64: 2, 1>, scalar_prefetch = 0 : i64, scratch_operands = 0 : i64, tpu.core_type = #tpu.core_type<tc>, window_params = [{transform_indices = @transform_0, window_bounds = array<i64: 1, 64, 256>}, {transform_indices = @transform_1, window_bounds = array<i64: 1, 64, 128>}, {transform_indices = @transform_2, window_bounds = array<i64: 1, 64, 128>}, {transform_indices = @transform_3, window_bounds = array<i64: 1, 1, 64>}, {pipeline_mode = #tpu.pipeline_mode<synchronous>, transform_indices = @transform_4, window_bounds = array<i64: 256, 256>}, {transform_indices = @transform_5, window_bounds = array<i64: 1, 64, 256>}, {transform_indices = @transform_6, window_bounds = array<i64: 1, 64, 256>}]} {
    %c64_i32 = arith.constant 64 : i32
    %0 = arith.muli %arg1, %c64_i32 : i32
    %1 = tpu.iota {dimensions = array<i32: 0>} : vector<128x64xi32>
    %c64_i32_0 = arith.constant 64 : i32
    %c0_i32 = arith.constant 0 : i32
    %2 = arith.cmpi eq, %c64_i32_0, %c0_i32 : i32
    %c1_i32 = arith.constant 1 : i32
    %3 = arith.select %2, %c1_i32, %c64_i32_0 : i32
    %4 = vector.broadcast %3 : i32 to vector<128x64xi32>
    %5 = arith.remsi %1, %4 : vector<128x64xi32>
    %c0_i32_1 = arith.constant 0 : i32
    %6 = vector.broadcast %c0_i32_1 : i32 to vector<128x64xi32>
    %7 = arith.cmpi ne, %5, %6 : vector<128x64xi32>
    %c0_i32_2 = arith.constant 0 : i32
    %8 = vector.broadcast %c0_i32_2 : i32 to vector<128x64xi32>
    %9 = arith.cmpi slt, %5, %8 : vector<128x64xi32>
    %c0_i32_3 = arith.constant 0 : i32
    %10 = arith.cmpi slt, %3, %c0_i32_3 : i32
    %11 = vector.broadcast %10 : i1 to vector<128x64xi1>
    %12 = vector.broadcast %11 : vector<128x64xi1> to vector<128x64xi1>
    %13 = arith.xori %9, %12 : vector<128x64xi1>
    %14 = arith.andi %13, %7 : vector<128x64xi1>
    %15 = vector.broadcast %3 : i32 to vector<128x64xi32>
    %16 = arith.addi %5, %15 : vector<128x64xi32>
    %17 = arith.select %14, %16, %5 : vector<128x64xi1>, vector<128x64xi32>
    %18 = vector.broadcast %0 : i32 to vector<128x64xi32>
    %19 = arith.addi %18, %17 : vector<128x64xi32>
    %20 = tpu.iota {dimensions = array<i32: 1>} : vector<128x64xi32>
    %21 = arith.cmpi sle, %20, %19 : vector<128x64xi32>
    %c0 = arith.constant 0 : index
    %c0_4 = arith.constant 0 : index
    %c0_5 = arith.constant 0 : index
    %22 = vector.load %arg5[%c0, %c0_4, %c0_5] : memref<1x1x64xf32, #tpu.memory_space<vmem>>, vector<1x1x64xf32>
    %23 = vector.shape_cast %22 : vector<1x1x64xf32> to vector<1x64xf32>
    %cst = arith.constant 5.000000e-01 : f32
    %24 = vector.broadcast %cst : f32 to vector<1x64xf32>
    %25 = arith.cmpf ogt, %23, %24 : vector<1x64xf32>
    %26 = vector.broadcast %25 : vector<1x64xi1> to vector<128x64xi1>
    %27 = arith.andi %21, %26 : vector<128x64xi1>
    %cst_6 = arith.constant 0.000000e+00 : f32
    %cst_7 = arith.constant -1.000000e+30 : f32
    %28 = vector.broadcast %cst_6 : f32 to vector<128x64xf32>
    %29 = vector.broadcast %cst_7 : f32 to vector<128x64xf32>
    %30 = arith.select %27, %28, %29 : vector<128x64xi1>, vector<128x64xf32>
    %cst_8 = arith.constant 0.000000e+00 : f32
    %31 = vector.broadcast %cst_8 : f32 to vector<64x256xf32>
    %c0_9 = arith.constant 0 : index
    %c0_10 = arith.constant 0 : index
    %c0_11 = arith.constant 0 : index
    %32 = vector.load %arg3[%c0_9, %c0_10, %c0_11] : memref<1x64x128xbf16, #tpu.memory_space<vmem>>, vector<1x64x128xbf16>
    %33 = vector.shape_cast %32 : vector<1x64x128xbf16> to vector<64x128xbf16>
    %c0_12 = arith.constant 0 : index
    %c0_13 = arith.constant 0 : index
    %c0_14 = arith.constant 0 : index
    %34 = vector.load %arg4[%c0_12, %c0_13, %c0_14] : memref<1x64x128xbf16, #tpu.memory_space<vmem>>, vector<1x64x128xbf16>
    %35 = vector.shape_cast %34 : vector<1x64x128xbf16> to vector<64x128xbf16>
    %c0_15 = arith.constant 0 : index
    %c0_16 = arith.constant 0 : index
    %c0_17 = arith.constant 0 : index
    %36 = vector.load %arg2[%c0_15, %c0_16, %c0_17] : memref<1x64x256xbf16, #tpu.memory_space<vmem>>, vector<1x64x128xbf16>
    %37 = vector.shape_cast %36 : vector<1x64x128xbf16> to vector<64x128xbf16>
    %c0_18 = arith.constant 0 : index
    %c0_19 = arith.constant 0 : index
    %c128 = arith.constant 128 : index
    %38 = vector.load %arg2[%c0_18, %c0_19, %c128] : memref<1x64x256xbf16, #tpu.memory_space<vmem>>, vector<1x64x128xbf16>
    %39 = vector.shape_cast %38 : vector<1x64x128xbf16> to vector<64x128xbf16>
    %40 = tpu.concatenate %37, %39 in 0 : vector<64x128xbf16>, vector<64x128xbf16> -> vector<128x128xbf16>
    %cst_20 = arith.constant dense<0.000000e+00> : vector<128x64xf32>
    %41 = tpu.matmul %40, %33, %cst_20 {dimension_numbers = #tpu.dot_dimension_numbers<[1], [1], [0], [0], [0, 0, 1, 0], [], []>} : vector<128x128xbf16>, vector<64x128xbf16>, vector<128x64xf32> -> vector<128x64xf32>
    %42 = arith.addf %41, %30 : vector<128x64xf32>
    %cst_21 = arith.constant dense<0xFF800000> : vector<128xf32>
    %43 = vector.multi_reduction <maximumf>, %42, %cst_21 [1] : vector<128x64xf32> to vector<128xf32>
    %44 = vector.shape_cast %43 : vector<128xf32> to vector<128x1xf32>
    %45 = vector.broadcast %44 : vector<128x1xf32> to vector<128x64xf32>
    %46 = arith.subf %42, %45 : vector<128x64xf32>
    %47 = math.exp %46 : vector<128x64xf32>
    %cst_22 = arith.constant dense<0.000000e+00> : vector<128xf32>
    %48 = vector.multi_reduction <add>, %47, %cst_22 [1] : vector<128x64xf32> to vector<128xf32>
    %49 = vector.shape_cast %48 : vector<128xf32> to vector<128x1xf32>
    %50 = tpu.reciprocal %49 {approx = true} : vector<128x1xf32> -> vector<128x1xf32>
    %51 = vector.broadcast %50 : vector<128x1xf32> to vector<128x64xf32>
    %52 = arith.mulf %47, %51 : vector<128x64xf32>
    %53 = arith.truncf %52 : vector<128x64xf32> to vector<128x64xbf16>
    %cst_23 = arith.constant dense<0.000000e+00> : vector<128x128xf32>
    %54 = tpu.matmul %53, %35, %cst_23 {dimension_numbers = #tpu.dot_dimension_numbers<[1], [0], [0], [1], [0, 0, 1, 1], [], []>} : vector<128x64xbf16>, vector<64x128xbf16>, vector<128x128xf32> -> vector<128x128xf32>
    %c0_24 = arith.constant 0 : index
    %c0_25 = arith.constant 0 : index
    %55 = vector.load %arg6[%c0_24, %c0_25] : memref<256x256xbf16, #tpu.memory_space<vmem>>, vector<128x256xbf16>
    %56 = vector.extract_strided_slice %54 {offsets = [0, 0], sizes = [64, 128], strides = [1, 1]} : vector<128x128xf32> to vector<64x128xf32>
    %57 = arith.truncf %56 : vector<64x128xf32> to vector<64x128xbf16>
    %cst_26 = arith.constant dense<0.000000e+00> : vector<64x256xf32>
    %58 = tpu.matmul %57, %55, %cst_26 {dimension_numbers = #tpu.dot_dimension_numbers<[1], [0], [0], [1], [0, 0, 1, 1], [], []>} : vector<64x128xbf16>, vector<128x256xbf16>, vector<64x256xf32> -> vector<64x256xf32>
    %59 = arith.addf %31, %58 : vector<64x256xf32>
    %c128_27 = arith.constant 128 : index
    %c0_28 = arith.constant 0 : index
    %60 = vector.load %arg6[%c128_27, %c0_28] : memref<256x256xbf16, #tpu.memory_space<vmem>>, vector<128x256xbf16>
    %61 = vector.extract_strided_slice %54 {offsets = [64, 0], sizes = [64, 128], strides = [1, 1]} : vector<128x128xf32> to vector<64x128xf32>
    %62 = arith.truncf %61 : vector<64x128xf32> to vector<64x128xbf16>
    %cst_29 = arith.constant dense<0.000000e+00> : vector<64x256xf32>
    %63 = tpu.matmul %62, %60, %cst_29 {dimension_numbers = #tpu.dot_dimension_numbers<[1], [0], [0], [1], [0, 0, 1, 1], [], []>} : vector<64x128xbf16>, vector<128x256xbf16>, vector<64x256xf32> -> vector<64x256xf32>
    %64 = arith.addf %59, %63 : vector<64x256xf32>
    %c0_30 = arith.constant 0 : index
    %c0_31 = arith.constant 0 : index
    %c0_32 = arith.constant 0 : index
    %65 = vector.load %arg7[%c0_30, %c0_31, %c0_32] : memref<1x64x256xbf16, #tpu.memory_space<vmem>>, vector<1x64x256xbf16>
    %66 = vector.shape_cast %65 : vector<1x64x256xbf16> to vector<64x256xbf16>
    %67 = arith.extf %66 : vector<64x256xbf16> to vector<64x256xf32>
    %68 = arith.addf %67, %64 : vector<64x256xf32>
    %69 = arith.truncf %68 : vector<64x256xf32> to vector<64x256xbf16>
    %c0_33 = arith.constant 0 : index
    %c0_34 = arith.constant 0 : index
    %c0_35 = arith.constant 0 : index
    %70 = vector.load %arg8[%c0_33, %c0_34, %c0_35] : memref<1x64x256xbf16, #tpu.memory_space<vmem>>, vector<1x64x256xbf16>
    %71 = vector.shape_cast %70 : vector<1x64x256xbf16> to vector<64x256xbf16>
    %72 = vector.shape_cast %69 : vector<64x256xbf16> to vector<1x64x256xbf16>
    tpu.vector_store %arg8[%c0_33, %c0_34, %c0_35], %72 {strides = array<i32>} : memref<1x64x256xbf16, #tpu.memory_space<vmem>>, vector<1x64x256xbf16>,
    return
  }
  func.func @transform_0(%arg0: i32, %arg1: i32) -> (i32, i32, i32) {
    %c0_i32 = arith.constant 0 : i32
    %c0_i32_0 = arith.constant 0 : i32
    return %arg0, %arg1, %c0_i32 : i32, i32, i32
  }
  func.func @transform_1(%arg0: i32, %arg1: i32) -> (i32, i32, i32) {
    %c0_i32 = arith.constant 0 : i32
    %c0_i32_0 = arith.constant 0 : i32
    %c0_i32_1 = arith.constant 0 : i32
    return %arg0, %c0_i32, %c0_i32_0 : i32, i32, i32
  }
  func.func @transform_2(%arg0: i32, %arg1: i32) -> (i32, i32, i32) {
    %c0_i32 = arith.constant 0 : i32
    %c0_i32_0 = arith.constant 0 : i32
    %c0_i32_1 = arith.constant 0 : i32
    return %arg0, %c0_i32, %c0_i32_0 : i32, i32, i32
  }
  func.func @transform_3(%arg0: i32, %arg1: i32) -> (i32, i32, i32) {
    %c0_i32 = arith.constant 0 : i32
    %c0_i32_0 = arith.constant 0 : i32
    %c0_i32_1 = arith.constant 0 : i32
    return %arg0, %c0_i32, %c0_i32_0 : i32, i32, i32
  }
  func.func @transform_4(%arg0: i32, %arg1: i32) -> (i32, i32) {
    %c0_i32 = arith.constant 0 : i32
    %c0_i32_0 = arith.constant 0 : i32
    %c0_i32_1 = arith.constant 0 : i32
    return %c0_i32, %c0_i32_0 : i32, i32
  }
  func.func @transform_5(%arg0: i32, %arg1: i32) -> (i32, i32, i32) {
    %c0_i32 = arith.constant 0 : i32
    %c0_i32_0 = arith.constant 0 : i32
    return %arg0, %arg1, %c0_i32 : i32, i32, i32
  }
  func.func @transform_6(%arg0: i32, %arg1: i32) -> (i32, i32, i32) {
    %c0_i32 = arith.constant 0 : i32
    %c0_i32_0 = arith.constant 0 : i32
    return %arg0, %arg1, %c0_i32 : i32, i32, i32
  }
}

module attributes {stable_mosaic.version = 11 : i64} {
  func.func @_ln_mlp_residual_kernel(%arg0: i32, %arg1: i32, %arg2: i32, %arg3: memref<1x64x256xbf16, #tpu.memory_space<vmem>>, %arg4: memref<1x256xbf16, #tpu.memory_space<vmem>>, %arg5: memref<256x512xbf16, #tpu.memory_space<vmem>>, %arg6: memref<256x512xbf16, #tpu.memory_space<vmem>>, %arg7: memref<512x256xbf16, #tpu.memory_space<vmem>>, %arg8: memref<1x64x256xbf16, #tpu.memory_space<vmem>>, %arg9: memref<64x256xbf16, #tpu.memory_space<vmem>>, %arg10: memref<64x256xf32, #tpu.memory_space<vmem>>) attributes {dimension_semantics = [#tpu.dimension_semantics<parallel>, #tpu.dimension_semantics<parallel>, #tpu.dimension_semantics<arbitrary>], iteration_bounds = array<i64: 2, 1, 1>, scalar_prefetch = 0 : i64, scratch_operands = 2 : i64, tpu.core_type = #tpu.core_type<tc>, window_params = [{transform_indices = @transform_0, window_bounds = array<i64: 1, 64, 256>}, {pipeline_mode = #tpu.pipeline_mode<synchronous>, transform_indices = @transform_1, window_bounds = array<i64: 1, 256>}, {transform_indices = @transform_2, window_bounds = array<i64: 256, 512>}, {transform_indices = @transform_3, window_bounds = array<i64: 256, 512>}, {transform_indices = @transform_4, window_bounds = array<i64: 512, 256>}, {transform_indices = @transform_5, window_bounds = array<i64: 1, 64, 256>}]} {
    %c0_i32 = arith.constant 0 : i32
    %0 = arith.cmpi eq, %arg2, %c0_i32 : i32
    %1 = arith.extui %0 : i1 to i32
    %c0_i32_0 = arith.constant 0 : i32
    %2 = arith.cmpi ne, %1, %c0_i32_0 : i32
    scf.if %2 {
      %c0_17 = arith.constant 0 : index
      %c0_18 = arith.constant 0 : index
      %c0_19 = arith.constant 0 : index
      %24 = vector.load %arg3[%c0_17, %c0_18, %c0_19] : memref<1x64x256xbf16, #tpu.memory_space<vmem>>, vector<1x64x256xbf16>
      %25 = vector.shape_cast %24 : vector<1x64x256xbf16> to vector<64x256xbf16>
      %26 = arith.extf %25 : vector<64x256xbf16> to vector<64x256xf32>
      %27 = arith.mulf %26, %26 : vector<64x256xf32>
      %cst_20 = arith.constant dense<0.000000e+00> : vector<64xf32>
      %28 = vector.multi_reduction <add>, %27, %cst_20 [1] : vector<64x256xf32> to vector<64xf32>
      %29 = vector.shape_cast %28 : vector<64xf32> to vector<64x1xf32>
      %cst_21 = arith.constant 2.560000e+02 : f32
      %30 = vector.broadcast %cst_21 : f32 to vector<64x1xf32>
      %31 = arith.divf %29, %30 : vector<64x1xf32>
      %cst_22 = arith.constant 9.99999997E-7 : f32
      %32 = vector.broadcast %cst_22 : f32 to vector<64x1xf32>
      %33 = arith.addf %31, %32 : vector<64x1xf32>
      %34 = math.rsqrt %33 : vector<64x1xf32>
      %35 = vector.broadcast %34 : vector<64x1xf32> to vector<64x256xf32>
      %36 = arith.mulf %26, %35 : vector<64x256xf32>
      %37 = arith.truncf %36 : vector<64x256xf32> to vector<64x256xbf16>
      %c0_23 = arith.constant 0 : index
      %c0_24 = arith.constant 0 : index
      %38 = vector.load %arg4[%c0_23, %c0_24] : memref<1x256xbf16, #tpu.memory_space<vmem>>, vector<1x256xbf16>
      %39 = vector.broadcast %38 : vector<1x256xbf16> to vector<64x256xbf16>
      %40 = arith.mulf %37, %39 : vector<64x256xbf16>
      %c0_25 = arith.constant 0 : index
      %c0_26 = arith.constant 0 : index
      %41 = vector.load %arg9[%c0_25, %c0_26] : memref<64x256xbf16, #tpu.memory_space<vmem>>, vector<64x256xbf16>
      tpu.vector_store %arg9[%c0_25, %c0_26], %40 {strides = array<i32>} : memref<64x256xbf16, #tpu.memory_space<vmem>>, vector<64x256xbf16>,
      %cst_27 = arith.constant 0.000000e+00 : f32
      %42 = vector.broadcast %cst_27 : f32 to vector<64x256xf32>
      %c0_28 = arith.constant 0 : index
      %c0_29 = arith.constant 0 : index
      %43 = vector.load %arg10[%c0_28, %c0_29] : memref<64x256xf32, #tpu.memory_space<vmem>>, vector<64x256xf32>
      tpu.vector_store %arg10[%c0_28, %c0_29], %42 {strides = array<i32>} : memref<64x256xf32, #tpu.memory_space<vmem>>, vector<64x256xf32>,
    } else {
    }
    %c0 = arith.constant 0 : index
    %c0_1 = arith.constant 0 : index
    %3 = vector.load %arg9[%c0, %c0_1] : memref<64x256xbf16, #tpu.memory_space<vmem>>, vector<64x256xbf16>
    %c0_2 = arith.constant 0 : index
    %c0_3 = arith.constant 0 : index
    %4 = vector.load %arg5[%c0_2, %c0_3] : memref<256x512xbf16, #tpu.memory_space<vmem>>, vector<256x512xbf16>
    %cst = arith.constant dense<0.000000e+00> : vector<64x512xf32>
    %5 = tpu.matmul %3, %4, %cst {dimension_numbers = #tpu.dot_dimension_numbers<[1], [0], [0], [1], [0, 0, 1, 1], [], []>} : vector<64x256xbf16>, vector<256x512xbf16>, vector<64x512xf32> -> vector<64x512xf32>
    %c0_4 = arith.constant 0 : index
    %c0_5 = arith.constant 0 : index
    %6 = vector.load %arg6[%c0_4, %c0_5] : memref<256x512xbf16, #tpu.memory_space<vmem>>, vector<256x512xbf16>
    %cst_6 = arith.constant dense<0.000000e+00> : vector<64x512xf32>
    %7 = tpu.matmul %3, %6, %cst_6 {dimension_numbers = #tpu.dot_dimension_numbers<[1], [0], [0], [1], [0, 0, 1, 1], [], []>} : vector<64x256xbf16>, vector<256x512xbf16>, vector<64x512xf32> -> vector<64x512xf32>
    %8 = arith.negf %5 : vector<64x512xf32>
    %9 = math.exp %8 : vector<64x512xf32>
    %cst_7 = arith.constant 1.000000e+00 : f32
    %10 = vector.broadcast %cst_7 : f32 to vector<64x512xf32>
    %11 = arith.addf %10, %9 : vector<64x512xf32>
    %12 = arith.divf %10, %11 : vector<64x512xf32>
    %13 = arith.mulf %5, %12 : vector<64x512xf32>
    %14 = arith.mulf %13, %7 : vector<64x512xf32>
    %15 = arith.truncf %14 : vector<64x512xf32> to vector<64x512xbf16>
    %c0_8 = arith.constant 0 : index
    %c0_9 = arith.constant 0 : index
    %16 = vector.load %arg10[%c0_8, %c0_9] : memref<64x256xf32, #tpu.memory_space<vmem>>, vector<64x256xf32>
    %c0_10 = arith.constant 0 : index
    %c0_11 = arith.constant 0 : index
    %17 = vector.load %arg7[%c0_10, %c0_11] : memref<512x256xbf16, #tpu.memory_space<vmem>>, vector<512x256xbf16>
    %cst_12 = arith.constant dense<0.000000e+00> : vector<64x256xf32>
    %18 = tpu.matmul %15, %17, %cst_12 {dimension_numbers = #tpu.dot_dimension_numbers<[1], [0], [0], [1], [0, 0, 1, 1], [], []>} : vector<64x512xbf16>, vector<512x256xbf16>, vector<64x256xf32> -> vector<64x256xf32>
    %19 = arith.addf %16, %18 : vector<64x256xf32>
    %c0_13 = arith.constant 0 : index
    %c0_14 = arith.constant 0 : index
    %20 = vector.load %arg10[%c0_13, %c0_14] : memref<64x256xf32, #tpu.memory_space<vmem>>, vector<64x256xf32>
    tpu.vector_store %arg10[%c0_13, %c0_14], %19 {strides = array<i32>} : memref<64x256xf32, #tpu.memory_space<vmem>>, vector<64x256xf32>,
    %c0_i32_15 = arith.constant 0 : i32
    %21 = arith.cmpi eq, %arg2, %c0_i32_15 : i32
    %22 = arith.extui %21 : i1 to i32
    %c0_i32_16 = arith.constant 0 : i32
    %23 = arith.cmpi ne, %22, %c0_i32_16 : i32
    scf.if %23 {
      %c0_17 = arith.constant 0 : index
      %c0_18 = arith.constant 0 : index
      %c0_19 = arith.constant 0 : index
      %24 = vector.load %arg3[%c0_17, %c0_18, %c0_19] : memref<1x64x256xbf16, #tpu.memory_space<vmem>>, vector<1x64x256xbf16>
      %25 = vector.shape_cast %24 : vector<1x64x256xbf16> to vector<64x256xbf16>
      %26 = arith.extf %25 : vector<64x256xbf16> to vector<64x256xf32>
      %c0_20 = arith.constant 0 : index
      %c0_21 = arith.constant 0 : index
      %27 = vector.load %arg10[%c0_20, %c0_21] : memref<64x256xf32, #tpu.memory_space<vmem>>, vector<64x256xf32>
      %28 = arith.addf %26, %27 : vector<64x256xf32>
      %29 = arith.truncf %28 : vector<64x256xf32> to vector<64x256xbf16>
      %c0_22 = arith.constant 0 : index
      %c0_23 = arith.constant 0 : index
      %c0_24 = arith.constant 0 : index
      %30 = vector.load %arg8[%c0_22, %c0_23, %c0_24] : memref<1x64x256xbf16, #tpu.memory_space<vmem>>, vector<1x64x256xbf16>
      %31 = vector.shape_cast %30 : vector<1x64x256xbf16> to vector<64x256xbf16>
      %32 = vector.shape_cast %29 : vector<64x256xbf16> to vector<1x64x256xbf16>
      tpu.vector_store %arg8[%c0_22, %c0_23, %c0_24], %32 {strides = array<i32>} : memref<1x64x256xbf16, #tpu.memory_space<vmem>>, vector<1x64x256xbf16>,
    } else {
    }
    return
  }
  func.func @transform_0(%arg0: i32, %arg1: i32, %arg2: i32) -> (i32, i32, i32) {
    %c0_i32 = arith.constant 0 : i32
    %c0_i32_0 = arith.constant 0 : i32
    return %arg0, %arg1, %c0_i32 : i32, i32, i32
  }
  func.func @transform_1(%arg0: i32, %arg1: i32, %arg2: i32) -> (i32, i32) {
    %c0_i32 = arith.constant 0 : i32
    %c0_i32_0 = arith.constant 0 : i32
    %c0_i32_1 = arith.constant 0 : i32
    return %c0_i32, %c0_i32_0 : i32, i32
  }
  func.func @transform_2(%arg0: i32, %arg1: i32, %arg2: i32) -> (i32, i32) {
    %c0_i32 = arith.constant 0 : i32
    %c0_i32_0 = arith.constant 0 : i32
    return %c0_i32, %arg2 : i32, i32
  }
  func.func @transform_3(%arg0: i32, %arg1: i32, %arg2: i32) -> (i32, i32) {
    %c0_i32 = arith.constant 0 : i32
    %c0_i32_0 = arith.constant 0 : i32
    return %c0_i32, %arg2 : i32, i32
  }
  func.func @transform_4(%arg0: i32, %arg1: i32, %arg2: i32) -> (i32, i32) {
    %c0_i32 = arith.constant 0 : i32
    %c0_i32_0 = arith.constant 0 : i32
    return %arg2, %c0_i32 : i32, i32
  }
  func.func @transform_5(%arg0: i32, %arg1: i32, %arg2: i32) -> (i32, i32, i32) {
    %c0_i32 = arith.constant 0 : i32
    %c0_i32_0 = arith.constant 0 : i32
    return %arg0, %arg1, %c0_i32 : i32, i32, i32
  }
}

module attributes {stable_mosaic.version = 11 : i64} {
  func.func @_ln_qkv_rope_kernel(%arg0: i32, %arg1: i32, %arg2: memref<1x64x256xbf16, #tpu.memory_space<vmem>>, %arg3: memref<1x256xbf16, #tpu.memory_space<vmem>>, %arg4: memref<256x512xbf16, #tpu.memory_space<vmem>>, %arg5: memref<1x512xbf16, #tpu.memory_space<vmem>>, %arg6: memref<64x128xf32, #tpu.memory_space<vmem>>, %arg7: memref<64x128xf32, #tpu.memory_space<vmem>>, %arg8: memref<1x64x256xbf16, #tpu.memory_space<vmem>>, %arg9: memref<1x64x128xbf16, #tpu.memory_space<vmem>>, %arg10: memref<1x64x128xbf16, #tpu.memory_space<vmem>>) attributes {dimension_semantics = [#tpu.dimension_semantics<parallel>, #tpu.dimension_semantics<parallel>], iteration_bounds = array<i64: 2, 1>, scalar_prefetch = 0 : i64, scratch_operands = 0 : i64, tpu.core_type = #tpu.core_type<tc>, window_params = [{transform_indices = @transform_0, window_bounds = array<i64: 1, 64, 256>}, {pipeline_mode = #tpu.pipeline_mode<synchronous>, transform_indices = @transform_1, window_bounds = array<i64: 1, 256>}, {pipeline_mode = #tpu.pipeline_mode<synchronous>, transform_indices = @transform_2, window_bounds = array<i64: 256, 512>}, {pipeline_mode = #tpu.pipeline_mode<synchronous>, transform_indices = @transform_3, window_bounds = array<i64: 1, 512>}, {transform_indices = @transform_4, window_bounds = array<i64: 64, 128>}, {transform_indices = @transform_5, window_bounds = array<i64: 64, 128>}, {transform_indices = @transform_6, window_bounds = array<i64: 1, 64, 256>}, {transform_indices = @transform_7, window_bounds = array<i64: 1, 64, 128>}, {transform_indices = @transform_8, window_bounds = array<i64: 1, 64, 128>}]} {
    %c0 = arith.constant 0 : index
    %c0_0 = arith.constant 0 : index
    %c0_1 = arith.constant 0 : index
    %0 = vector.load %arg2[%c0, %c0_0, %c0_1] : memref<1x64x256xbf16, #tpu.memory_space<vmem>>, vector<1x64x256xbf16>
    %1 = vector.shape_cast %0 : vector<1x64x256xbf16> to vector<64x256xbf16>
    %2 = arith.extf %1 : vector<64x256xbf16> to vector<64x256xf32>
    %3 = arith.mulf %2, %2 : vector<64x256xf32>
    %cst = arith.constant dense<0.000000e+00> : vector<64xf32>
    %4 = vector.multi_reduction <add>, %3, %cst [1] : vector<64x256xf32> to vector<64xf32>
    %5 = vector.shape_cast %4 : vector<64xf32> to vector<64x1xf32>
    %cst_2 = arith.constant 2.560000e+02 : f32
    %6 = vector.broadcast %cst_2 : f32 to vector<64x1xf32>
    %7 = arith.divf %5, %6 : vector<64x1xf32>
    %cst_3 = arith.constant 9.99999997E-7 : f32
    %8 = vector.broadcast %cst_3 : f32 to vector<64x1xf32>
    %9 = arith.addf %7, %8 : vector<64x1xf32>
    %10 = math.rsqrt %9 : vector<64x1xf32>
    %11 = vector.broadcast %10 : vector<64x1xf32> to vector<64x256xf32>
    %12 = arith.mulf %2, %11 : vector<64x256xf32>
    %13 = arith.truncf %12 : vector<64x256xf32> to vector<64x256xbf16>
    %c0_4 = arith.constant 0 : index
    %c0_5 = arith.constant 0 : index
    %14 = vector.load %arg3[%c0_4, %c0_5] : memref<1x256xbf16, #tpu.memory_space<vmem>>, vector<1x256xbf16>
    %15 = vector.broadcast %14 : vector<1x256xbf16> to vector<64x256xbf16>
    %16 = arith.mulf %13, %15 : vector<64x256xbf16>
    %c0_6 = arith.constant 0 : index
    %c0_7 = arith.constant 0 : index
    %17 = vector.load %arg4[%c0_6, %c0_7] : memref<256x512xbf16, #tpu.memory_space<vmem>>, vector<256x512xbf16>
    %cst_8 = arith.constant dense<0.000000e+00> : vector<64x512xf32>
    %18 = tpu.matmul %16, %17, %cst_8 {dimension_numbers = #tpu.dot_dimension_numbers<[1], [0], [0], [1], [0, 0, 1, 1], [], []>} : vector<64x256xbf16>, vector<256x512xbf16>, vector<64x512xf32> -> vector<64x512xf32>
    %c0_9 = arith.constant 0 : index
    %c0_10 = arith.constant 0 : index
    %19 = vector.load %arg5[%c0_9, %c0_10] : memref<1x512xbf16, #tpu.memory_space<vmem>>, vector<1x512xbf16>
    %20 = arith.extf %19 : vector<1x512xbf16> to vector<1x512xf32>
    %21 = vector.broadcast %20 : vector<1x512xf32> to vector<64x512xf32>
    %22 = arith.addf %18, %21 : vector<64x512xf32>
    %c0_11 = arith.constant 0 : index
    %c0_12 = arith.constant 0 : index
    %23 = vector.load %arg6[%c0_11, %c0_12] : memref<64x128xf32, #tpu.memory_space<vmem>>, vector<64x128xf32>
    %c0_13 = arith.constant 0 : index
    %c0_14 = arith.constant 0 : index
    %24 = vector.load %arg7[%c0_13, %c0_14] : memref<64x128xf32, #tpu.memory_space<vmem>>, vector<64x128xf32>
    %25 = vector.extract_strided_slice %22 {offsets = [0, 0], sizes = [64, 128], strides = [1, 1]} : vector<64x512xf32> to vector<64x128xf32>
    %26 = arith.mulf %25, %23 : vector<64x128xf32>
    %c64_i32 = arith.constant 64 : i32
    %27 = tpu.dynamic_rotate %25 by %c64_i32 dim 1 : vector<64x128xf32>, i32 -> vector<64x128xf32>
    %28 = arith.mulf %27, %24 : vector<64x128xf32>
    %29 = arith.addf %26, %28 : vector<64x128xf32>
    %cst_15 = arith.constant 0.0883883461 : f32
    %30 = vector.broadcast %cst_15 : f32 to vector<64x128xf32>
    %31 = arith.mulf %29, %30 : vector<64x128xf32>
    %32 = arith.truncf %31 : vector<64x128xf32> to vector<64x128xbf16>
    %c0_16 = arith.constant 0 : index
    %c0_17 = arith.constant 0 : index
    %c0_18 = arith.constant 0 : index
    %33 = vector.load %arg8[%c0_16, %c0_17, %c0_18] : memref<1x64x256xbf16, #tpu.memory_space<vmem>>, vector<1x64x128xbf16>
    %34 = vector.shape_cast %33 : vector<1x64x128xbf16> to vector<64x128xbf16>
    %35 = vector.shape_cast %32 : vector<64x128xbf16> to vector<1x64x128xbf16>
    tpu.vector_store %arg8[%c0_16, %c0_17, %c0_18], %35 {strides = array<i32>} : memref<1x64x256xbf16, #tpu.memory_space<vmem>>, vector<1x64x128xbf16>,
    %36 = vector.extract_strided_slice %22 {offsets = [0, 128], sizes = [64, 128], strides = [1, 1]} : vector<64x512xf32> to vector<64x128xf32>
    %37 = arith.mulf %36, %23 : vector<64x128xf32>
    %c64_i32_19 = arith.constant 64 : i32
    %38 = tpu.dynamic_rotate %36 by %c64_i32_19 dim 1 : vector<64x128xf32>, i32 -> vector<64x128xf32>
    %39 = arith.mulf %38, %24 : vector<64x128xf32>
    %40 = arith.addf %37, %39 : vector<64x128xf32>
    %cst_20 = arith.constant 0.0883883461 : f32
    %41 = vector.broadcast %cst_20 : f32 to vector<64x128xf32>
    %42 = arith.mulf %40, %41 : vector<64x128xf32>
    %43 = arith.truncf %42 : vector<64x128xf32> to vector<64x128xbf16>
    %c0_21 = arith.constant 0 : index
    %c0_22 = arith.constant 0 : index
    %c128 = arith.constant 128 : index
    %44 = vector.load %arg8[%c0_21, %c0_22, %c128] : memref<1x64x256xbf16, #tpu.memory_space<vmem>>, vector<1x64x128xbf16>
    %45 = vector.shape_cast %44 : vector<1x64x128xbf16> to vector<64x128xbf16>
    %46 = vector.shape_cast %43 : vector<64x128xbf16> to vector<1x64x128xbf16>
    tpu.vector_store %arg8[%c0_21, %c0_22, %c128], %46 {strides = array<i32>} : memref<1x64x256xbf16, #tpu.memory_space<vmem>>, vector<1x64x128xbf16>,
    %47 = vector.extract_strided_slice %22 {offsets = [0, 256], sizes = [64, 128], strides = [1, 1]} : vector<64x512xf32> to vector<64x128xf32>
    %48 = arith.mulf %47, %23 : vector<64x128xf32>
    %c64_i32_23 = arith.constant 64 : i32
    %49 = tpu.dynamic_rotate %47 by %c64_i32_23 dim 1 : vector<64x128xf32>, i32 -> vector<64x128xf32>
    %50 = arith.mulf %49, %24 : vector<64x128xf32>
    %51 = arith.addf %48, %50 : vector<64x128xf32>
    %52 = arith.truncf %51 : vector<64x128xf32> to vector<64x128xbf16>
    %c0_24 = arith.constant 0 : index
    %c0_25 = arith.constant 0 : index
    %c0_26 = arith.constant 0 : index
    %53 = vector.load %arg9[%c0_24, %c0_25, %c0_26] : memref<1x64x128xbf16, #tpu.memory_space<vmem>>, vector<1x64x128xbf16>
    %54 = vector.shape_cast %53 : vector<1x64x128xbf16> to vector<64x128xbf16>
    %55 = vector.shape_cast %52 : vector<64x128xbf16> to vector<1x64x128xbf16>
    tpu.vector_store %arg9[%c0_24, %c0_25, %c0_26], %55 {strides = array<i32>} : memref<1x64x128xbf16, #tpu.memory_space<vmem>>, vector<1x64x128xbf16>,
    %56 = vector.extract_strided_slice %22 {offsets = [0, 384], sizes = [64, 128], strides = [1, 1]} : vector<64x512xf32> to vector<64x128xf32>
    %57 = arith.truncf %56 : vector<64x128xf32> to vector<64x128xbf16>
    %c0_27 = arith.constant 0 : index
    %c0_28 = arith.constant 0 : index
    %c0_29 = arith.constant 0 : index
    %58 = vector.load %arg10[%c0_27, %c0_28, %c0_29] : memref<1x64x128xbf16, #tpu.memory_space<vmem>>, vector<1x64x128xbf16>
    %59 = vector.shape_cast %58 : vector<1x64x128xbf16> to vector<64x128xbf16>
    %60 = vector.shape_cast %57 : vector<64x128xbf16> to vector<1x64x128xbf16>
    tpu.vector_store %arg10[%c0_27, %c0_28, %c0_29], %60 {strides = array<i32>} : memref<1x64x128xbf16, #tpu.memory_space<vmem>>, vector<1x64x128xbf16>,
    return
  }
  func.func @transform_0(%arg0: i32, %arg1: i32) -> (i32, i32, i32) {
    %c0_i32 = arith.constant 0 : i32
    %c0_i32_0 = arith.constant 0 : i32
    return %arg0, %arg1, %c0_i32 : i32, i32, i32
  }
  func.func @transform_1(%arg0: i32, %arg1: i32) -> (i32, i32) {
    %c0_i32 = arith.constant 0 : i32
    %c0_i32_0 = arith.constant 0 : i32
    %c0_i32_1 = arith.constant 0 : i32
    return %c0_i32, %c0_i32_0 : i32, i32
  }
  func.func @transform_2(%arg0: i32, %arg1: i32) -> (i32, i32) {
    %c0_i32 = arith.constant 0 : i32
    %c0_i32_0 = arith.constant 0 : i32
    %c0_i32_1 = arith.constant 0 : i32
    return %c0_i32, %c0_i32_0 : i32, i32
  }
  func.func @transform_3(%arg0: i32, %arg1: i32) -> (i32, i32) {
    %c0_i32 = arith.constant 0 : i32
    %c0_i32_0 = arith.constant 0 : i32
    %c0_i32_1 = arith.constant 0 : i32
    return %c0_i32, %c0_i32_0 : i32, i32
  }
  func.func @transform_4(%arg0: i32, %arg1: i32) -> (i32, i32) {
    %c0_i32 = arith.constant 0 : i32
    %c0_i32_0 = arith.constant 0 : i32
    return %arg1, %c0_i32 : i32, i32
  }
  func.func @transform_5(%arg0: i32, %arg1: i32) -> (i32, i32) {
    %c0_i32 = arith.constant 0 : i32
    %c0_i32_0 = arith.constant 0 : i32
    return %arg1, %c0_i32 : i32, i32
  }
  func.func @transform_6(%arg0: i32, %arg1: i32) -> (i32, i32, i32) {
    %c0_i32 = arith.constant 0 : i32
    %c0_i32_0 = arith.constant 0 : i32
    return %arg0, %arg1, %c0_i32 : i32, i32, i32
  }
  func.func @transform_7(%arg0: i32, %arg1: i32) -> (i32, i32, i32) {
    %c0_i32 = arith.constant 0 : i32
    %c0_i32_0 = arith.constant 0 : i32
    return %arg0, %arg1, %c0_i32 : i32, i32, i32
  }
  func.func @transform_8(%arg0: i32, %arg1: i32) -> (i32, i32, i32) {
    %c0_i32 = arith.constant 0 : i32
    %c0_i32_0 = arith.constant 0 : i32
    return %arg0, %arg1, %c0_i32 : i32, i32, i32
  }
}

module attributes {stable_mosaic.version = 11 : i64} {
  func.func @_ln_proj_kernel(%arg0: i32, %arg1: memref<64x256xbf16, #tpu.memory_space<vmem>>, %arg2: memref<1x256xbf16, #tpu.memory_space<vmem>>, %arg3: memref<256x256xbf16, #tpu.memory_space<vmem>>, %arg4: memref<1x256xbf16, #tpu.memory_space<vmem>>, %arg5: memref<64x256xbf16, #tpu.memory_space<vmem>>) attributes {dimension_semantics = [#tpu.dimension_semantics<parallel>], iteration_bounds = array<i64: 1>, scalar_prefetch = 0 : i64, scratch_operands = 0 : i64, tpu.core_type = #tpu.core_type<tc>, window_params = [{transform_indices = @transform_0, window_bounds = array<i64: 64, 256>}, {pipeline_mode = #tpu.pipeline_mode<synchronous>, transform_indices = @transform_1, window_bounds = array<i64: 1, 256>}, {pipeline_mode = #tpu.pipeline_mode<synchronous>, transform_indices = @transform_2, window_bounds = array<i64: 256, 256>}, {pipeline_mode = #tpu.pipeline_mode<synchronous>, transform_indices = @transform_3, window_bounds = array<i64: 1, 256>}, {transform_indices = @transform_4, window_bounds = array<i64: 64, 256>}]} {
    %c0 = arith.constant 0 : index
    %c0_0 = arith.constant 0 : index
    %0 = vector.load %arg1[%c0, %c0_0] : memref<64x256xbf16, #tpu.memory_space<vmem>>, vector<64x256xbf16>
    %1 = arith.extf %0 : vector<64x256xbf16> to vector<64x256xf32>
    %2 = arith.mulf %1, %1 : vector<64x256xf32>
    %cst = arith.constant dense<0.000000e+00> : vector<64xf32>
    %3 = vector.multi_reduction <add>, %2, %cst [1] : vector<64x256xf32> to vector<64xf32>
    %4 = vector.shape_cast %3 : vector<64xf32> to vector<64x1xf32>
    %cst_1 = arith.constant 2.560000e+02 : f32
    %5 = vector.broadcast %cst_1 : f32 to vector<64x1xf32>
    %6 = arith.divf %4, %5 : vector<64x1xf32>
    %cst_2 = arith.constant 9.99999997E-7 : f32
    %7 = vector.broadcast %cst_2 : f32 to vector<64x1xf32>
    %8 = arith.addf %6, %7 : vector<64x1xf32>
    %9 = math.rsqrt %8 : vector<64x1xf32>
    %10 = vector.broadcast %9 : vector<64x1xf32> to vector<64x256xf32>
    %11 = arith.mulf %1, %10 : vector<64x256xf32>
    %12 = arith.truncf %11 : vector<64x256xf32> to vector<64x256xbf16>
    %c0_3 = arith.constant 0 : index
    %c0_4 = arith.constant 0 : index
    %13 = vector.load %arg2[%c0_3, %c0_4] : memref<1x256xbf16, #tpu.memory_space<vmem>>, vector<1x256xbf16>
    %14 = vector.broadcast %13 : vector<1x256xbf16> to vector<64x256xbf16>
    %15 = arith.mulf %12, %14 : vector<64x256xbf16>
    %c0_5 = arith.constant 0 : index
    %c0_6 = arith.constant 0 : index
    %16 = vector.load %arg3[%c0_5, %c0_6] : memref<256x256xbf16, #tpu.memory_space<vmem>>, vector<256x256xbf16>
    %cst_7 = arith.constant dense<0.000000e+00> : vector<64x256xf32>
    %17 = tpu.matmul %15, %16, %cst_7 {dimension_numbers = #tpu.dot_dimension_numbers<[1], [0], [0], [1], [0, 0, 1, 1], [], []>} : vector<64x256xbf16>, vector<256x256xbf16>, vector<64x256xf32> -> vector<64x256xf32>
    %c0_8 = arith.constant 0 : index
    %c0_9 = arith.constant 0 : index
    %18 = vector.load %arg4[%c0_8, %c0_9] : memref<1x256xbf16, #tpu.memory_space<vmem>>, vector<1x256xbf16>
    %19 = arith.extf %18 : vector<1x256xbf16> to vector<1x256xf32>
    %20 = vector.broadcast %19 : vector<1x256xf32> to vector<64x256xf32>
    %21 = arith.addf %17, %20 : vector<64x256xf32>
    %22 = arith.truncf %21 : vector<64x256xf32> to vector<64x256xbf16>
    %c0_10 = arith.constant 0 : index
    %c0_11 = arith.constant 0 : index
    %23 = vector.load %arg5[%c0_10, %c0_11] : memref<64x256xbf16, #tpu.memory_space<vmem>>, vector<64x256xbf16>
    tpu.vector_store %arg5[%c0_10, %c0_11], %22 {strides = array<i32>} : memref<64x256xbf16, #tpu.memory_space<vmem>>, vector<64x256xbf16>,
    return
  }
  func.func @transform_0(%arg0: i32) -> (i32, i32) {
    %c0_i32 = arith.constant 0 : i32
    %c0_i32_0 = arith.constant 0 : i32
    return %arg0, %c0_i32 : i32, i32
  }
  func.func @transform_1(%arg0: i32) -> (i32, i32) {
    %c0_i32 = arith.constant 0 : i32
    %c0_i32_0 = arith.constant 0 : i32
    %c0_i32_1 = arith.constant 0 : i32
    return %c0_i32, %c0_i32_0 : i32, i32
  }
  func.func @transform_2(%arg0: i32) -> (i32, i32) {
    %c0_i32 = arith.constant 0 : i32
    %c0_i32_0 = arith.constant 0 : i32
    %c0_i32_1 = arith.constant 0 : i32
    return %c0_i32, %c0_i32_0 : i32, i32
  }
  func.func @transform_3(%arg0: i32) -> (i32, i32) {
    %c0_i32 = arith.constant 0 : i32
    %c0_i32_0 = arith.constant 0 : i32
    %c0_i32_1 = arith.constant 0 : i32
    return %c0_i32, %c0_i32_0 : i32, i32
  }
  func.func @transform_4(%arg0: i32) -> (i32, i32) {
    %c0_i32 = arith.constant 0 : i32
    %c0_i32_0 = arith.constant 0 : i32
    return %arg0, %c0_i32 : i32, i32
  }
}

</mosaic_0001>

<bundles_post_ra>
// kernel: context_embd_forward.7
= control target key start
LH: loop header
LB: loop body
LE: loop exit
PB: predicated region body
PF: predicated region fallthrough
CT: control target
= control target key end

     0   :  { %s2112_s27 = smov 0   ;;  %s2114_s28 = smov 0   ;;  %s2700_s0 = inlined_call_operand.vmem [shape: bf16[2,64,256], index: 0, kind: input, shape index: {}]   ;;  %s2701_s1 = inlined_call_operand.vmem [shape: bf16[1,256], index: 1, kind: input, shape index: {}]   ;;  %s2702_s2 = inlined_call_operand.vmem [shape: bf16[256,512], index: 2, kind: input, shape index: {}]   ;;  %s2703_s3 = inlined_call_operand.vmem [shape: bf16[1,512], index: 3, kind: input, shape index: {}]   ;;  %s2704_s4 = inlined_call_operand.vmem [shape: f32[64,128], index: 4, kind: input, shape index: {}]   ;;  %s2705_s5 = inlined_call_operand.vmem [shape: f32[64,128], index: 5, kind: input, shape index: {}]   ;;  %s2706_s6 = inlined_call_operand.vmem [shape: bf16[2,64,256], index: 6, kind: output, shape index: {0}]   ;;  %s2707_s7 = inlined_call_operand.vmem [shape: bf16[2,64,128], index: 7, kind: output, shape index: {1}]   ;;  %s2708_s8 = inlined_call_operand.vmem [shape: bf16[2,64,128], index: 8, kind: output, shape index: {2}]  }
   0x1   :  { %s2116_s29 = smov 0  }
   0x2 LB: > { %s31_s30 = sadd.s32 1, %s2059_s28  ;;  %p1713_p0 = scmp.ge.s32.totalorder %s2063_s29, 1  ;;  %s2063_s29 = sphi %s2116_s29, %s19_s29   ;;  %s2059_s28 = sphi %s2114_s28, %s2710_s28   ;;  %s2055_s27 = sphi %s2112_s27, %s2709_s27  }
   0x3   : > { %p33_p1 = scmp.ge.s32.totalorder %s31_s30, 2  ;;  %p315_p2 = scmp.lt.s32.totalorder %s2063_s29, 3 }
   0x5   : > { %s2712_s30 = smov (%p33_p1, %s31_s30), 0  ;;  %p316_p3 = pnand %p1713_p0, %p315_p2 }
   0x6   : > { %p388_p4 = scmp.lt.s32.totalorder (!%p316_p3), %s2055_s27, 1  ;;  %v1929_v0 = vld [vmem:[%s2702_s2 + $0x4] ss:$16 sps:$4 sm:$0xff] (!%p316_p3)   ;;  %v1931_v1 = vld [vmem:[%s2702_s2 + $0xc] ss:$16 sps:$4 sm:$0xff] (!%p316_p3)   ;;  %s2066_s9 = smov (!%p316_p3), 64  }
   0x7   : > { %319 = sbr.rel (%p316_p3) target bundleno = 578 (0x242), region = 44  ;;  %1023 = vmatprep.subr.bf16.mxu0 (!%p316_p3), %v1929_v0  ;;  %v1933_v2 = vld [vmem:[%s2702_s2] ss:$16 sps:$4 sm:$0xff] (!%p316_p3)   ;;  %v1934_v3 = vld [vmem:[%s2702_s2 + $0x8] ss:$16 sps:$4 sm:$0xff] (!%p316_p3)   ;;  %1096 = vmatprep.subr.bf16.mxu1 (!%p316_p3), %v1931_v1 }
   0x8   : > { %v1935_v4 = vld [vmem:[%s2702_s2 + $0x24] ss:$16 sps:$4 sm:$0xff] (!%p316_p3)   ;;  %1024 = vmatpush1.bf16.msra.mxu0 (!%p316_p3), %v1933_v2  ;;  %1097 = vmatpush1.bf16.msra.mxu1 (!%p316_p3), %v1934_v3  ;;  %v1937_v5 = vld [vmem:[%s2702_s2 + $0x2c] ss:$16 sps:$4 sm:$0xff] (!%p316_p3)   ;;  %v1939_v6 = vld [vmem:[%s2702_s2 + $0x20] ss:$16 sps:$4 sm:$0xff] (!%p316_p3)  }
   0x9   : > { %1025 = vmatprep.subr.bf16.mxu0 (!%p316_p3), %v1935_v4  ;;  %v1940_v7 = vld [vmem:[%s2702_s2 + $0x28] ss:$16 sps:$4 sm:$0xff] (!%p316_p3)   ;;  %1098 = vmatprep.subr.bf16.mxu1 (!%p316_p3), %v1937_v5  ;;  %v1941_v23 = vld [vmem:[%s2702_s2 + $0x44] ss:$16 sps:$4 sm:$0xff] (!%p316_p3)   ;;  %v1943_v29 = vld [vmem:[%s2702_s2 + $0x4c] ss:$16 sps:$4 sm:$0xff] (!%p316_p3)  }
   0xa   : > { %v1945_v34 = vld [vmem:[%s2702_s2 + $0x40] ss:$16 sps:$4 sm:$0xff] (!%p316_p3)   ;;  %v1946_v35 = vld [vmem:[%s2702_s2 + $0x48] ss:$16 sps:$4 sm:$0xff] (!%p316_p3)   ;;  %v1947_v40 = vld [vmem:[%s2702_s2 + $0x64] ss:$16 sps:$4 sm:$0xff] (!%p316_p3)  }
   0xb   : > { %v1949_v45 = vld [vmem:[%s2702_s2 + $0x6c] ss:$16 sps:$4 sm:$0xff] (!%p316_p3)   ;;  %v1951_v46 = vld [vmem:[%s2702_s2 + $0x60] ss:$16 sps:$4 sm:$0xff] (!%p316_p3)   ;;  %v1952_v51 = vld [vmem:[%s2702_s2 + $0x68] ss:$16 sps:$4 sm:$0xff] (!%p316_p3)  }
   0xc   : > { %1026 = vmatpush1.bf16.msra.mxu0 (!%p316_p3), %v1939_v6  ;;  %1099 = vmatpush1.bf16.msra.mxu1 (!%p316_p3), %v1940_v7  ;;  %v1953_v56 = vld [vmem:[%s2702_s2 + $0x84] ss:$16 sps:$4 sm:$0xff] (!%p316_p3)   ;;  %v1955_v57 = vld [vmem:[%s2702_s2 + $0x8c] ss:$16 sps:$4 sm:$0xff] (!%p316_p3)   ;;  %v1957_v58 = vld [vmem:[%s2702_s2 + $0x80] ss:$16 sps:$4 sm:$0xff] (!%p316_p3)  }
   0xd   : > { %1027 = vmatprep.subr.bf16.mxu0 (!%p316_p3), %v1941_v23  ;;  %1100 = vmatprep.subr.bf16.mxu1 (!%p316_p3), %v1943_v29  ;;  %v1958_v59 = vld [vmem:[%s2702_s2 + $0x88] ss:$16 sps:$4 sm:$0xff] (!%p316_p3)   ;;  %v1959_v63 = vld [vmem:[%s2702_s2 + $0xa4] ss:$16 sps:$4 sm:$0xff] (!%p316_p3)   ;;  %v1961_v3 = vld [vmem:[%s2702_s2 + $0xac] ss:$16 sps:$4 sm:$0xff] (!%p316_p3)  }
   0xe   : > { %s2714_s27 = smov (!%p388_p4, %s2055_s27), 1  ;;  %v1963_v4 = vld [vmem:[%s2702_s2 + $0xa0] ss:$16 sps:$4 sm:$0xff]   ;;  %v1964_v5 = vld [vmem:[%s2702_s2 + $0xa8] ss:$16 sps:$4 sm:$0xff]  }
   0xf   : > { %s1821_s19 = sshll.u32 %s2714_s27, 6  ;;  %v1965_v7 = vld [vmem:[%s2702_s2 + $0xc4] ss:$16 sps:$4 sm:$0xff]   ;;  %v1976_v23 = vld [vmem:[%s2702_s2 + $0xe8] ss:$16 sps:$4 sm:$0xff]  }
  0x10   : > { %s396_s26 = scalar_lea.vmem %s2700_s0, %s1821_s19  ;;  %1028 = vmatpush1.bf16.msra.mxu0 %v1945_v34  ;;  %1101 = vmatpush1.bf16.msra.mxu1 %v1946_v35  ;;  %v1985_v29 = vld [vmem:[%s2702_s2 + $0x12c] ss:$16 sps:$4 sm:$0xff]   ;;  %v1993_v34 = vld [vmem:[%s2702_s2 + $0x140] ss:$16 sps:$4 sm:$0xff]   ;;  %v1994_v35 = vld [vmem:[%s2702_s2 + $0x148] ss:$16 sps:$4 sm:$0xff]   ;;  %s2599_s24 = scalar_lea.vmem %s2706_s6, %s1821_s19 }
  0x11   : > { %v441_v8 = vld [vmem:[%s396_s26] sm:$0xff]  ;;  %v442_v9 = vld [vmem:[%s396_s26 + $0x8] sm:$0xff]  ;;  %v443_v10 = vld [vmem:[%s396_s26 + $0x10] sm:$0xff]  ;;  %1029 = vmatprep.subr.bf16.mxu0 %v1947_v40  ;;  %1102 = vmatprep.subr.bf16.mxu1 %v1949_v45 }
  0x12   : > { %v2162_v11 = vunpack.c.l.bf16 %v441_v8  ;;  %v2164_v12 = vunpack.c.h.bf16 %v441_v8  ;;  %v2166_v13 = vunpack.c.l.bf16 %v442_v9  ;;  %v2168_v14 = vunpack.c.h.bf16 %v442_v9  ;;  %v444_v15 = vld [vmem:[%s396_s26 + $0x18] sm:$0xff]  ;;  %v446_v16 = vld [vmem:[%s396_s26 + $0x28] sm:$0xff]  ;;  %v445_v21 = vld [vmem:[%s396_s26 + $0x20] sm:$0xff] }
  0x13   : > { %v2170_v17 = vunpack.c.l.bf16 %v443_v10  ;;  %v2172_v18 = vunpack.c.h.bf16 %v443_v10  ;;  %v2174_v19 = vunpack.c.l.bf16 %v444_v15  ;;  %v2176_v20 = vunpack.c.h.bf16 %v444_v15  ;;  %v448_v22 = vld [vmem:[%s396_s26 + $0x38] sm:$0xff]  ;;  %v447_v28 = vld [vmem:[%s396_s26 + $0x30] sm:$0xff]  ;;  %s1823_s26 = sshll.u32 %s2714_s27, 5 }
  0x14   : > { %v465_v24 = vmul.f32 %v2162_v11, %v2162_v11  ;;  %v466_v25 = vmul.f32 %v2164_v12, %v2164_v12  ;;  %v467_v26 = vmul.f32 %v2166_v13, %v2166_v13  ;;  %v468_v27 = vmul.f32 %v2168_v14, %v2168_v14  ;;  %1030 = vmatpush1.bf16.msra.mxu0 %v1951_v46  ;;  %v1967_v9 = vld [vmem:[%s2702_s2 + $0xcc] ss:$16 sps:$4 sm:$0xff]   ;;  %v1969_v10 = vld [vmem:[%s2702_s2 + $0xc0] ss:$16 sps:$4 sm:$0xff]   ;;  %v1970_v15 = vld [vmem:[%s2702_s2 + $0xc8] ss:$16 sps:$4 sm:$0xff]   ;;  %s2459_s12 = scalar_lea.vmem %s2708_s8, %s1823_s26 }
  0x15   : > { %v469_v30 = vmul.f32 %v2170_v17, %v2170_v17  ;;  %v470_v31 = vmul.f32 %v2172_v18, %v2172_v18  ;;  %v471_v32 = vmul.f32 %v2174_v19, %v2174_v19  ;;  %v472_v33 = vmul.f32 %v2176_v20, %v2176_v20  ;;  %1103 = vmatpush1.bf16.msra.mxu1 %v1952_v51  ;;  %v1999_v40 = vld [vmem:[%s2702_s2 + $0x160] ss:$16 sps:$4 sm:$0xff]   ;;  %v2003_v45 = vld [vmem:[%s2702_s2 + $0x18c] ss:$16 sps:$4 sm:$0xff]  }
  0x16   : > { %v481_v36 = vadd.f32 %v466_v25, %v465_v24  ;;  %v484_v37 = vadd.f32 %v468_v27, %v467_v26  ;;  %v2206_v38 = vunpack.c.l.bf16 %v446_v16  ;;  %v2208_v39 = vunpack.c.h.bf16 %v446_v16  ;;  %1031 = vmatprep.subr.bf16.mxu0 %v1953_v56  ;;  %1104 = vmatprep.subr.bf16.mxu1 %v1955_v57  ;;  %v1971_v16 = vld [vmem:[%s2702_s2 + $0xe4] ss:$16 sps:$4 sm:$0xff]   ;;  %v1979_v25 = vld [vmem:[%s2702_s2 + $0x10c] ss:$16 sps:$4 sm:$0xff]   ;;  %v1981_v26 = vld [vmem:[%s2702_s2 + $0x100] ss:$16 sps:$4 sm:$0xff]  }
  0x17   : > { %v487_v41 = vadd.f32 %v470_v31, %v469_v30  ;;  %v490_v42 = vadd.f32 %v472_v33, %v471_v32  ;;  %v2213_v43 = vunpack.c.l.bf16 %v445_v21  ;;  %v2215_v44 = vunpack.c.h.bf16 %v445_v21  ;;  %v1973_v21 = vld [vmem:[%s2702_s2 + $0xec] ss:$16 sps:$4 sm:$0xff]   ;;  %v1977_v24 = vld [vmem:[%s2702_s2 + $0x104] ss:$16 sps:$4 sm:$0xff]   ;;  %v1982_v27 = vld [vmem:[%s2702_s2 + $0x108] ss:$16 sps:$4 sm:$0xff]  }
  0x18   : > { %482 = vadd.xlane.f32.xlu0 %v481_v36  ;;  %v475_v47 = vmul.f32 %v2206_v38, %v2206_v38  ;;  %v476_v48 = vmul.f32 %v2208_v39, %v2208_v39  ;;  %v2227_v49 = vunpack.c.l.bf16 %v448_v22  ;;  %v2229_v50 = vunpack.c.h.bf16 %v448_v22  ;;  %1032 = vmatpush1.bf16.msra.mxu0 %v1957_v58  ;;  %v1975_v22 = vld [vmem:[%s2702_s2 + $0xe0] ss:$16 sps:$4 sm:$0xff]   ;;  %v1988_v31 = vld [vmem:[%s2702_s2 + $0x128] ss:$16 sps:$4 sm:$0xff]   ;;  %v1989_v32 = vld [vmem:[%s2702_s2 + $0x144] ss:$16 sps:$4 sm:$0xff]  }
  0x19   : > { %488 = vadd.xlane.f32.xlu1 %v487_v41  ;;  %v473_v52 = vmul.f32 %v2213_v43, %v2213_v43  ;;  %v474_v53 = vmul.f32 %v2215_v44, %v2215_v44  ;;  %v2238_v54 = vunpack.c.l.bf16 %v447_v28  ;;  %v2240_v55 = vunpack.c.h.bf16 %v447_v28  ;;  %1105 = vmatpush1.bf16.msra.mxu1 %v1958_v59  ;;  %v1983_v28 = vld [vmem:[%s2702_s2 + $0x124] ss:$16 sps:$4 sm:$0xff]   ;;  %v1987_v30 = vld [vmem:[%s2702_s2 + $0x120] ss:$16 sps:$4 sm:$0xff]   ;;  %v1991_v33 = vld [vmem:[%s2702_s2 + $0x14c] ss:$16 sps:$4 sm:$0xff]  }
  0x1a   : > { %v496_v0 = vadd.f32 %v476_v48, %v475_v47  ;;  %v479_v1 = vmul.f32 %v2227_v49, %v2227_v49  ;;  %v480_v2 = vmul.f32 %v2229_v50, %v2229_v50  ;;  %1033 = vmatprep.subr.bf16.mxu0 %v1959_v63  ;;  %1106 = vmatprep.subr.bf16.mxu1 %v1961_v3  ;;  %v1995_v36 = vld [vmem:[%s2702_s2 + $0x164] ss:$16 sps:$4 sm:$0xff]   ;;  %v2000_v41 = vld [vmem:[%s2702_s2 + $0x168] ss:$16 sps:$4 sm:$0xff]   ;;  %v2005_v46 = vld [vmem:[%s2702_s2 + $0x180] ss:$16 sps:$4 sm:$0xff]  }
  0x1b   : > { %v493_v60 = vadd.f32 %v474_v53, %v473_v52  ;;  %v477_v61 = vmul.f32 %v2238_v54, %v2238_v54  ;;  %v478_v62 = vmul.f32 %v2240_v55, %v2240_v55  ;;  %v2006_v47 = vld [vmem:[%s2702_s2 + $0x188] ss:$16 sps:$4 sm:$0xff]   ;;  %v2007_v48 = vld [vmem:[%s2702_s2 + $0x1a4] ss:$16 sps:$4 sm:$0xff]   ;;  %v2009_v51 = vld [vmem:[%s2702_s2 + $0x1ac] ss:$16 sps:$4 sm:$0xff]  }
  0x1c   : > { %485 = vadd.xlane.f32.xlu0 %v484_v37  ;;  %v502_v8 = vadd.f32 %v480_v2, %v479_v1  ;;  %1034 = vmatpush1.bf16.msra.mxu0 %v1963_v4  ;;  %v1997_v37 = vld [vmem:[%s2702_s2 + $0x16c] ss:$16 sps:$4 sm:$0xff]   ;;  %v2011_v52 = vld [vmem:[%s2702_s2 + $0x1a0] ss:$16 sps:$4 sm:$0xff]   ;;  %v2012_v53 = vld [vmem:[%s2702_s2 + $0x1a8] ss:$16 sps:$4 sm:$0xff]   ;;  %v567_v2 = vlaneseq }
  0x1d   : > { %491 = vadd.xlane.f32.xlu1 %v490_v42  ;;  %v499_v6 = vadd.f32 %v478_v62, %v477_v61  ;;  %1107 = vmatpush1.bf16.msra.mxu1 %v1964_v5  ;;  %v2001_v42 = vld [vmem:[%s2702_s2 + $0x184] ss:$16 sps:$4 sm:$0xff]   ;;  %v2015_v57 = vld [vmem:[%s2702_s2 + $0x1cc] ss:$16 sps:$4 sm:$0xff]   ;;  %v2017_v58 = vld [vmem:[%s2702_s2 + $0x1c0] ss:$16 sps:$4 sm:$0xff]  }
  0x1e   : > { %1035 = vmatprep.subr.bf16.mxu0 %v1965_v7  ;;  %1108 = vmatprep.subr.bf16.mxu1 %v1967_v9  ;;  %v2013_v56 = vld [vmem:[%s2702_s2 + $0x1c4] ss:$16 sps:$4 sm:$0xff]   ;;  %v2018_v59 = vld [vmem:[%s2702_s2 + $0x1c8] ss:$16 sps:$4 sm:$0xff]   ;;  %v2021_v61 = vld [vmem:[%s2702_s2 + $0x1ec] ss:$16 sps:$4 sm:$0xff]  }
  0x1f   : > { %v2023_v62 = vld [vmem:[%s2702_s2 + $0x1e0] ss:$16 sps:$4 sm:$0xff]   ;;  %v2024_v63 = vld [vmem:[%s2702_s2 + $0x1e8] ss:$16 sps:$4 sm:$0xff]   ;;  %v2394_v9 = vshrl.u32 %v567_v2, 7 }
  0x20   : > { %494 = vadd.xlane.f32.xlu0 %v493_v60  ;;  %1036 = vmatpush1.bf16.msra.mxu0 %v1969_v10  ;;  %v2019_v60 = vld [vmem:[%s2702_s2 + $0x1e4] ss:$16 sps:$4 sm:$0xff]  }
  0x21   : > { %497 = vadd.xlane.f32.xlu1 %v496_v0  ;;  %1109 = vmatpush1.bf16.msra.mxu1 %v1970_v15  ;;  %v2065_v0 = vmov 1966171168  }
  0x22   : > { %1037 = vmatprep.subr.bf16.mxu0 %v1971_v16  ;;  %1110 = vmatprep.subr.bf16.mxu1 %v1973_v21  ;;  %v565_v1 = vunpack.c.l.s4 %v2065_v0  ;;  %v1722_v16 = vld.sshfl [vmem:[%s2701_s1] sm:$0x11 pattern:$0x75316420] }
  0x24   : > { %500 = vadd.xlane.f32.xlu0 %v499_v6  ;;  %1038 = vmatpush1.bf16.msra.mxu0 %v1975_v22 }
  0x25   : > { %503 = vadd.xlane.f32.xlu1 %v502_v8  ;;  %1111 = vmatpush1.bf16.msra.mxu1 %v1976_v23  ;;  %v566_v8 = vunpack.c.0.s8 %v565_v1 }
  0x26   : > { %1039 = vmatprep.subr.bf16.mxu0 %v1977_v24  ;;  %1112 = vmatprep.subr.bf16.mxu1 %v1979_v25  ;;  %v563_v25 = vcombine.high %v1722_v16, %v1722_v16 }
  0x28   : > { %1040 = vmatpush1.bf16.msra.mxu0 %v1981_v26  ;;  %v569_v26 = vsub.s32 %v566_v8, %v2394_v9 }
  0x29   : > { %1113 = vmatpush1.bf16.msra.mxu1 %v1982_v27  ;;  %1041 = vmatprep.subr.bf16.mxu0 %v1983_v28 }
  0x2a   : > { %1114 = vmatprep.subr.bf16.mxu1 %v1985_v29 }
  0x2c   : > { %1042 = vmatpush1.bf16.msra.mxu0 %v1987_v30 }
  0x2d   : > { %1115 = vmatpush1.bf16.msra.mxu1 %v1988_v31  ;;  %1043 = vmatprep.subr.bf16.mxu0 %v1989_v32 }
  0x2e   : > { %1116 = vmatprep.subr.bf16.mxu1 %v1991_v33  ;;  %v577_v33 = vrot.slane %v563_v25, %v569_v26 }
  0x30   : > { %1044 = vmatpush1.bf16.msra.mxu0 %v1993_v34  ;;  %v570_v34 = vrot.slane %v1722_v16, %v569_v26 }
  0x31   : > { %1117 = vmatpush1.bf16.msra.mxu1 %v1994_v35  ;;  %1045 = vmatprep.subr.bf16.mxu0 %v1995_v36 }
  0x32   : > { %1118 = vmatprep.subr.bf16.mxu1 %v1997_v37 }
  0x34   : > { %1046 = vmatpush1.bf16.msra.mxu0 %v1999_v40 }
  0x35   : > { %1119 = vmatpush1.bf16.msra.mxu1 %v2000_v41  ;;  %1047 = vmatprep.subr.bf16.mxu0 %v2001_v42  ;;  %v2401_v42 = vsub.s32 0, %v2394_v9 }
  0x36   : > { %1120 = vmatprep.subr.bf16.mxu1 %v2003_v45  ;;  %v586_v45 = vpack.i.b16 %v577_v33, %v577_v33 }
  0x38   : > { %1048 = vmatpush1.bf16.msra.mxu0 %v2005_v46  ;;  %v579_v46 = vpack.i.b16 %v570_v34, %v570_v34 }
  0x39   : > { %1121 = vmatpush1.bf16.msra.mxu1 %v2006_v47  ;;  %1049 = vmatprep.subr.bf16.mxu0 %v2007_v48 }
  0x3a   : > { %1122 = vmatprep.subr.bf16.mxu1 %v2009_v51 }
  0x3c   : > { %1050 = vmatpush1.bf16.msra.mxu0 %v2011_v52 }
  0x3d   : > { %1123 = vmatpush1.bf16.msra.mxu1 %v2012_v53  ;;  %1051 = vmatprep.subr.bf16.mxu0 %v2013_v56  ;;  %v591_v56 = vrot.slane %v586_v45, %v2401_v42 }
  0x3e   : > { %1124 = vmatprep.subr.bf16.mxu1 %v2015_v57  ;;  %v584_v57 = vrot.slane %v579_v46, %v2401_v42 }
  0x40   : > { %1052 = vmatpush1.bf16.msra.mxu0 %v2017_v58 }
  0x41   : > { %1125 = vmatpush1.bf16.msra.mxu1 %v2018_v59  ;;  %1053 = vmatprep.subr.bf16.mxu0 %v2019_v60 }
  0x42   : > { %1126 = vmatprep.subr.bf16.mxu1 %v2021_v61 }
  0x44   : > { %1054 = vmatpush1.bf16.msra.mxu0 %v2023_v62 }
  0x45   : > { %1127 = vmatpush1.bf16.msra.mxu1 %v2024_v63 }
  0xa5   : > { %v483_v3 = vpop.xlane.xlu0 %482 }
  0xa6   : > { %v506_v4 = vmul.f32 0.00390625, %v483_v3  ;;  %v489_v5 = vpop.xlane.xlu1 %488 }
  0xa7   : > { %v508_v6 = vmul.f32 0.00390625, %v489_v5 }
  0xa8   : > { %v514_v7 = vadd.f32 1e-06, %v506_v4 }
  0xa9   : > { %v486_v10 = vpop.xlane.xlu0 %485  ;;  %v516_v15 = vadd.f32 1e-06, %v508_v6 }
  0xaa   : > { %v507_v21 = vmul.f32 0.00390625, %v486_v10  ;;  %v492_v22 = vpop.xlane.xlu1 %491 }
  0xab   : > { %2025 = vrsqrt.f32 %v516_v15  ;;  %v509_v23 = vmul.f32 0.00390625, %v492_v22 }
  0xac   : > { %2027 = vrsqrt.f32 %v514_v7  ;;  %v515_v24 = vadd.f32 1e-06, %v507_v21 }
  0xad   : > { %v517_v27 = vadd.f32 1e-06, %v509_v23  ;;  %v495_v28 = vpop.xlane.xlu0 %494 }
  0xae   : > { %2029 = vrsqrt.f32 %v515_v24  ;;  %v498_v29 = vpop.xlane.xlu1 %497  ;;  %v510_v30 = vmul.f32 0.00390625, %v495_v28  ;;  %v681_v28 = vsub.s32 6, %v2394_v9 }
  0xaf   : > { %2031 = vrsqrt.f32 %v517_v27  ;;  %v511_v31 = vmul.f32 0.00390625, %v498_v29 }
  0xb0   : > { %v518_v32 = vadd.f32 1e-06, %v510_v30 }
  0xb1   : > { %v519_v35 = vadd.f32 1e-06, %v511_v31  ;;  %v501_v36 = vpop.xlane.xlu0 %500 }
  0xb2   : > { %2033 = vrsqrt.f32 %v518_v32  ;;  %v504_v37 = vpop.xlane.xlu1 %503  ;;  %v512_v40 = vmul.f32 0.00390625, %v501_v36  ;;  %v673_v32 = vsub.s32 2, %v2394_v9 }
  0xb3   : > { %2035 = vrsqrt.f32 %v519_v35  ;;  %v513_v41 = vmul.f32 0.00390625, %v504_v37 }
  0xb4   : > { %v520_v47 = vadd.f32 1e-06, %v512_v40 }
  0xb5   : > { %v2026_v48 = vpop.eup %2025  ;;  %v521_v51 = vadd.f32 1e-06, %v513_v41 }
  0xb6   : > { %v2028_v52 = vpop.eup %2027  ;;  %2037 = vrsqrt.f32 %v520_v47  ;;  %v535_v58 = vmul.f32 %v2026_v48, %v2172_v18  ;;  %v534_v5 = vmul.f32 %v2026_v48, %v2170_v17 }
  0xb7   : > { %2039 = vrsqrt.f32 %v521_v51  ;;  %v531_v60 = vmul.f32 %v2028_v52, %v2164_v12  ;;  %v530_v62 = vmul.f32 %v2028_v52, %v2162_v11 }
  0xb8   : > { %v2030_v53 = vpop.eup %2029 }
  0xb9   : > { %v2032_v59 = vpop.eup %2031  ;;  %v533_v61 = vmul.f32 %v2030_v53, %v2168_v14  ;;  %v532_v63 = vmul.f32 %v2030_v53, %v2166_v13 }
  0xba   : > { %v537_v0 = vmul.f32 %v2032_v59, %v2176_v20  ;;  %v536_v18 = vmul.f32 %v2032_v59, %v2174_v19 }
  0xbb   : > { %v547_v1 = vpack.c.bf16 %v533_v61, %v531_v60  ;;  %v546_v2 = vpack.c.bf16 %v532_v63, %v530_v62 }
  0xbc   : > { %v2034_v3 = vpop.eup %2033  ;;  %v549_v4 = vpack.c.bf16 %v537_v0, %v535_v58  ;;  %v548_v13 = vpack.c.bf16 %v536_v18, %v534_v5 }
  0xbd   : > { %v2036_v6 = vpop.eup %2035  ;;  %v593_v7 = vmul.bf16 %v591_v56, %v547_v1  ;;  %v592_v8 = vmul.bf16 %v584_v57, %v546_v2  ;;  %v539_v12 = vmul.f32 %v2034_v3, %v2215_v44  ;;  %v538_v19 = vmul.f32 %v2034_v3, %v2213_v43 }
  0xbe   : > { %v595_v14 = vmul.bf16 %v591_v56, %v549_v4  ;;  %v541_v11 = vmul.f32 %v2036_v6, %v2208_v39  ;;  %v594_v15 = vmul.bf16 %v584_v57, %v548_v13  ;;  %v540_v16 = vmul.f32 %v2036_v6, %v2206_v38 }
  0xbf   : > { %1055 = vmatprep.mubr.bf16.mxu0 %v593_v7  ;;  %1128 = vmatprep.mubr.bf16.mxu1 %v593_v7 }
  0xc0   : > { %1056 = vmatmul.mubr.bf16.vlgmr.msra.gmra.mrb[0].mxu0 %v592_v8  ;;  %1129 = vmatmul.mubr.bf16.vlgmr.msra.gmra.mrb[0].mxu1 %v592_v8  ;;  %v2038_v20 = vpop.eup %2037  ;;  %v551_v10 = vpack.c.bf16 %v541_v11, %v539_v12  ;;  %v550_v22 = vpack.c.bf16 %v540_v16, %v538_v19 }
  0xc1   : > { %1065 = vmatprep.mubr.bf16.mxu0 %v595_v14  ;;  %1138 = vmatprep.mubr.bf16.mxu1 %v595_v14  ;;  %v2040_v17 = vpop.eup %2039  ;;  %v543_v44 = vmul.f32 %v2038_v20, %v2240_v55  ;;  %v542_v25 = vmul.f32 %v2038_v20, %v2238_v54 }
  0xc2   : > { %v597_v21 = vmul.bf16 %v591_v56, %v551_v10  ;;  %v545_v39 = vmul.f32 %v2040_v17, %v2229_v50  ;;  %v596_v24 = vmul.bf16 %v584_v57, %v550_v22  ;;  %v544_v26 = vmul.f32 %v2040_v17, %v2227_v49  ;;  %v664_v50 = vld [vmem:[%s2703_s3] sm:$0xf] }
  0xc3   : > { %v665_v55 = vunpack.c.l.bf16 %v664_v50  ;;  %v677_v49 = vsub.s32 4, %v2394_v9 }
  0xc4   : > { %v553_v23 = vpack.c.bf16 %v545_v39, %v543_v44  ;;  %v552_v38 = vpack.c.bf16 %v544_v26, %v542_v25 }
  0xc5   : > { %v670_v54 = vrot.slane %v665_v55, %v2401_v42  ;;  %v682_v29 = vrot.slane %v665_v55, %v681_v28  ;;  %v678_v31 = vrot.slane %v665_v55, %v677_v49  ;;  %v674_v40 = vrot.slane %v665_v55, %v673_v32 }
  0xc6   : > { %v599_v27 = vmul.bf16 %v591_v56, %v553_v23  ;;  %v598_v43 = vmul.bf16 %v584_v57, %v552_v38 }
  0xc7   : > { %v2428_v30 = vrot.slane %v670_v54, %v2401_v42  ;;  %v2432_v35 = vrot.slane %v682_v29, %v2401_v42  ;;  %v2438_v37 = vrot.slane %v678_v31, %v2401_v42  ;;  %v2452_v57 = vrot.slane %v674_v40, %v2401_v42 }
  0xc8   : > { %1066 = vmatmul.mubr.bf16.gmra.mrb[4].mxu0 %v594_v15  ;;  %1139 = vmatmul.mubr.bf16.gmra.mrb[4].mxu1 %v594_v15 }
  0xc9   : > { %1075 = vmatprep.mubr.bf16.mxu0 %v597_v21  ;;  %1148 = vmatprep.mubr.bf16.mxu1 %v597_v21 }
  0xd0   : > { %1076 = vmatmul.mubr.bf16.gmra.mrb[8].mxu0 %v596_v24  ;;  %1149 = vmatmul.mubr.bf16.gmra.mrb[8].mxu1 %v596_v24 }
  0xd1   : > { %1085 = vmatprep.mubr.bf16.mxu0 %v599_v27  ;;  %1158 = vmatprep.mubr.bf16.mxu1 %v599_v27 }
  0xd8   : > { %1086 = vmatmul.mubr.bf16.gmra.mrb[12].mxu0 %v598_v43  ;;  %1159 = vmatmul.mubr.bf16.gmra.mrb[12].mxu1 %v598_v43 }
 0x193   : > { %v1057_v33 = vpop.f32.mrb[0].mxu0  ;;  %v1130_v34 = vpop.f32.mrb[0].mxu1 }
 0x194   : > { %v2435_v36 = vadd.f32 %v1057_v33, %v2428_v30  ;;  %v1059_v41 = vpop.f32.mrb[1].mxu0  ;;  %v1132_v45 = vpop.f32.mrb[1].mxu1  ;;  %v2449_v56 = vadd.f32 %v1130_v34, %v2438_v37 }
 0x195   : > { %v1061_v46 = vpop.f32.mrb[2].mxu0  ;;  %v1134_v47 = vpop.f32.mrb[2].mxu1  ;;  %v1133_v52 = vadd.f32 %v1132_v45, %v2432_v35  ;;  %v2470_v61 = vadd.f32 %v1059_v41, %v2452_v57 }
 0x196   : > { %v2442_v9 = vadd.f32 %v1061_v46, %v2428_v30  ;;  %v1063_v48 = vpop.f32.mrb[3].mxu0  ;;  %v1136_v51 = vpop.f32.mrb[3].mxu1  ;;  %1193 = vrot.lane.b32.xlu0 %v2435_v36, %s2066_s9  ;;  %v2464_v59 = vadd.f32 %v1134_v47, %v2438_v37 }
 0x197   : > { %v1137_v53 = vadd.f32 %v1136_v51, %v2432_v35  ;;  %v2475_v2 = vadd.f32 %v1063_v48, %v2452_v57  ;;  %v1177_v51 = vld [vmem:[%s2705_s5] sm:$0xff] }
 0x198   : > { %1195 = vrot.lane.b32.xlu1 %v2442_v9, %s2066_s9 }
 0x199   : > { %v1880_v58 = vpack.c.bf16 %v1137_v53, %v1133_v52  ;;  %v1170_v52 = vld [vmem:[%s2704_s4 + $0x8] sm:$0xff] }
 0x19a   : > { %1369 = vrot.lane.b32.xlu0 %v2449_v56, %s2066_s9 }
 0x19b   : > { %1881 = vst [vmem:[%s2459_s12] sm:$0xff] %v1880_v58   ;;  %v1067_v42 = vpop.f32.mrb[4].mxu0  ;;  %v1140_v60 = vpop.f32.mrb[4].mxu1 }
 0x19c   : > { %v1069_v62 = vpop.f32.mrb[5].mxu0  ;;  %v1142_v63 = vpop.f32.mrb[5].mxu1  ;;  %1371 = vrot.lane.b32.xlu1 %v2464_v59, %s2066_s9  ;;  %v2482_v6 = vadd.f32 %v1140_v60, %v2438_v37  ;;  %v2487_v8 = vadd.f32 %v1067_v42, %v2428_v30  ;;  %v1186_v60 = vmul.f32 %v1170_v52, %v2442_v9  ;;  %v1362_v9 = vmul.f32 %v1170_v52, %v2464_v59 }
 0x19d   : > { %v1071_v0 = vpop.f32.mrb[6].mxu0  ;;  %v1144_v1 = vpop.f32.mrb[6].mxu1  ;;  %v1143_v5 = vadd.f32 %v1142_v63, %v2432_v35  ;;  %v2493_v11 = vadd.f32 %v1069_v62, %v2452_v57  ;;  %v1274_v59 = vmul.f32 %v1170_v52, %v2475_v2 }
 0x19e   : > { %v1073_v3 = vpop.f32.mrb[7].mxu0  ;;  %v1146_v4 = vpop.f32.mrb[7].mxu1  ;;  %1281 = vrot.lane.b32.xlu0 %v2470_v61, %s2066_s9  ;;  %v2499_v19 = vadd.f32 %v1071_v0, %v2428_v30  ;;  %v2510_v23 = vadd.f32 %v1144_v1, %v2438_v37 }
 0x19f   : > { %v1147_v18 = vadd.f32 %v1146_v4, %v2432_v35  ;;  %v2522_v28 = vadd.f32 %v1073_v3, %v2452_v57 }
 0x1a0   : > { %1283 = vrot.lane.b32.xlu1 %v2475_v2, %s2066_s9 }
 0x1a1   : > { %v1885_v7 = vpack.c.bf16 %v1147_v18, %v1143_v5 }
 0x1a2   : > { %1373 = vrot.lane.b32.xlu0 %v2482_v6, %s2066_s9 }
 0x1a3   : > { %1900 = vst [vmem:[%s2459_s12 + $0x8] sm:$0xff] %v1885_v7   ;;  %v1077_v12 = vpop.f32.mrb[8].mxu0  ;;  %v1150_v14 = vpop.f32.mrb[8].mxu1 }
 0x1a4   : > { %1197 = vrot.lane.b32.xlu1 %v2487_v8, %s2066_s9  ;;  %v1079_v13 = vpop.f32.mrb[9].mxu0  ;;  %v1152_v20 = vpop.f32.mrb[9].mxu1  ;;  %v2504_v16 = vadd.f32 %v1077_v12, %v2428_v30  ;;  %v2515_v24 = vadd.f32 %v1150_v14, %v2438_v37 }
 0x1a5   : > { %v1153_v10 = vadd.f32 %v1152_v20, %v2432_v35  ;;  %v1081_v17 = vpop.f32.mrb[10].mxu0  ;;  %v1154_v15 = vpop.f32.mrb[10].mxu1  ;;  %v2525_v54 = vadd.f32 %v1079_v13, %v2452_v57 }
 0x1a6   : > { %1285 = vrot.lane.b32.xlu0 %v2493_v11, %s2066_s9  ;;  %v1083_v21 = vpop.f32.mrb[11].mxu0  ;;  %v1156_v44 = vpop.f32.mrb[11].mxu1  ;;  %v2533_v33 = vadd.f32 %v1081_v17, %v2428_v30  ;;  %v2544_v40 = vadd.f32 %v1154_v15, %v2438_v37 }
 0x1a7   : > { %v1157_v39 = vadd.f32 %v1156_v44, %v2432_v35  ;;  %v2554_v41 = vadd.f32 %v1083_v21, %v2452_v57 }
 0x1a8   : > { %1199 = vrot.lane.b32.xlu1 %v2499_v19, %s2066_s9 }
 0x1a9   : > { %v1890_v22 = vpack.c.bf16 %v1157_v39, %v1153_v10  ;;  %v1171_v39 = vld [vmem:[%s2704_s4 + $0x10] sm:$0xff] }
 0x1aa   : > { %1201 = vrot.lane.b32.xlu0 %v2504_v16, %s2066_s9  ;;  %v1187_v2 = vmul.f32 %v1171_v39, %v2487_v8 }
 0x1ab   : > { %1901 = vst [vmem:[%s2459_s12 + $0x10] sm:$0xff] %v1890_v22   ;;  %v1087_v25 = vpop.f32.mrb[12].mxu0  ;;  %v1160_v26 = vpop.f32.mrb[12].mxu1 }
 0x1ac   : > { %1375 = vrot.lane.b32.xlu1 %v2510_v23, %s2066_s9  ;;  %v1089_v27 = vpop.f32.mrb[13].mxu0  ;;  %v1162_v38 = vpop.f32.mrb[13].mxu1  ;;  %v2538_v34 = vadd.f32 %v1087_v25, %v2428_v30  ;;  %v2557_v45 = vadd.f32 %v1160_v26, %v2438_v37 }
 0x1ad   : > { %v1163_v43 = vadd.f32 %v1162_v38, %v2432_v35  ;;  %v1091_v50 = vpop.f32.mrb[14].mxu0  ;;  %v1164_v55 = vpop.f32.mrb[14].mxu1 }
 0x1ae   : > { %1377 = vrot.lane.b32.xlu0 %v2515_v24, %s2066_s9  ;;  %v1093_v49 = vpop.f32.mrb[15].mxu0  ;;  %v1166_v29 = vpop.f32.mrb[15].mxu1  ;;  %v2564_v46 = vadd.f32 %v1091_v50, %v2428_v30  ;;  %v2576_v48 = vadd.f32 %v1164_v55, %v2438_v37  ;;  %v1169_v30 = vld [vmem:[%s2704_s4] sm:$0xff]  ;;  %v1178_v37 = vld [vmem:[%s2705_s5 + $0x8] sm:$0xff] }
 0x1af   : > { %v1167_v31 = vadd.f32 %v1166_v29, %v2432_v35  ;;  %v2549_v35 = vadd.f32 %v1089_v27, %v2452_v57  ;;  %v2571_v47 = vadd.f32 %v1093_v49, %v2452_v57  ;;  %v1185_v57 = vmul.f32 %v1169_v30, %v2435_v36  ;;  %v1179_v27 = vld [vmem:[%s2705_s5 + $0x10] sm:$0xff]  ;;  %v1172_v49 = vld [vmem:[%s2704_s4 + $0x18] sm:$0xff] }
 0x1b0   : > { %1287 = vrot.lane.b32.xlu1 %v2522_v28, %s2066_s9  ;;  %v1361_v36 = vmul.f32 %v1169_v30, %v2449_v56  ;;  %v1273_v14 = vmul.f32 %v1169_v30, %v2470_v61  ;;  %v1173_v30 = vld [vmem:[%s2704_s4 + $0x20] sm:$0xff] }
 0x1b1   : > { %v1895_v32 = vpack.c.bf16 %v1167_v31, %v1163_v43  ;;  %v1180_v31 = vld [vmem:[%s2705_s5 + $0x18] sm:$0xff] }
 0x1b2   : > { %1289 = vrot.lane.b32.xlu0 %v2525_v54, %s2066_s9 }
 0x1b3   : > { %1902 = vst [vmem:[%s2459_s12 + $0x18] sm:$0xff] %v1895_v32   ;;  %v1275_v32 = vmul.f32 %v1171_v39, %v2493_v11 }
 0x1b4   : > { %1203 = vrot.lane.b32.xlu1 %v2533_v33, %s2066_s9 }
 0x1b6   : > { %1205 = vrot.lane.b32.xlu0 %v2538_v34, %s2066_s9 }
 0x1b8   : > { %1379 = vrot.lane.b32.xlu1 %v2544_v40, %s2066_s9 }
 0x1ba   : > { %1293 = vrot.lane.b32.xlu0 %v2549_v35, %s2066_s9 }
 0x1bc   : > { %1291 = vrot.lane.b32.xlu1 %v2554_v41, %s2066_s9 }
 0x1be   : > { %1381 = vrot.lane.b32.xlu0 %v2557_v45, %s2066_s9 }
 0x1c0   : > { %1207 = vrot.lane.b32.xlu1 %v2564_v46, %s2066_s9 }
 0x1c4   : > { %1295 = vrot.lane.b32.xlu1 %v2571_v47, %s2066_s9 }
 0x1c8   : > { %1383 = vrot.lane.b32.xlu1 %v2576_v48, %s2066_s9  ;;  %s2610_s9 = scalar_lea.vmem %s2707_s7, %s1823_s26 }
 0x208   : > { %v1194_v53 = vpop.permute.xlu0 %1193 }
 0x209   : > { %v1209_v58 = vmul.f32 %v1194_v53, %v1177_v51 }
 0x20a   : > { %v1196_v42 = vpop.permute.xlu1 %1195 }
 0x20b   : > { %v1217_v62 = vadd.f32 %v1209_v58, %v1185_v57  ;;  %v1210_v63 = vmul.f32 %v1196_v42, %v1178_v37  ;;  %v1188_v57 = vmul.f32 %v1172_v49, %v2499_v19 }
 0x20c   : > { %v1370_v0 = vpop.permute.xlu0 %1369 }
 0x20d   : > { %v1225_v1 = vmul.f32 0.088388346, %v1217_v62  ;;  %v1218_v3 = vadd.f32 %v1210_v63, %v1186_v60  ;;  %v1385_v4 = vmul.f32 %v1370_v0, %v1177_v51  ;;  %v1189_v60 = vmul.f32 %v1173_v30, %v2504_v16 }
 0x20e   : > { %v1372_v5 = vpop.permute.xlu1 %1371 }
 0x20f   : > { %v1825_v18 = vpack.c.bf16 %v1225_v1, %v1225_v1  ;;  %v1226_v7 = vmul.f32 0.088388346, %v1218_v3  ;;  %v1386_v12 = vmul.f32 %v1372_v5, %v1178_v37  ;;  %v1393_v10 = vadd.f32 %v1385_v4, %v1361_v36 }
 0x210   : > { %v1282_v13 = vpop.permute.xlu0 %1281  ;;  %v1363_v36 = vmul.f32 %v1171_v39, %v2482_v6  ;;  %v1364_v5 = vmul.f32 %v1172_v49, %v2510_v23  ;;  %v1276_v6 = vmul.f32 %v1172_v49, %v2522_v28  ;;  %v2655_v39 = vld [vmem:[%s2704_s4 + $0x30] sm:$0xff] }
 0x211   : > { %1265 = vst [vmem:[%s2599_s24] sm:$0xf] %v1825_v18  ;;  %v1826_v20 = vpack.c.bf16 %v1226_v7, %v1226_v7  ;;  %v1394_v17 = vadd.f32 %v1386_v12, %v1362_v9  ;;  %v1297_v15 = vmul.f32 %v1282_v13, %v1177_v51 }
 0x212   : > { %v1284_v56 = vpop.permute.xlu1 %1283 }
 0x213   : > { %1266 = vst [vmem:[%s2599_s24 + $0x8] sm:$0xf] %v1826_v20  ;;  %v1860_v21 = vpack.c.bf16 %v1394_v17, %v1393_v10  ;;  %v1305_v44 = vadd.f32 %v1297_v15, %v1273_v14  ;;  %v1298_v61 = vmul.f32 %v1284_v56, %v1178_v37  ;;  %v1181_v37 = vld [vmem:[%s2705_s5 + $0x20] sm:$0xff] }
 0x214   : > { %v1374_v22 = vpop.permute.xlu0 %1373 }
 0x215   : > { %1861 = vst [vmem:[%s2610_s9] sm:$0xff] %v1860_v21   ;;  %v1313_v25 = vmul.f32 0.088388346, %v1305_v44  ;;  %v1306_v26 = vadd.f32 %v1298_v61, %v1274_v59  ;;  %v1387_v62 = vmul.f32 %v1374_v22, %v1179_v27  ;;  %v1174_v59 = vld [vmem:[%s2704_s4 + $0x28] sm:$0xff]  ;;  %v1277_v61 = vmul.f32 %v1173_v30, %v2525_v54 }
 0x216   : > { %v1198_v38 = vpop.permute.xlu1 %1197  ;;  %v1182_v44 = vld [vmem:[%s2705_s5 + $0x28] sm:$0xff] }
 0x217   : > { %v1833_v43 = vpack.c.bf16 %v1313_v25, %v1313_v25  ;;  %v1314_v50 = vmul.f32 0.088388346, %v1306_v26  ;;  %v1211_v55 = vmul.f32 %v1198_v38, %v1179_v27  ;;  %v1395_v16 = vadd.f32 %v1387_v62, %v1363_v36  ;;  %v1183_v26 = vld [vmem:[%s2705_s5 + $0x30] sm:$0xff] }
 0x218   : > { %v1286_v29 = vpop.permute.xlu0 %1285 }
 0x219   : > { %1353 = vst [vmem:[%s2599_s24 + $0x4] sm:$0xf] %v1833_v43  ;;  %v1834_v8 = vpack.c.bf16 %v1314_v50, %v1314_v50  ;;  %v1219_v51 = vadd.f32 %v1211_v55, %v1187_v2  ;;  %v1299_v52 = vmul.f32 %v1286_v29, %v1179_v27  ;;  %v1190_v27 = vmul.f32 %v1174_v59, %v2533_v33 }
 0x21a   : > { %v1200_v53 = vpop.permute.xlu1 %1199  ;;  %v1191_v43 = vmul.f32 %v2655_v39, %v2538_v34  ;;  %v1279_v34 = vmul.f32 %v2655_v39, %v2549_v35  ;;  %v1176_v35 = vld [vmem:[%s2704_s4 + $0x38] sm:$0xff] }
 0x21b   : > { %1354 = vst [vmem:[%s2599_s24 + $0xc] sm:$0xf] %v1834_v8  ;;  %v1227_v58 = vmul.f32 0.088388346, %v1219_v51  ;;  %v1307_v42 = vadd.f32 %v1299_v52, %v1275_v32  ;;  %v1212_v11 = vmul.f32 %v1200_v53, %v1180_v31  ;;  %v1365_v8 = vmul.f32 %v1173_v30, %v2515_v24 }
 0x21c   : > { %v1202_v63 = vpop.permute.xlu0 %1201  ;;  %v1366_v51 = vmul.f32 %v1174_v59, %v2544_v40  ;;  %v1278_v40 = vmul.f32 %v1174_v59, %v2554_v41  ;;  %v1368_v59 = vmul.f32 %v1176_v35, %v2576_v48 }
 0x21d   : > { %v1827_v0 = vpack.c.bf16 %v1227_v58, %v1227_v58  ;;  %v1315_v1 = vmul.f32 0.088388346, %v1307_v42  ;;  %v1220_v3 = vadd.f32 %v1212_v11, %v1188_v57  ;;  %v1213_v4 = vmul.f32 %v1202_v63, %v1181_v37 }
 0x21e   : > { %v1376_v9 = vpop.permute.xlu1 %1375 }
 0x21f   : > { %1267 = vst [vmem:[%s2599_s24 + $0x10] sm:$0xf] %v1827_v0  ;;  %v1835_v19 = vpack.c.bf16 %v1315_v1, %v1315_v1  ;;  %v1228_v18 = vmul.f32 0.088388346, %v1220_v3  ;;  %v1221_v7 = vadd.f32 %v1213_v4, %v1189_v60  ;;  %v1388_v12 = vmul.f32 %v1376_v9, %v1180_v31  ;;  %v1184_v4 = vld [vmem:[%s2705_s5 + $0x38] sm:$0xff] }
 0x220   : > { %v1378_v14 = vpop.permute.xlu0 %1377  ;;  %v1192_v9 = vmul.f32 %v1176_v35, %v2564_v46 }
 0x221   : > { %1355 = vst [vmem:[%s2599_s24 + $0x14] sm:$0xf] %v1835_v19  ;;  %v1828_v13 = vpack.c.bf16 %v1228_v18, %v1228_v18  ;;  %v1229_v20 = vmul.f32 0.088388346, %v1221_v7  ;;  %v1396_v10 = vadd.f32 %v1388_v12, %v1364_v5  ;;  %v1389_v50 = vmul.f32 %v1378_v14, %v1181_v37 }
 0x222   : > { %v1288_v17 = vpop.permute.xlu1 %1287 }
 0x223   : > { %1268 = vst [vmem:[%s2599_s24 + $0x18] sm:$0xf] %v1828_v13  ;;  %v1829_v15 = vpack.c.bf16 %v1229_v20, %v1229_v20  ;;  %v1865_v23 = vpack.c.bf16 %v1396_v10, %v1395_v16  ;;  %v1300_v56 = vmul.f32 %v1288_v17, %v1180_v31  ;;  %v1280_v20 = vmul.f32 %v1176_v35, %v2571_v47 }
 0x224   : > { %v1290_v21 = vpop.permute.xlu0 %1289 }
 0x225   : > { %1269 = vst [vmem:[%s2599_s24 + $0x20] sm:$0xf] %v1829_v15  ;;  %1897 = vst [vmem:[%s2610_s9 + $0x8] sm:$0xff] %v1865_v23   ;;  %v1308_v28 = vadd.f32 %v1300_v56, %v1276_v6  ;;  %v1301_v22 = vmul.f32 %v1290_v21, %v1181_v37  ;;  %v1397_v37 = vadd.f32 %v1389_v50, %v1365_v8 }
 0x226   : > { %v1204_v25 = vpop.permute.xlu1 %1203  ;;  %v1367_v56 = vmul.f32 %v2655_v39, %v2557_v45 }
 0x227   : > { %v1316_v38 = vmul.f32 0.088388346, %v1308_v28  ;;  %v1309_v2 = vadd.f32 %v1301_v22, %v1277_v61  ;;  %v1214_v54 = vmul.f32 %v1204_v25, %v1182_v44 }
 0x228   : > { %v1206_v55 = vpop.permute.xlu0 %1205 }
 0x229   : > { %v1836_v49 = vpack.c.bf16 %v1316_v38, %v1316_v38  ;;  %v1317_v29 = vmul.f32 0.088388346, %v1309_v2  ;;  %v1222_v31 = vadd.f32 %v1214_v54, %v1190_v27  ;;  %v1215_v32 = vmul.f32 %v1206_v55, %v1183_v26 }
 0x22a   : > { %v1380_v52 = vpop.permute.xlu1 %1379 }
 0x22b   : > { %1356 = vst [vmem:[%s2599_s24 + $0x1c] sm:$0xf] %v1836_v49  ;;  %v1837_v33 = vpack.c.bf16 %v1317_v29, %v1317_v29  ;;  %v1230_v53 = vmul.f32 0.088388346, %v1222_v31  ;;  %v1223_v57 = vadd.f32 %v1215_v32, %v1191_v43  ;;  %v1390_v58 = vmul.f32 %v1380_v52, %v1182_v44 }
 0x22c   : > { %v1294_v42 = vpop.permute.xlu0 %1293 }
 0x22d   : > { %1357 = vst [vmem:[%s2599_s24 + $0x24] sm:$0xf] %v1837_v33  ;;  %v1830_v11 = vpack.c.bf16 %v1230_v53, %v1230_v53  ;;  %v1231_v60 = vmul.f32 0.088388346, %v1223_v57  ;;  %v1398_v24 = vadd.f32 %v1390_v58, %v1366_v51  ;;  %v1303_v30 = vmul.f32 %v1294_v42, %v1183_v26 }
 0x22e   : > { %v1292_v62 = vpop.permute.xlu1 %1291 }
 0x22f   : > { %1270 = vst [vmem:[%s2599_s24 + $0x28] sm:$0xf] %v1830_v11  ;;  %v1831_v63 = vpack.c.bf16 %v1231_v60, %v1231_v60  ;;  %v1870_v0 = vpack.c.bf16 %v1398_v24, %v1397_v37  ;;  %v1311_v1 = vadd.f32 %v1303_v30, %v1279_v34  ;;  %v1302_v3 = vmul.f32 %v1292_v62, %v1182_v44 }
 0x230   : > { %v1382_v16 = vpop.permute.xlu0 %1381 }
 0x231   : > { %1271 = vst [vmem:[%s2599_s24 + $0x30] sm:$0xf] %v1831_v63  ;;  %1898 = vst [vmem:[%s2610_s9 + $0x10] sm:$0xff] %v1870_v0   ;;  %v1319_v36 = vmul.f32 0.088388346, %v1311_v1  ;;  %v1310_v41 = vadd.f32 %v1302_v3, %v1278_v40  ;;  %v1391_v6 = vmul.f32 %v1382_v16, %v1183_v26 }
 0x232   : > { %v1208_v5 = vpop.permute.xlu1 %1207 }
 0x233   : > { %v1839_v19 = vpack.c.bf16 %v1319_v36, %v1319_v36  ;;  %v1318_v18 = vmul.f32 0.088388346, %v1310_v41  ;;  %v1216_v7 = vmul.f32 %v1208_v5, %v1184_v4  ;;  %v1399_v61 = vadd.f32 %v1391_v6, %v1367_v56 }
 0x235   : > { %1359 = vst [vmem:[%s2599_s24 + $0x34] sm:$0xf] %v1839_v19  ;;  %v1838_v12 = vpack.c.bf16 %v1318_v18, %v1318_v18  ;;  %v1224_v14 = vadd.f32 %v1216_v7, %v1192_v9 }
 0x236   : > { %v1296_v13 = vpop.permute.xlu1 %1295 }
 0x237   : > { %1358 = vst [vmem:[%s2599_s24 + $0x2c] sm:$0xf] %v1838_v12  ;;  %v1232_v10 = vmul.f32 0.088388346, %v1224_v14  ;;  %v1304_v17 = vmul.f32 %v1296_v13, %v1184_v4 }
 0x239   : > { %v1832_v15 = vpack.c.bf16 %v1232_v10, %v1232_v10  ;;  %v1312_v23 = vadd.f32 %v1304_v17, %v1280_v20 }
 0x23a   : > { %v1384_v46 = vpop.permute.xlu1 %1383 }
 0x23b   : > { %1272 = vst [vmem:[%s2599_s24 + $0x38] sm:$0xf] %v1832_v15  ;;  %v1320_v21 = vmul.f32 0.088388346, %v1312_v23  ;;  %v1392_v44 = vmul.f32 %v1384_v46, %v1184_v4 }
 0x23d   : > { %v1840_v28 = vpack.c.bf16 %v1320_v21, %v1320_v21  ;;  %v1400_v47 = vadd.f32 %v1392_v44, %v1368_v59 }
 0x23f   : > { %1360 = vst [vmem:[%s2599_s24 + $0x3c] sm:$0xf] %v1840_v28  ;;  %v1875_v22 = vpack.c.bf16 %v1400_v47, %v1399_v61 }
 0x241   : > { %1899 = vst [vmem:[%s2610_s9 + $0x18] sm:$0xff] %v1875_v22  }
 0x242 PF: > { %s19_s29 = sadd.s32 1, %s2063_s29   ;;  %s2709_s27 = smov %s2059_s28 }
 0x243   : > { %p16_p5 = scmp.ge.s32.totalorder %s19_s29, 4   ;;  %s2710_s28 = smov %s2712_s30 }
 0x245   :  { %18 = sbr.rel (!%p16_p5) target bundleno = 2 (0x2), region = 104 }

// kernel: context_embd_forward.8
= control target key start
LH: loop header
LB: loop body
LE: loop exit
PB: predicated region body
PF: predicated region fallthrough
CT: control target
= control target key end

     0   :  { %s2211_s21 = smov 0   ;;  %s2213_s22 = smov 0   ;;  %s2721_s0 = inlined_call_operand.vmem [shape: bf16[2,64,256], index: 0, kind: input, shape index: {}]   ;;  %s2722_s1 = inlined_call_operand.vmem [shape: bf16[2,64,128], index: 1, kind: input, shape index: {}]   ;;  %s2723_s2 = inlined_call_operand.vmem [shape: bf16[2,64,128], index: 2, kind: input, shape index: {}]   ;;  %s2724_s3 = inlined_call_operand.vmem [shape: f32[2,1,64], index: 3, kind: input, shape index: {}]   ;;  %s2725_s4 = inlined_call_operand.vmem [shape: bf16[256,256], index: 4, kind: input, shape index: {}]   ;;  %s2726_s5 = inlined_call_operand.vmem [shape: bf16[2,64,256], index: 5, kind: input, shape index: {}]   ;;  %s2727_s6 = inlined_call_operand.vmem [shape: bf16[2,64,256], index: 6, kind: output, shape index: {}]  }
   0x1   :  { %s2215_s23 = smov 0  }
   0x2 LB: > { %s28_s24 = sadd.s32 1, %s2168_s22  ;;  %p1802_p0 = scmp.ge.s32.totalorder %s2172_s23, 1  ;;  %s2172_s23 = sphi %s2215_s23, %s16_s23   ;;  %s2168_s22 = sphi %s2213_s22, %s2731_s22   ;;  %s2164_s21 = sphi %s2211_s21, %s2730_s21  }
   0x3   : > { %p30_p1 = scmp.ge.s32.totalorder %s28_s24, 2  ;;  %p280_p2 = scmp.lt.s32.totalorder %s2172_s23, 3 }
   0x5   : > { %s2733_s24 = smov (%p30_p1, %s28_s24), 0  ;;  %p281_p3 = pnand %p1802_p0, %p280_p2 }
   0x6   : > { %p344_p4 = scmp.lt.s32.totalorder (!%p281_p3), %s2164_s21, 1  ;;  %v2174_v12 = vmov (!%p281_p3), 0   ;;  %v391_v13 = vlaneseq (!%p281_p3)  ;;  %v2175_v33 = vmov (!%p281_p3), -1e+30   ;;  %vm876_vm10 = vcmask (!%p281_p3), 523264  }
   0x7   : > { %284 = sbr.rel (%p281_p3) target bundleno = 1078 (0x436), region = 44 }
   0x8   : > { %v2249_v15 = vshrl.u32 (!%p281_p3), %v391_v13, 7  ;;  %v2258_v23 = vand.u32 (!%p281_p3), 127, %v391_v13 }
   0xa   : > { %v640_v16 = vsub.s32 (!%p281_p3), 0, %v2249_v15  ;;  %v394_v17 = vadd.s32 (!%p281_p3), 16, %v2249_v15  ;;  %v395_v19 = vadd.s32 (!%p281_p3), 24, %v2249_v15  ;;  %v393_v20 = vadd.s32 (!%p281_p3), 8, %v2249_v15 }
   0xb   : > { %v412_v24 = vand.u32 (!%p281_p3), 63, %v2249_v15  ;;  %v398_v27 = vadd.s32 (!%p281_p3), 48, %v2249_v15  ;;  %v396_v28 = vadd.s32 (!%p281_p3), 32, %v2249_v15  ;;  %v399_v29 = vadd.s32 (!%p281_p3), 56, %v2249_v15 }
   0xc   : > { %v426_v22 = vand.u32 (!%p281_p3), 63, %v394_v17  ;;  %v433_v25 = vand.u32 (!%p281_p3), 63, %v395_v19  ;;  %v419_v26 = vand.u32 (!%p281_p3), 63, %v393_v20  ;;  %v397_v30 = vadd.s32 (!%p281_p3), 40, %v2249_v15 }
   0xd   : > { %vm619_vm3 = vcmp.le.s32.totalorder (!%p281_p3), %v2258_v23, %v412_v24  ;;  %v454_v31 = vand.u32 (!%p281_p3), 63, %v398_v27  ;;  %v440_v32 = vand.u32 (!%p281_p3), 63, %v396_v28  ;;  %v461_v35 = vand.u32 (!%p281_p3), 63, %v399_v29 }
   0xe   : > { %s2735_s21 = smov (!%p344_p4, %s2164_s21), 1  ;;  %vm621_vm2 = vcmp.le.s32.totalorder %v2258_v23, %v426_v22  ;;  %vm622_vm4 = vcmp.le.s32.totalorder %v2258_v23, %v433_v25  ;;  %vm620_vm6 = vcmp.le.s32.totalorder %v2258_v23, %v419_v26  ;;  %v447_v37 = vand.u32 63, %v397_v30 }
   0xf   : > { %s1880_s25 = sshll.u32 %s2735_s21, 5  ;;  %s2233_s26 = sshll.u32 %s2735_s21, 6  ;;  %vm625_vm11 = vcmp.le.s32.totalorder %v2258_v23, %v454_v31  ;;  %v402_v40 = vadd.s32 80, %v2249_v15  ;;  %vm2287_vm12 = vcmp.le.s32.totalorder %v2258_v23, %v440_v32  ;;  %v400_v45 = vadd.s32 64, %v2249_v15 }
  0x10   : > { %s358_s29 = scalar_lea.vmem %s2722_s1, %s1880_s25  ;;  %s352_s8 = scalar_lea.vmem %s2721_s0, %s2233_s26  ;;  %vm626_vm13 = vcmp.le.s32.totalorder %v2258_v23, %v461_v35  ;;  %v403_v48 = vadd.s32 88, %v2249_v15  ;;  %vm624_vm15 = vcmp.le.s32.totalorder %v2258_v23, %v447_v37  ;;  %v401_v52 = vadd.s32 72, %v2249_v15 }
  0x11   : > { %v2022_v0 = vld [vmem:[%s358_s29] sm:$0xff]   ;;  %v2023_v1 = vld [vmem:[%s358_s29 + $0x8] sm:$0xff]   ;;  %v2024_v3 = vld [vmem:[%s358_s29 + $0x10] sm:$0xff]   ;;  %s366_s11 = scalar_lea.vmem %s2724_s3, %s2735_s21  ;;  %v482_v55 = vand.u32 63, %v402_v40  ;;  %v468_v56 = vand.u32 63, %v400_v45  ;;  %s363_s14 = scalar_lea.vmem %s2723_s2, %s1880_s25 }
  0x12   : > { %1916 = vmatprep.subr.bf16.mxu0 %v2022_v0  ;;  %v2026_v2 = vld [vmem:[%s352_s8] ss:$8 sps:$4 sm:$0xff]   ;;  %v2025_v4 = vld [vmem:[%s358_s29 + $0x18] sm:$0xff]   ;;  %v2030_v8 = vld [vmem:[%s352_s8 + $0x4] ss:$8 sps:$4 sm:$0xff]   ;;  %v489_v58 = vand.u32 63, %v403_v48  ;;  %s2688_s21 = scalar_lea.vmem %s2726_s5, %s2233_s26  ;;  %s2697_s28 = scalar_lea.vmem %s2727_s6, %s2233_s26 }
  0x13   : > { %1917 = vmatpush3.bf16.xpose.msra.mxu0 %v2022_v0  ;;  %1924 = vmatprep.mubr.bf16.mxu0 %v2026_v2  ;;  %v2027_v5 = vld [vmem:[%s352_s8 + $0x10] ss:$8 sps:$4 sm:$0xff]   ;;  %v2028_v6 = vld [vmem:[%s352_s8 + $0x20] ss:$8 sps:$4 sm:$0xff]   ;;  %v2031_v9 = vld [vmem:[%s352_s8 + $0x14] ss:$8 sps:$4 sm:$0xff]  }
  0x14   : > { %1918 = vmatprep.subr.bf16.mxu0 %v2023_v1  ;;  %v2029_v7 = vld [vmem:[%s352_s8 + $0x30] ss:$8 sps:$4 sm:$0xff]   ;;  %v2032_v10 = vld [vmem:[%s352_s8 + $0x24] ss:$8 sps:$4 sm:$0xff]   ;;  %v2033_v11 = vld [vmem:[%s352_s8 + $0x34] ss:$8 sps:$4 sm:$0xff]  }
  0x15   : > { %v635_v14 = vld [vmem:[%s366_s11] sm:$0x1]  ;;  %v475_v61 = vand.u32 63, %v401_v52 }
  0x16   : > { %vm636_vm0 = vcmp.gt.f32.partialorder %v635_v14, 0.5 }
  0x17   : > { %v637_v18 = vsel %vm636_vm0, 1, %v2174_v12 }
  0x18   : > { %v2256_v21 = vrot.slane %v637_v18, %v640_v16 }
  0x1a   : > { %vm642_vm1 = vcmp.eq.s32.totalorder %v2256_v21, 1 }
  0x1b   : > { %1919 = vmatpush3.bf16.xpose.msra.mxu0 %v2023_v1  ;;  %vm645_vm5 = vmand %vm621_vm2, %vm642_vm1  ;;  %v406_v1 = vadd.s32 112, %v2249_v15 }
  0x1c   : > { %1920 = vmatprep.subr.bf16.mxu0 %v2024_v3  ;;  %vm643_vm7 = vmand %vm619_vm3, %vm642_vm1  ;;  %v661_v34 = vsel %vm645_vm5, 0.0, %v2175_v33  ;;  %vm627_vm5 = vcmp.le.s32.totalorder %v2258_v23, %v468_v56 }
  0x1d   : > { %vm646_vm8 = vmand %vm622_vm4, %vm642_vm1  ;;  %v659_v36 = vsel %vm643_vm7, 0.0, %v2175_v33  ;;  %vm629_vm4 = vcmp.le.s32.totalorder %v2258_v23, %v482_v55  ;;  %v510_v16 = vand.u32 63, %v406_v1 }
  0x1e   : > { %vm644_vm9 = vmand %vm620_vm6, %vm642_vm1  ;;  %v662_v39 = vsel %vm646_vm8, 0.0, %v2175_v33  ;;  %vm630_vm6 = vcmp.le.s32.totalorder %v2258_v23, %v489_v58  ;;  %vm628_vm8 = vcmp.le.s32.totalorder %v2258_v23, %v475_v61 }
  0x1f   : > { %v660_v43 = vsel %vm644_vm9, 0.0, %v2175_v33  ;;  %vm649_vm14 = vmand %vm625_vm11, %vm642_vm1 }
  0x20   : > { %vm647_vm0 = vmand %vm2287_vm12, %vm642_vm1  ;;  %v665_v57 = vsel %vm649_vm14, 0.0, %v2175_v33 }
  0x21   : > { %vm650_vm2 = vmand %vm626_vm13, %vm642_vm1  ;;  %v663_v60 = vsel %vm647_vm0, 0.0, %v2175_v33  ;;  %vm633_vm13 = vcmp.le.s32.totalorder %v2258_v23, %v510_v16 }
  0x22   : > { %vm648_vm3 = vmand %vm624_vm15, %vm642_vm1  ;;  %v666_v0 = vsel %vm650_vm2, 0.0, %v2175_v33 }
  0x23   : > { %1921 = vmatpush3.bf16.xpose.msra.mxu0 %v2024_v3  ;;  %vm653_vm7 = vmand %vm629_vm4, %vm642_vm1 }
  0x24   : > { %1922 = vmatprep.subr.bf16.mxu0 %v2025_v4  ;;  %vm651_vm9 = vmand %vm627_vm5, %vm642_vm1  ;;  %v669_v19 = vsel %vm653_vm7, 0.0, %v2175_v33 }
  0x25   : > { %vm654_vm11 = vmand %vm630_vm6, %vm642_vm1  ;;  %v667_v20 = vsel %vm651_vm9, 0.0, %v2175_v33 }
  0x26   : > { %vm652_vm12 = vmand %vm628_vm8, %vm642_vm1  ;;  %v670_v26 = vsel %vm654_vm11, 0.0, %v2175_v33 }
  0x27   : > { %v668_v29 = vsel %vm652_vm12, 0.0, %v2175_v33  ;;  %vm657_vm0 = vmand %vm633_vm13, %vm642_vm1 }
  0x2b   : > { %1923 = vmatpush3.bf16.xpose.msra.mxu0 %v2025_v4  ;;  %v664_v4 = vsel %vm648_vm3, 0.0, %v2175_v33 }
  0x32   : > { %1925 = vmatmul.mubr.bf16.vlgmr.msra.gmra.mrb[0].mxu0 %v2027_v5  ;;  %v404_v5 = vadd.s32 96, %v2249_v15 }
  0x33   : > { %1928 = vmatprep.mubr.bf16.mxu0 %v2028_v6 }
  0x34   : > { %v496_v17 = vand.u32 63, %v404_v5 }
  0x36   : > { %vm631_vm14 = vcmp.le.s32.totalorder %v2258_v23, %v496_v17 }
  0x37   : > { %vm655_vm3 = vmand %vm631_vm14, %vm642_vm1 }
  0x3a   : > { %1929 = vmatmul.mubr.bf16.gmra.mrb[4].mxu0 %v2029_v7 }
  0x3b   : > { %1932 = vmatprep.mubr.bf16.mxu0 %v2030_v8  ;;  %v407_v8 = vadd.s32 120, %v2249_v15 }
  0x42   : > { %1933 = vmatmul.mubr.bf16.gmra.mrb[8].mxu0 %v2031_v9 }
  0x43   : > { %1936 = vmatprep.mubr.bf16.mxu0 %v2032_v10 }
  0x4a   : > { %1937 = vmatmul.mubr.bf16.gmra.mrb[12].mxu0 %v2033_v11  ;;  %v405_v11 = vadd.s32 104, %v2249_v15  ;;  %v517_v15 = vand.u32 63, %v407_v8 }
  0x4b   : > { %1511 = vmatprep.mubr.bf16.mxu0 %v2174_v12 }
  0x4c   : > { %v503_v22 = vand.u32 63, %v405_v11  ;;  %vm634_vm15 = vcmp.le.s32.totalorder %v2258_v23, %v517_v15 }
  0x4d   : > { %vm658_vm4 = vmand %vm634_vm15, %vm642_vm1 }
  0x4e   : > { %vm632_vm2 = vcmp.le.s32.totalorder %v2258_v23, %v503_v22  ;;  %v671_v23 = vsel %vm655_vm3, 0.0, %v2175_v33 }
  0x4f   : > { %vm656_vm5 = vmand %vm632_vm2, %vm642_vm1 }
 0x105   : > { %v1926_v38 = vpop.f32.mrb[0].mxu0 }
 0x106   : > { %v2283_v41 = vadd.f32 %v1926_v38, %v661_v34  ;;  %v813_v42 = vpop.f32.mrb[1].mxu0 }
 0x107   : > { %v2292_v46 = vadd.f32 %v813_v42, %v659_v36  ;;  %v1927_v47 = vpop.f32.mrb[2].mxu0 }
 0x108   : > { %v2296_v49 = vadd.f32 %v1927_v47, %v662_v39  ;;  %v816_v50 = vpop.f32.mrb[3].mxu0  ;;  %v883_v51 = vsel %vm876_vm10, %v2283_v41, -inf  ;;  %v673_v39 = vsel %vm657_vm0, 0.0, %v2175_v33  ;;  %v672_v47 = vsel %vm656_vm5, 0.0, %v2175_v33 }
 0x109   : > { %v2304_v53 = vadd.f32 %v816_v50, %v660_v43  ;;  %884 = vmax.xlane.f32.xlu1 %v883_v51  ;;  %v877_v54 = vsel %vm876_vm10, %v2292_v46, -inf  ;;  %v674_v43 = vsel %vm658_vm4, 0.0, %v2175_v33 }
 0x10a   : > { %878 = vmax.xlane.f32.xlu0 %v877_v54  ;;  %v886_v59 = vsel %vm876_vm10, %v2296_v49, -inf }
 0x10b   : > { %v880_v63 = vsel %vm876_vm10, %v2304_v53, -inf }
 0x10d   : > { %887 = vmax.xlane.f32.xlu1 %v886_v59  ;;  %v1930_v62 = vpop.f32.mrb[4].mxu0 }
 0x10e   : > { %v2325_v2 = vadd.f32 %v1930_v62, %v665_v57  ;;  %v829_v3 = vpop.f32.mrb[5].mxu0  ;;  %881 = vmax.xlane.f32.xlu0 %v880_v63 }
 0x10f   : > { %v2330_v6 = vadd.f32 %v829_v3, %v663_v60  ;;  %v1931_v7 = vpop.f32.mrb[6].mxu0 }
 0x110   : > { %v2334_v9 = vadd.f32 %v1931_v7, %v666_v0  ;;  %v832_v10 = vpop.f32.mrb[7].mxu0  ;;  %v895_v25 = vsel %vm876_vm10, %v2325_v2, -inf }
 0x111   : > { %v2340_v13 = vadd.f32 %v832_v10, %v664_v4  ;;  %v889_v14 = vsel %vm876_vm10, %v2330_v6, -inf }
 0x112   : > { %890 = vmax.xlane.f32.xlu0 %v889_v14  ;;  %v898_v32 = vsel %vm876_vm10, %v2334_v9, -inf }
 0x113   : > { %v892_v18 = vsel %vm876_vm10, %v2340_v13, -inf }
 0x114   : > { %893 = vmax.xlane.f32.xlu1 %v892_v18 }
 0x115   : > { %v1934_v24 = vpop.f32.mrb[8].mxu0 }
 0x116   : > { %v2358_v27 = vadd.f32 %v1934_v24, %v669_v19  ;;  %v845_v28 = vpop.f32.mrb[9].mxu0  ;;  %896 = vmax.xlane.f32.xlu0 %v895_v25 }
 0x117   : > { %v2362_v30 = vadd.f32 %v845_v28, %v667_v20  ;;  %v1935_v31 = vpop.f32.mrb[10].mxu0 }
 0x118   : > { %v2367_v34 = vadd.f32 %v1935_v31, %v670_v26  ;;  %v848_v35 = vpop.f32.mrb[11].mxu0  ;;  %899 = vmax.xlane.f32.xlu1 %v898_v32  ;;  %v907_v42 = vsel %vm876_vm10, %v2358_v27, -inf }
 0x119   : > { %v2372_v36 = vadd.f32 %v848_v35, %v668_v29  ;;  %v901_v37 = vsel %vm876_vm10, %v2362_v30, -inf }
 0x11a   : > { %902 = vmax.xlane.f32.xlu0 %v901_v37  ;;  %v910_v21 = vsel %vm876_vm10, %v2367_v34, -inf }
 0x11b   : > { %v904_v38 = vsel %vm876_vm10, %v2372_v36, -inf }
 0x11c   : > { %905 = vmax.xlane.f32.xlu1 %v904_v38 }
 0x11d   : > { %v1938_v40 = vpop.f32.mrb[12].mxu0 }
 0x11e   : > { %v2389_v44 = vadd.f32 %v1938_v40, %v673_v39  ;;  %v861_v45 = vpop.f32.mrb[13].mxu0  ;;  %908 = vmax.xlane.f32.xlu0 %v907_v42 }
 0x11f   : > { %v2392_v48 = vadd.f32 %v861_v45, %v671_v23  ;;  %v1939_v50 = vpop.f32.mrb[14].mxu0 }
 0x120   : > { %v2396_v51 = vadd.f32 %v1939_v50, %v674_v43  ;;  %v864_v52 = vpop.f32.mrb[15].mxu0  ;;  %911 = vmax.xlane.f32.xlu1 %v910_v21  ;;  %v919_v33 = vsel %vm876_vm10, %v2389_v44, -inf }
 0x121   : > { %v2398_v54 = vadd.f32 %v864_v52, %v672_v47  ;;  %v913_v55 = vsel %vm876_vm10, %v2392_v48, -inf }
 0x122   : > { %914 = vmax.xlane.f32.xlu0 %v913_v55  ;;  %v922_v57 = vsel %vm876_vm10, %v2396_v51, -inf }
 0x123   : > { %v916_v56 = vsel %vm876_vm10, %v2398_v54, -inf }
 0x124   : > { %917 = vmax.xlane.f32.xlu1 %v916_v56 }
 0x126   : > { %920 = vmax.xlane.f32.xlu0 %v919_v33 }
 0x128   : > { %923 = vmax.xlane.f32.xlu1 %v922_v57 }
 0x196   : > { %v885_v58 = vpop.xlane.xlu1 %884 }
 0x197   : > { %v927_v59 = vsub.f32 %v2283_v41, %v885_v58  ;;  %v879_v60 = vpop.xlane.xlu0 %878 }
 0x198   : > { %v925_v61 = vsub.f32 %v2292_v46, %v879_v60 }
 0x199   : > { %v945_v62 = vmul.f32 1.442695, %v927_v59 }
 0x19a   : > { %v941_v63 = vmul.f32 1.442695, %v925_v61  ;;  %v888_v0 = vpop.xlane.xlu1 %887 }
 0x19b   : > { %v928_v1 = vsub.f32 %v2296_v49, %v888_v0  ;;  %v882_v3 = vpop.xlane.xlu0 %881 }
 0x19c   : > { %2086 = vpow2.f32 %v941_v63  ;;  %v926_v4 = vsub.f32 %v2304_v53, %v882_v3  ;;  %v2034_v3 = vld [vmem:[%s363_s14] sm:$0xff]  }
 0x19d   : > { %2088 = vpow2.f32 %v945_v62  ;;  %v947_v5 = vmul.f32 1.442695, %v928_v1  ;;  %1940 = vmatprep.subr.bf16.mxu1 %v2034_v3 }
 0x19e   : > { %v943_v7 = vmul.f32 1.442695, %v926_v4  ;;  %1941 = vmatpush3.bf16.msra.mxu1 %v2034_v3 }
 0x19f   : > { %v891_v8 = vpop.xlane.xlu0 %890 }
 0x1a0   : > { %2090 = vpow2.f32 %v943_v7  ;;  %v929_v10 = vsub.f32 %v2330_v6, %v891_v8  ;;  %v2035_v8 = vld [vmem:[%s363_s14 + $0x8] sm:$0xff]  }
 0x1a1   : > { %v894_v41 = vpop.xlane.xlu1 %893  ;;  %2092 = vpow2.f32 %v947_v5  ;;  %1942 = vmatprep.subr.bf16.mxu1 %v2035_v8 }
 0x1a2   : > { %v949_v11 = vmul.f32 1.442695, %v929_v10  ;;  %v930_v46 = vsub.f32 %v2340_v13, %v894_v41  ;;  %1943 = vmatpush3.bf16.msra.mxu1 %v2035_v8  ;;  %v2056_v8 = vld [vmem:[%s2725_s4 + $0x90] ss:$8 sps:$4 sm:$0xff]  }
 0x1a3   : > { %v897_v14 = vpop.xlane.xlu0 %896 }
 0x1a4   : > { %2094 = vpow2.f32 %v949_v11  ;;  %v951_v16 = vmul.f32 1.442695, %v930_v46  ;;  %v931_v49 = vsub.f32 %v2325_v2, %v897_v14  ;;  %v2036_v14 = vld [vmem:[%s363_s14 + $0x10] sm:$0xff]  }
 0x1a5   : > { %v900_v17 = vpop.xlane.xlu1 %899  ;;  %1944 = vmatprep.subr.bf16.mxu1 %v2036_v14 }
 0x1a6   : > { %v2415_v18 = vpop.eup %2086  ;;  %2096 = vpow2.f32 %v951_v16  ;;  %v953_v53 = vmul.f32 1.442695, %v931_v49  ;;  %v932_v19 = vsub.f32 %v2334_v9, %v900_v17  ;;  %1945 = vmatpush3.bf16.msra.mxu1 %v2036_v14  ;;  %v2037_v17 = vld [vmem:[%s363_s14 + $0x18] sm:$0xff]  }
 0x1a7   : > { %v903_v15 = vpop.xlane.xlu0 %902  ;;  %v973_v6 = vsel %vm876_vm10, %v2415_v18, 0.0  ;;  %v2420_v20 = vpop.eup %2088  ;;  %1946 = vmatprep.subr.bf16.mxu1 %v2037_v17 }
 0x1a8   : > { %2098 = vpow2.f32 %v953_v53  ;;  %v955_v13 = vmul.f32 1.442695, %v932_v19  ;;  %v933_v22 = vsub.f32 %v2362_v30, %v903_v15  ;;  %974 = vadd.xlane.f32.xlu0 %v973_v6  ;;  %v979_v9 = vsel %vm876_vm10, %v2420_v20, 0.0  ;;  %v2496_v53 = vld [vmem:[%s2725_s4] ss:$8 sps:$4 sm:$0xff]  }
 0x1a9   : > { %v906_v24 = vpop.xlane.xlu1 %905  ;;  %v2501_v19 = vld [vmem:[%s2725_s4 + $0x4] ss:$8 sps:$4 sm:$0xff]   ;;  %v2506_v15 = vld [vmem:[%s2725_s4 + $0x14] ss:$8 sps:$4 sm:$0xff]   ;;  %v2513_v6 = vld [vmem:[%s2725_s4 + $0x10] ss:$8 sps:$4 sm:$0xff]  }
 0x1aa   : > { %v2423_v2 = vpop.eup %2090  ;;  %2100 = vpow2.f32 %v955_v13  ;;  %v957_v25 = vmul.f32 1.442695, %v933_v22  ;;  %v934_v26 = vsub.f32 %v2372_v36, %v906_v24  ;;  %1947 = vmatpush3.bf16.msra.mxu1 %v2037_v17  ;;  %1479 = vmatprep.subr.bf16.mxu0 %v2501_v19  ;;  %v2052_v13 = vld [vmem:[%s2725_s4 + $0x84] ss:$8 sps:$4 sm:$0xff]   ;;  %v2528_v24 = vld [vmem:[%s2725_s4 + $0x20] ss:$8 sps:$4 sm:$0xff]  }
 0x1ab   : > { %v909_v28 = vpop.xlane.xlu0 %908  ;;  %v976_v29 = vsel %vm876_vm10, %v2423_v2, 0.0  ;;  %v2430_v31 = vpop.eup %2092  ;;  %1480 = vmatpush1.bf16.msra.mxu0 %v2496_v53  ;;  %v2522_v22 = vld [vmem:[%s2725_s4 + $0x24] ss:$8 sps:$4 sm:$0xff]   ;;  %1326 = vmatprep.subr.bf16.mxu1 %v2052_v13 }
 0x1ac   : > { %2102 = vpow2.f32 %v957_v25  ;;  %v959_v32 = vmul.f32 1.442695, %v934_v26  ;;  %v935_v30 = vsub.f32 %v2358_v27, %v909_v28  ;;  %980 = vadd.xlane.f32.xlu0 %v979_v9  ;;  %977 = vadd.xlane.f32.xlu1 %v976_v29  ;;  %v982_v23 = vsel %vm876_vm10, %v2430_v31, 0.0  ;;  %v2534_v25 = vld [vmem:[%s2725_s4 + $0x34] ss:$8 sps:$4 sm:$0xff]  }
 0x1ad   : > { %v912_v35 = vpop.xlane.xlu1 %911  ;;  %1481 = vmatprep.subr.bf16.mxu0 %v2506_v15  ;;  %v2540_v26 = vld [vmem:[%s2725_s4 + $0x30] ss:$8 sps:$4 sm:$0xff]   ;;  %v2546_v28 = vld [vmem:[%s2725_s4 + $0x44] ss:$8 sps:$4 sm:$0xff]   ;;  %v2552_v9 = vld [vmem:[%s2725_s4 + $0x40] ss:$8 sps:$4 sm:$0xff]  }
 0x1ae   : > { %v2433_v37 = vpop.eup %2094  ;;  %2104 = vpow2.f32 %v959_v32  ;;  %v961_v36 = vmul.f32 1.442695, %v935_v30  ;;  %v936_v38 = vsub.f32 %v2367_v34, %v912_v35  ;;  %v2558_v29 = vld [vmem:[%s2725_s4 + $0x54] ss:$8 sps:$4 sm:$0xff]   ;;  %v2564_v32 = vld [vmem:[%s2725_s4 + $0x50] ss:$8 sps:$4 sm:$0xff]  }
 0x1af   : > { %v915_v39 = vpop.xlane.xlu0 %914  ;;  %v985_v40 = vsel %vm876_vm10, %v2433_v37, 0.0  ;;  %1482 = vmatpush1.bf16.msra.mxu0 %v2513_v6  ;;  %v2570_v30 = vld [vmem:[%s2725_s4 + $0x64] ss:$8 sps:$4 sm:$0xff]   ;;  %v2576_v35 = vld [vmem:[%s2725_s4 + $0x60] ss:$8 sps:$4 sm:$0xff]  }
 0x1b0   : > { %v2440_v42 = vpop.eup %2096  ;;  %2106 = vpow2.f32 %v961_v36  ;;  %v963_v27 = vmul.f32 1.442695, %v936_v38  ;;  %v937_v43 = vsub.f32 %v2392_v48, %v915_v39  ;;  %983 = vadd.xlane.f32.xlu1 %v982_v23  ;;  %986 = vadd.xlane.f32.xlu0 %v985_v40 }
 0x1b1   : > { %v918_v45 = vpop.xlane.xlu1 %917  ;;  %v988_v52 = vsel %vm876_vm10, %v2440_v42, 0.0  ;;  %1483 = vmatprep.subr.bf16.mxu0 %v2522_v22 }
 0x1b2   : > { %v2443_v47 = vpop.eup %2098  ;;  %2108 = vpow2.f32 %v963_v27  ;;  %v965_v34 = vmul.f32 1.442695, %v937_v43  ;;  %v938_v50 = vsub.f32 %v2398_v54, %v918_v45 }
 0x1b3   : > { %v921_v21 = vpop.xlane.xlu0 %920  ;;  %v991_v55 = vsel %vm876_vm10, %v2443_v47, 0.0  ;;  %1484 = vmatpush1.bf16.msra.mxu0 %v2528_v24 }
 0x1b4   : > { %v2450_v56 = vpop.eup %2100  ;;  %2110 = vpow2.f32 %v965_v34  ;;  %v967_v48 = vmul.f32 1.442695, %v938_v50  ;;  %v939_v33 = vsub.f32 %v2389_v44, %v921_v21  ;;  %989 = vadd.xlane.f32.xlu1 %v988_v52  ;;  %992 = vadd.xlane.f32.xlu0 %v991_v55 }
 0x1b5   : > { %v924_v57 = vpop.xlane.xlu1 %923  ;;  %v994_v60 = vsel %vm876_vm10, %v2450_v56, 0.0  ;;  %1485 = vmatprep.subr.bf16.mxu0 %v2534_v25 }
 0x1b6   : > { %v2453_v58 = vpop.eup %2102  ;;  %2112 = vpow2.f32 %v967_v48  ;;  %v969_v54 = vmul.f32 1.442695, %v939_v33  ;;  %v940_v59 = vsub.f32 %v2396_v51, %v924_v57 }
 0x1b7   : > { %v997_v61 = vsel %vm876_vm10, %v2453_v58, 0.0  ;;  %1486 = vmatpush1.bf16.msra.mxu0 %v2540_v26 }
 0x1b8   : > { %v2460_v62 = vpop.eup %2104  ;;  %2114 = vpow2.f32 %v969_v54  ;;  %v971_v44 = vmul.f32 1.442695, %v940_v59  ;;  %995 = vadd.xlane.f32.xlu1 %v994_v60  ;;  %998 = vadd.xlane.f32.xlu0 %v997_v61 }
 0x1b9   : > { %v1000_v0 = vsel %vm876_vm10, %v2460_v62, 0.0  ;;  %1487 = vmatprep.subr.bf16.mxu0 %v2546_v28 }
 0x1ba   : > { %v2462_v63 = vpop.eup %2106  ;;  %2116 = vpow2.f32 %v971_v44 }
 0x1bb   : > { %v1003_v51 = vsel %vm876_vm10, %v2462_v63, 0.0  ;;  %1488 = vmatpush1.bf16.msra.mxu0 %v2552_v9 }
 0x1bc   : > { %v2473_v1 = vpop.eup %2108  ;;  %1001 = vadd.xlane.f32.xlu1 %v1000_v0  ;;  %1004 = vadd.xlane.f32.xlu0 %v1003_v51  ;;  %v2058_v0 = vld [vmem:[%s2725_s4 + $0x94] ss:$8 sps:$4 sm:$0xff]  }
 0x1bd   : > { %v1006_v5 = vsel %vm876_vm10, %v2473_v1, 0.0  ;;  %1489 = vmatprep.subr.bf16.mxu0 %v2558_v29 }
 0x1be   : > { %v2475_v4 = vpop.eup %2110 }
 0x1bf   : > { %v1009_v7 = vsel %vm876_vm10, %v2475_v4, 0.0  ;;  %1490 = vmatpush1.bf16.msra.mxu0 %v2564_v32 }
 0x1c0   : > { %v2481_v10 = vpop.eup %2112  ;;  %1007 = vadd.xlane.f32.xlu1 %v1006_v5  ;;  %1010 = vadd.xlane.f32.xlu0 %v1009_v7 }
 0x1c1   : > { %v1012_v11 = vsel %vm876_vm10, %v2481_v10, 0.0  ;;  %1491 = vmatprep.subr.bf16.mxu0 %v2570_v30 }
 0x1c2   : > { %v2483_v41 = vpop.eup %2114 }
 0x1c3   : > { %v1015_v46 = vsel %vm876_vm10, %v2483_v41, 0.0  ;;  %1492 = vmatpush1.bf16.msra.mxu0 %v2576_v35 }
 0x1c4   : > { %v2489_v16 = vpop.eup %2116  ;;  %1013 = vadd.xlane.f32.xlu1 %v1012_v11  ;;  %1016 = vadd.xlane.f32.xlu0 %v1015_v46  ;;  %v2064_v46 = vld [vmem:[%s2725_s4 + $0xa4] ss:$8 sps:$4 sm:$0xff]  }
 0x1c5   : > { %v1018_v49 = vsel %vm876_vm10, %v2489_v16, 0.0 }
 0x1c8   : > { %1019 = vadd.xlane.f32.xlu1 %v1018_v49 }
 0x235   : > { %v975_v36 = vpop.xlane.xlu0 %974 }
 0x236   : > { %2118 = vrcp.f32 %v975_v36  ;;  %v2062_v36 = vld [vmem:[%s2725_s4 + $0xa0] ss:$8 sps:$4 sm:$0xff]  }
 0x239   : > { %v978_v38 = vpop.xlane.xlu1 %977  ;;  %v981_v39 = vpop.xlane.xlu0 %980 }
 0x23a   : > { %2120 = vrcp.f32 %v978_v38 }
 0x23b   : > { %2122 = vrcp.f32 %v981_v39 }
 0x23d   : > { %v984_v23 = vpop.xlane.xlu1 %983  ;;  %v987_v40 = vpop.xlane.xlu0 %986 }
 0x23e   : > { %2124 = vrcp.f32 %v984_v23 }
 0x23f   : > { %2126 = vrcp.f32 %v987_v40 }
 0x240   : > { %v2119_v45 = vpop.eup %2118 }
 0x241   : > { %v990_v27 = vpop.xlane.xlu1 %989  ;;  %v993_v43 = vpop.xlane.xlu0 %992  ;;  %v1037_v52 = vmul.f32 %v2119_v45, %v2415_v18  ;;  %v2050_v18 = vld [vmem:[%s2725_s4 + $0x80] ss:$8 sps:$4 sm:$0xff]  }
 0x242   : > { %2128 = vrcp.f32 %v990_v27 }
 0x243   : > { %2130 = vrcp.f32 %v993_v43 }
 0x244   : > { %v2121_v34 = vpop.eup %2120 }
 0x245   : > { %v996_v50 = vpop.xlane.xlu1 %995  ;;  %v999_v21 = vpop.xlane.xlu0 %998  ;;  %v1038_v55 = vmul.f32 %v2121_v34, %v2423_v2 }
 0x246   : > { %v2123_v48 = vpop.eup %2122  ;;  %2132 = vrcp.f32 %v996_v50 }
 0x247   : > { %v1053_v33 = vpack.c.bf16 %v1038_v55, %v1037_v52  ;;  %2134 = vrcp.f32 %v999_v21  ;;  %v1039_v60 = vmul.f32 %v2123_v48, %v2420_v20 }
 0x248   : > { %v2125_v57 = vpop.eup %2124 }
 0x249   : > { %v1002_v54 = vpop.xlane.xlu1 %1001  ;;  %1948 = vmatprep.mubr.msk.bf16.mxu1 %vm876_vm10, %v1053_v33  ;;  %v1005_v59 = vpop.xlane.xlu0 %1004  ;;  %v1040_v61 = vmul.f32 %v2125_v57, %v2430_v31 }
 0x24a   : > { %v2127_v44 = vpop.eup %2126  ;;  %2136 = vrcp.f32 %v1002_v54 }
 0x24b   : > { %v1054_v2 = vpack.c.bf16 %v1040_v61, %v1039_v60  ;;  %2138 = vrcp.f32 %v1005_v59  ;;  %v1041_v20 = vmul.f32 %v2127_v44, %v2433_v37  ;;  %v2076_v59 = vld [vmem:[%s2725_s4 + $0xc4] ss:$8 sps:$4 sm:$0xff]   ;;  %v2077_v60 = vld [vmem:[%s2725_s4 + $0xd0] ss:$8 sps:$4 sm:$0xff]   ;;  %v2079_v61 = vld [vmem:[%s2725_s4 + $0xd4] ss:$8 sps:$4 sm:$0xff]  }
 0x24c   : > { %v2129_v51 = vpop.eup %2128  ;;  %v2080_v44 = vld [vmem:[%s2725_s4 + $0xe0] ss:$8 sps:$4 sm:$0xff]  }
 0x24d   : > { %v1008_v3 = vpop.xlane.xlu1 %1007  ;;  %1949 = vmatmul.mubr.msk.bf16.vlgmr.msra.gmra.mrb[0].mxu1 %vm876_vm10, %v1054_v2  ;;  %v1011_v5 = vpop.xlane.xlu0 %1010  ;;  %v1042_v31 = vmul.f32 %v2129_v51, %v2440_v42  ;;  %v2083_v2 = vld [vmem:[%s2725_s4 + $0xf0] ss:$8 sps:$4 sm:$0xff]  }
 0x24e   : > { %v2131_v7 = vpop.eup %2130  ;;  %2140 = vrcp.f32 %v1008_v3  ;;  %1327 = vmatpush1.bf16.msra.mxu1 %v2050_v18  ;;  %v2082_v18 = vld [vmem:[%s2725_s4 + $0xe4] ss:$8 sps:$4 sm:$0xff]  }
 0x24f   : > { %v1055_v11 = vpack.c.bf16 %v1042_v31, %v1041_v20  ;;  %1328 = vmatprep.subr.bf16.mxu1 %v2058_v0  ;;  %2142 = vrcp.f32 %v1011_v5  ;;  %v1043_v42 = vmul.f32 %v2131_v7, %v2443_v47  ;;  %v2085_v0 = vld [vmem:[%s2725_s4 + $0xf4] ss:$8 sps:$4 sm:$0xff]  }
 0x250   : > { %v2133_v14 = vpop.eup %2132 }
 0x251   : > { %v1014_v49 = vpop.xlane.xlu1 %1013  ;;  %1952 = vmatprep.mubr.msk.bf16.mxu1 %vm876_vm10, %v1055_v11  ;;  %v1017_v37 = vpop.xlane.xlu0 %1016  ;;  %v1044_v17 = vmul.f32 %v2133_v14, %v2450_v56 }
 0x252   : > { %v2135_v13 = vpop.eup %2134  ;;  %2144 = vrcp.f32 %v1014_v49  ;;  %1329 = vmatpush1.bf16.msra.mxu1 %v2056_v8 }
 0x253   : > { %v1056_v38 = vpack.c.bf16 %v1044_v17, %v1043_v42  ;;  %1330 = vmatprep.subr.bf16.mxu1 %v2064_v46  ;;  %2146 = vrcp.f32 %v1017_v37  ;;  %v1045_v40 = vmul.f32 %v2135_v13, %v2453_v58 }
 0x254   : > { %v2137_v39 = vpop.eup %2136 }
 0x255   : > { %v1020_v23 = vpop.xlane.xlu1 %1019  ;;  %1953 = vmatmul.mubr.msk.bf16.gmra.mrb[4].mxu1 %vm876_vm10, %v1056_v38  ;;  %v1046_v47 = vmul.f32 %v2137_v39, %v2460_v62  ;;  %v2139_v27 = vpop.eup %2138 }
 0x256   : > { %2148 = vrcp.f32 %v1020_v23  ;;  %1331 = vmatpush1.bf16.msra.mxu1 %v2062_v36  ;;  %v1047_v45 = vmul.f32 %v2139_v27, %v2462_v63 }
 0x257   : > { %v1057_v56 = vpack.c.bf16 %v1046_v47, %v1045_v40 }
 0x258   : > { %v2141_v43 = vpop.eup %2140 }
 0x259   : > { %1956 = vmatprep.mubr.msk.bf16.mxu1 %vm876_vm10, %v1057_v56  ;;  %v1048_v34 = vmul.f32 %v2141_v43, %v2473_v1  ;;  %v2143_v50 = vpop.eup %2142  ;;  %v2068_v1 = vld [vmem:[%s2725_s4 + $0xb0] ss:$8 sps:$4 sm:$0xff]  }
 0x25a   : > { %v1049_v58 = vmul.f32 %v2143_v50, %v2475_v4  ;;  %v2070_v4 = vld [vmem:[%s2725_s4 + $0xb4] ss:$8 sps:$4 sm:$0xff]  }
 0x25b   : > { %v1058_v21 = vpack.c.bf16 %v1048_v34, %v1047_v45  ;;  %1332 = vmatprep.subr.bf16.mxu1 %v2070_v4 }
 0x25c   : > { %v2145_v52 = vpop.eup %2144  ;;  %1333 = vmatpush1.bf16.msra.mxu1 %v2068_v1  ;;  %v1554_v1 = vld [vmem:[%s2688_s21 + $0x10] sm:$0xff] }
 0x25d   : > { %1957 = vmatmul.mubr.msk.bf16.gmra.mrb[8].mxu1 %vm876_vm10, %v1058_v21  ;;  %v1050_v62 = vmul.f32 %v2145_v52, %v2481_v10  ;;  %v2147_v55 = vpop.eup %2146  ;;  %v2629_v10 = vld [vmem:[%s2725_s4 + $0x74] ss:$8 sps:$4 sm:$0xff]   ;;  %1334 = vmatprep.subr.bf16.mxu1 %v2076_v59  ;;  %v1564_v59 = vunpack.c.l.bf16 %v1554_v1 }
 0x25e   : > { %v1051_v57 = vmul.f32 %v2147_v55, %v2483_v41  ;;  %v2634_v41 = vld [vmem:[%s2725_s4 + $0x70] ss:$8 sps:$4 sm:$0xff]   ;;  %1493 = vmatprep.subr.bf16.mxu0 %v2629_v10 }
 0x25f   : > { %v1059_v48 = vpack.c.bf16 %v1050_v62, %v1049_v58  ;;  %1494 = vmatpush1.bf16.msra.mxu0 %v2634_v41 }
 0x260   : > { %v2149_v33 = vpop.eup %2148 }
 0x261   : > { %1960 = vmatprep.mubr.msk.bf16.mxu1 %vm876_vm10, %v1059_v48  ;;  %v1052_v63 = vmul.f32 %v2149_v33, %v2489_v16  ;;  %v2074_v16 = vld [vmem:[%s2725_s4 + $0xc0] ss:$8 sps:$4 sm:$0xff]  }
 0x262   : > { %1335 = vmatpush1.bf16.msra.mxu1 %v2074_v16  ;;  %v1555_v16 = vld [vmem:[%s2688_s21 + $0x18] sm:$0xff] }
 0x263   : > { %v1060_v54 = vpack.c.bf16 %v1052_v63, %v1051_v57  ;;  %1336 = vmatprep.subr.bf16.mxu1 %v2079_v61 }
 0x265   : > { %1961 = vmatmul.mubr.msk.bf16.gmra.mrb[12].mxu1 %vm876_vm10, %v1060_v54 }
 0x266   : > { %1358 = vmatprep.mubr.bf16.mxu1 %v2174_v12  ;;  %1337 = vmatpush1.bf16.msra.mxu1 %v2077_v60 }
 0x267   : > { %1338 = vmatprep.subr.bf16.mxu1 %v2082_v18 }
 0x26a   : > { %1339 = vmatpush1.bf16.msra.mxu1 %v2080_v44  ;;  %v1565_v44 = vunpack.c.h.bf16 %v1554_v1 }
 0x26b   : > { %1340 = vmatprep.subr.bf16.mxu1 %v2085_v0  ;;  %v1566_v0 = vunpack.c.l.bf16 %v1555_v16 }
 0x26e   : > { %1341 = vmatpush1.bf16.msra.mxu1 %v2083_v2 }
 0x26f   : > { %1964 = vmatprep.subr.bf16.mxu1 %v2501_v19 }
 0x320   : > { %v1950_v51 = vpop.f32.mrb[0].mxu1 }
 0x321   : > { %v1143_v3 = vpop.f32.mrb[1].mxu1 }
 0x322   : > { %v1951_v5 = vpop.f32.mrb[2].mxu1 }
 0x323   : > { %v1223_v20 = vpack.c.bf16 %v1951_v5, %v1950_v51  ;;  %v1146_v31 = vpop.f32.mrb[3].mxu1  ;;  %v1567_v5 = vunpack.c.h.bf16 %v1555_v16 }
 0x324   : > { %v1222_v7 = vpack.c.bf16 %v1146_v31, %v1143_v3 }
 0x326   : > { %1512 = vmatmul.mubr.bf16.vlgmr.msra.gmra.mrb[16].mxu0 %v1222_v7 }
 0x327   : > { %1521 = vmatprep.mubr.bf16.mxu0 %v2174_v12 }
 0x328   : > { %v1954_v8 = vpop.f32.mrb[4].mxu1 }
 0x329   : > { %v1159_v11 = vpop.f32.mrb[5].mxu1 }
 0x32a   : > { %v1955_v46 = vpop.f32.mrb[6].mxu1 }
 0x32b   : > { %v1225_v14 = vpack.c.bf16 %v1955_v46, %v1954_v8  ;;  %v1162_v49 = vpop.f32.mrb[7].mxu1  ;;  %v1556_v46 = vld [vmem:[%s2688_s21 + $0x20] sm:$0xff] }
 0x32c   : > { %v1224_v37 = vpack.c.bf16 %v1162_v49, %v1159_v11 }
 0x32e   : > { %1522 = vmatmul.mubr.bf16.gmra.mrb[20].mxu0 %v1223_v20 }
 0x32f   : > { %1531 = vmatprep.mubr.bf16.mxu0 %v2174_v12 }
 0x330   : > { %v1958_v42 = vpop.f32.mrb[8].mxu1 }
 0x331   : > { %v1175_v19 = vpop.f32.mrb[9].mxu1 }
 0x332   : > { %v1959_v17 = vpop.f32.mrb[10].mxu1 }
 0x333   : > { %v1243_v13 = vpack.c.bf16 %v1959_v17, %v1958_v42  ;;  %v1178_v36 = vpop.f32.mrb[11].mxu1  ;;  %v1557_v42 = vld [vmem:[%s2688_s21 + $0x28] sm:$0xff] }
 0x334   : > { %v1242_v38 = vpack.c.bf16 %v1178_v36, %v1175_v19  ;;  %v1568_v19 = vunpack.c.l.bf16 %v1556_v46  ;;  %v1569_v36 = vunpack.c.h.bf16 %v1556_v46 }
 0x336   : > { %1359 = vmatmul.mubr.bf16.vlgmr.msra.gmra.mrb[16].mxu1 %v1242_v38  ;;  %1532 = vmatmul.mubr.bf16.gmra.mrb[24].mxu0 %v1224_v37 }
 0x337   : > { %1972 = vmatpush1.bf16.msra.mxu1 %v2496_v53  ;;  %1368 = vmatprep.mubr.bf16.mxu1 %v2174_v12 }
 0x338   : > { %v1962_v39 = vpop.f32.mrb[12].mxu1  ;;  %1965 = vmatprep.subr.bf16.mxu1 %v2506_v15 }
 0x339   : > { %v1191_v23 = vpop.f32.mrb[13].mxu1 }
 0x33a   : > { %v1963_v40 = vpop.f32.mrb[14].mxu1 }
 0x33b   : > { %v1245_v47 = vpack.c.bf16 %v1963_v40, %v1962_v39  ;;  %v1194_v27 = vpop.f32.mrb[15].mxu1  ;;  %1973 = vmatpush1.bf16.msra.mxu1 %v2513_v6 }
 0x33c   : > { %v1244_v56 = vpack.c.bf16 %v1194_v27, %v1191_v23  ;;  %1966 = vmatprep.subr.bf16.mxu1 %v2522_v22  ;;  %v1570_v23 = vunpack.c.l.bf16 %v1557_v42  ;;  %v1571_v27 = vunpack.c.h.bf16 %v1557_v42 }
 0x33e   : > { %1369 = vmatmul.mubr.bf16.gmra.mrb[20].mxu1 %v1243_v13 }
 0x33f   : > { %1974 = vmatpush1.bf16.msra.mxu1 %v2528_v24  ;;  %1378 = vmatprep.mubr.bf16.mxu1 %v2174_v12 }
 0x340   : > { %1967 = vmatprep.subr.bf16.mxu1 %v2534_v25 }
 0x343   : > { %1975 = vmatpush1.bf16.msra.mxu1 %v2540_v26 }
 0x344   : > { %1968 = vmatprep.subr.bf16.mxu1 %v2546_v28  ;;  %v1552_v28 = vld [vmem:[%s2688_s21] sm:$0xff] }
 0x346   : > { %1379 = vmatmul.mubr.bf16.gmra.mrb[24].mxu1 %v1244_v56 }
 0x347   : > { %1976 = vmatpush1.bf16.msra.mxu1 %v2552_v9  ;;  %1388 = vmatprep.mubr.bf16.mxu1 %v2174_v12  ;;  %v1553_v9 = vld [vmem:[%s2688_s21 + $0x8] sm:$0xff] }
 0x348   : > { %1969 = vmatprep.subr.bf16.mxu1 %v2558_v29  ;;  %v1560_v29 = vunpack.c.l.bf16 %v1552_v28  ;;  %v1562_v50 = vunpack.c.l.bf16 %v1553_v9  ;;  %v1563_v62 = vunpack.c.h.bf16 %v1553_v9  ;;  %v1559_v9 = vld [vmem:[%s2688_s21 + $0x38] sm:$0xff] }
 0x34b   : > { %1977 = vmatpush1.bf16.msra.mxu1 %v2564_v32 }
 0x34c   : > { %1970 = vmatprep.subr.bf16.mxu1 %v2570_v30 }
 0x34e   : > { %1389 = vmatmul.mubr.bf16.gmra.mrb[28].mxu1 %v1245_v47 }
 0x34f   : > { %1978 = vmatpush1.bf16.msra.mxu1 %v2576_v35  ;;  %1541 = vmatprep.mubr.bf16.mxu1 %v2174_v12  ;;  %v1561_v35 = vunpack.c.h.bf16 %v1552_v28  ;;  %v1558_v28 = vld [vmem:[%s2688_s21 + $0x30] sm:$0xff] }
 0x350   : > { %1971 = vmatprep.subr.bf16.mxu1 %v2629_v10 }
 0x353   : > { %1979 = vmatpush1.bf16.msra.mxu1 %v2634_v41 }
 0x35a   : > { %1542 = vmatmul.mubr.bf16.vlgmr.msra.gmra.mrb[28].mxu1 %v1225_v14 }
 0x3f9   : > { %v1513_v53 = vpop.f32.mrb[16].mxu0 }
 0x3fa   : > { %v1515_v15 = vpop.f32.mrb[17].mxu0 }
 0x3fb   : > { %v1517_v6 = vpop.f32.mrb[18].mxu0 }
 0x3fc   : > { %v1519_v22 = vpop.f32.mrb[19].mxu0 }
 0x401   : > { %v1523_v24 = vpop.f32.mrb[20].mxu0 }
 0x402   : > { %v1525_v25 = vpop.f32.mrb[21].mxu0 }
 0x403   : > { %v1527_v26 = vpop.f32.mrb[22].mxu0 }
 0x404   : > { %v1529_v12 = vpop.f32.mrb[23].mxu0 }
 0x409   : > { %v1360_v32 = vpop.f32.mrb[16].mxu1  ;;  %v1533_v30 = vpop.f32.mrb[24].mxu0 }
 0x40a   : > { %v1514_v43 = vadd.f32 %v1513_v53, %v1360_v32  ;;  %v1362_v45 = vpop.f32.mrb[17].mxu1  ;;  %v1535_v34 = vpop.f32.mrb[25].mxu0  ;;  %v1573_v32 = vunpack.c.h.bf16 %v1558_v28 }
 0x40b   : > { %v1516_v21 = vadd.f32 %v1515_v15, %v1362_v45  ;;  %v1364_v52 = vpop.f32.mrb[18].mxu1  ;;  %v1537_v58 = vpop.f32.mrb[26].mxu0 }
 0x40c   : > { %v1576_v55 = vadd.f32 %v1560_v29, %v1514_v43  ;;  %v1518_v48 = vadd.f32 %v1517_v6, %v1364_v52  ;;  %v1366_v33 = vpop.f32.mrb[19].mxu1  ;;  %v1539_v57 = vpop.f32.mrb[27].mxu0  ;;  %v1572_v29 = vunpack.c.l.bf16 %v1558_v28  ;;  %v1575_v43 = vunpack.c.h.bf16 %v1559_v9 }
 0x40d   : > { %v1577_v63 = vadd.f32 %v1561_v35, %v1516_v21  ;;  %v1520_v54 = vadd.f32 %v1519_v22, %v1366_v33 }
 0x40e   : > { %v1578_v4 = vadd.f32 %v1562_v50, %v1518_v48 }
 0x40f   : > { %v1884_v10 = vpack.c.bf16 %v1577_v63, %v1576_v55  ;;  %v1579_v41 = vadd.f32 %v1563_v62, %v1520_v54 }
 0x411   : > { %1640 = vst [vmem:[%s2697_s28] sm:$0xff] %v1884_v10  ;;  %v1885_v60 = vpack.c.bf16 %v1579_v41, %v1578_v4  ;;  %v1370_v61 = vpop.f32.mrb[20].mxu1 }
 0x412   : > { %v1524_v18 = vadd.f32 %v1523_v24, %v1370_v61  ;;  %v1372_v2 = vpop.f32.mrb[21].mxu1 }
 0x413   : > { %1641 = vst [vmem:[%s2697_s28 + $0x8] sm:$0xff] %v1885_v60  ;;  %v1526_v51 = vadd.f32 %v1525_v25, %v1372_v2  ;;  %v1374_v3 = vpop.f32.mrb[22].mxu1 }
 0x414   : > { %v1580_v20 = vadd.f32 %v1564_v59, %v1524_v18  ;;  %v1528_v31 = vadd.f32 %v1527_v26, %v1374_v3  ;;  %v1376_v7 = vpop.f32.mrb[23].mxu1 }
 0x415   : > { %v1581_v8 = vadd.f32 %v1565_v44, %v1526_v51  ;;  %v1530_v11 = vadd.f32 %v1529_v12, %v1376_v7 }
 0x416   : > { %v1582_v14 = vadd.f32 %v1566_v0, %v1528_v31 }
 0x417   : > { %v1886_v49 = vpack.c.bf16 %v1581_v8, %v1580_v20  ;;  %v1583_v37 = vadd.f32 %v1567_v5, %v1530_v11 }
 0x419   : > { %1642 = vst [vmem:[%s2697_s28 + $0x10] sm:$0xff] %v1886_v49  ;;  %v1887_v17 = vpack.c.bf16 %v1583_v37, %v1582_v14  ;;  %v1380_v13 = vpop.f32.mrb[24].mxu1 }
 0x41a   : > { %v1534_v38 = vadd.f32 %v1533_v30, %v1380_v13  ;;  %v1382_v39 = vpop.f32.mrb[25].mxu1  ;;  %v1574_v30 = vunpack.c.l.bf16 %v1559_v9 }
 0x41b   : > { %1643 = vst [vmem:[%s2697_s28 + $0x18] sm:$0xff] %v1887_v17  ;;  %v1536_v40 = vadd.f32 %v1535_v34, %v1382_v39  ;;  %v1384_v47 = vpop.f32.mrb[26].mxu1 }
 0x41c   : > { %v1584_v56 = vadd.f32 %v1568_v19, %v1534_v38  ;;  %v1538_v53 = vadd.f32 %v1537_v58, %v1384_v47  ;;  %v1386_v15 = vpop.f32.mrb[27].mxu1 }
 0x41d   : > { %v1585_v6 = vadd.f32 %v1569_v36, %v1536_v40  ;;  %v1540_v22 = vadd.f32 %v1539_v57, %v1386_v15 }
 0x41e   : > { %v1586_v24 = vadd.f32 %v1570_v23, %v1538_v53 }
 0x41f   : > { %v1888_v25 = vpack.c.bf16 %v1585_v6, %v1584_v56  ;;  %v1587_v26 = vadd.f32 %v1571_v27, %v1540_v22 }
 0x421   : > { %1644 = vst [vmem:[%s2697_s28 + $0x20] sm:$0xff] %v1888_v25  ;;  %v1889_v12 = vpack.c.bf16 %v1587_v26, %v1586_v24 }
 0x423   : > { %1645 = vst [vmem:[%s2697_s28 + $0x28] sm:$0xff] %v1889_v12 }
 0x42d   : > { %v1543_v35 = vpop.f32.mrb[28].mxu1 }
 0x42e   : > { %v1588_v45 = vadd.f32 %v1572_v29, %v1543_v35  ;;  %v1545_v34 = vpop.f32.mrb[29].mxu1 }
 0x42f   : > { %v1589_v50 = vadd.f32 %v1573_v32, %v1545_v34  ;;  %v1547_v21 = vpop.f32.mrb[30].mxu1 }
 0x430   : > { %v1590_v52 = vadd.f32 %v1574_v30, %v1547_v21  ;;  %v1549_v58 = vpop.f32.mrb[31].mxu1 }
 0x431   : > { %v1890_v62 = vpack.c.bf16 %v1589_v50, %v1588_v45  ;;  %v1591_v55 = vadd.f32 %v1575_v43, %v1549_v58 }
 0x433   : > { %1646 = vst [vmem:[%s2697_s28 + $0x30] sm:$0xff] %v1890_v62  ;;  %v1891_v48 = vpack.c.bf16 %v1591_v55, %v1590_v52 }
 0x435   : > { %1647 = vst [vmem:[%s2697_s28 + $0x38] sm:$0xff] %v1891_v48 }
 0x436 PF: > { %s16_s23 = sadd.s32 1, %s2172_s23   ;;  %s2730_s21 = smov %s2168_s22 }
 0x437   : > { %p13_p5 = scmp.ge.s32.totalorder %s16_s23, 4   ;;  %s2731_s22 = smov %s2733_s24 }
 0x439   :  { %15 = sbr.rel (!%p13_p5) target bundleno = 2 (0x2), region = 86 }

// kernel: context_embd_forward.9
= control target key start
LH: loop header
LB: loop body
LE: loop exit
PB: predicated region body
PF: predicated region fallthrough
CT: control target
= control target key end

     0   :  { %s3494_s18 = smov 0   ;;  %s3496_s19 = smov 0   ;;  %s4457_s0 = inlined_call_operand.vmem [shape: bf16[2,64,256], index: 0, kind: input, shape index: {}]   ;;  %s4458_s1 = inlined_call_operand.vmem [shape: bf16[1,256], index: 1, kind: input, shape index: {}]   ;;  %s4459_s2 = inlined_call_operand.vmem [shape: bf16[256,512], index: 2, kind: input, shape index: {}]   ;;  %s4460_s3 = inlined_call_operand.vmem [shape: bf16[256,512], index: 3, kind: input, shape index: {}]   ;;  %s4461_s4 = inlined_call_operand.vmem [shape: bf16[512,256], index: 4, kind: input, shape index: {}]   ;;  %s4462_s5 = inlined_call_operand.vmem [shape: bf16[2,64,256], index: 5, kind: output, shape index: {}]  }
   0x1   :  { %s3498_s20 = smov 0  }
   0x2 LB: > { %s34_s21 = sadd.s32 1, %s3457_s19  ;;  %p2716_p0 = scmp.ge.s32.totalorder %s3461_s20, 1  ;;  %s3461_s20 = sphi %s3498_s20, %s15_s20   ;;  %s3457_s19 = sphi %s3496_s19, %s4464_s19   ;;  %s3453_s18 = sphi %s3494_s18, %s4463_s18  }
   0x3   : > { %p36_p1 = scmp.ge.s32.totalorder %s34_s21, 2  ;;  %p250_p2 = scmp.lt.s32.totalorder %s3461_s20, 3 }
   0x5   : > { %s4466_s21 = smov (%p36_p1, %s34_s21), 0  ;;  %p251_p3 = pnand %p2716_p0, %p250_p2 }
   0x6   : > { %p305_p4 = scmp.lt.s32.totalorder (!%p251_p3), %s3453_s18, 1  ;;  %v3007_v0 = vld [vmem:[%s4459_s2 + $0x4] ss:$16 sps:$4 sm:$0xff] (!%p251_p3)   ;;  %v3009_v1 = vld [vmem:[%s4459_s2] ss:$16 sps:$4 sm:$0xff] (!%p251_p3)  }
   0x7   : > { %254 = sbr.rel (%p251_p3) target bundleno = 784 (0x310), region = 40  ;;  %924 = vmatprep.subr.bf16.mxu1 (!%p251_p3), %v3007_v0  ;;  %v3010_v2 = vld [vmem:[%s4460_s3 + $0x4] ss:$16 sps:$4 sm:$0xff] (!%p251_p3)   ;;  %v3012_v3 = vld [vmem:[%s4460_s3] ss:$16 sps:$4 sm:$0xff] (!%p251_p3)  }
   0x8   : > { %925 = vmatpush1.bf16.msra.mxu1 (!%p251_p3), %v3009_v1  ;;  %v3013_v4 = vld [vmem:[%s4459_s2 + $0x24] ss:$16 sps:$4 sm:$0xff] (!%p251_p3)   ;;  %v3015_v5 = vld [vmem:[%s4459_s2 + $0x20] ss:$16 sps:$4 sm:$0xff] (!%p251_p3)   ;;  %1454 = vmatprep.subr.bf16.mxu0 (!%p251_p3), %v3010_v2 }
   0x9   : > { %v3016_v6 = vld [vmem:[%s4460_s3 + $0x24] ss:$16 sps:$4 sm:$0xff] (!%p251_p3)   ;;  %1455 = vmatpush1.bf16.msra.mxu0 (!%p251_p3), %v3012_v3  ;;  %926 = vmatprep.subr.bf16.mxu1 (!%p251_p3), %v3013_v4  ;;  %v3018_v7 = vld [vmem:[%s4460_s3 + $0x20] ss:$16 sps:$4 sm:$0xff] (!%p251_p3)  }
   0xa   : > { %1456 = vmatprep.subr.bf16.mxu0 (!%p251_p3), %v3016_v6  ;;  %v3019_v23 = vld [vmem:[%s4459_s2 + $0x44] ss:$16 sps:$4 sm:$0xff] (!%p251_p3)   ;;  %v3021_v29 = vld [vmem:[%s4459_s2 + $0x40] ss:$16 sps:$4 sm:$0xff] (!%p251_p3)  }
   0xb   : > { %v3022_v34 = vld [vmem:[%s4460_s3 + $0x44] ss:$16 sps:$4 sm:$0xff] (!%p251_p3)   ;;  %v3024_v35 = vld [vmem:[%s4460_s3 + $0x40] ss:$16 sps:$4 sm:$0xff] (!%p251_p3)  }
   0xc   : > { %927 = vmatpush1.bf16.msra.mxu1 (!%p251_p3), %v3015_v5  ;;  %v3025_v40 = vld [vmem:[%s4459_s2 + $0x64] ss:$16 sps:$4 sm:$0xff] (!%p251_p3)   ;;  %v3027_v41 = vld [vmem:[%s4459_s2 + $0x60] ss:$16 sps:$4 sm:$0xff] (!%p251_p3)  }
   0xd   : > { %1457 = vmatpush1.bf16.msra.mxu0 (!%p251_p3), %v3018_v7  ;;  %928 = vmatprep.subr.bf16.mxu1 (!%p251_p3), %v3019_v23  ;;  %v3028_v46 = vld [vmem:[%s4460_s3 + $0x64] ss:$16 sps:$4 sm:$0xff] (!%p251_p3)   ;;  %v3030_v51 = vld [vmem:[%s4460_s3 + $0x60] ss:$16 sps:$4 sm:$0xff] (!%p251_p3)  }
   0xe   : > { %s4468_s18 = smov (!%p305_p4, %s3453_s18), 1  ;;  %1458 = vmatprep.subr.bf16.mxu0 %v3022_v34  ;;  %v3031_v56 = vld [vmem:[%s4459_s2 + $0x84] ss:$16 sps:$4 sm:$0xff]   ;;  %v3033_v57 = vld [vmem:[%s4459_s2 + $0x80] ss:$16 sps:$4 sm:$0xff]  }
   0xf   : > { %s2956_s9 = sshll.u32 %s4468_s18, 6  ;;  %v3034_v58 = vld [vmem:[%s4460_s3 + $0x84] ss:$16 sps:$4 sm:$0xff]   ;;  %v3036_v63 = vld [vmem:[%s4460_s3 + $0x80] ss:$16 sps:$4 sm:$0xff]  }
  0x10   : > { %s3541_s14 = scalar_lea.vmem %s4457_s0, %s2956_s9  ;;  %929 = vmatpush1.bf16.msra.mxu1 %v3021_v29  ;;  %v3037_v59 = vld [vmem:[%s4459_s2 + $0xa4] ss:$16 sps:$4 sm:$0xff]   ;;  %v3039_v4 = vld [vmem:[%s4459_s2 + $0xa0] ss:$16 sps:$4 sm:$0xff]   ;;  %s4433_s7 = scalar_lea.vmem %s4462_s5, %s2956_s9 }
  0x11   : > { %v349_v8 = vld [vmem:[%s3541_s14] sm:$0xff]  ;;  %v350_v9 = vld [vmem:[%s3541_s14 + $0x8] sm:$0xff]  ;;  %v351_v10 = vld [vmem:[%s3541_s14 + $0x10] sm:$0xff]  ;;  %1459 = vmatpush1.bf16.msra.mxu0 %v3024_v35  ;;  %930 = vmatprep.subr.bf16.mxu1 %v3025_v40 }
  0x12   : > { %v3549_v11 = vunpack.c.l.bf16 %v349_v8  ;;  %v3551_v12 = vunpack.c.h.bf16 %v349_v8  ;;  %v3553_v13 = vunpack.c.l.bf16 %v350_v9  ;;  %v3555_v14 = vunpack.c.h.bf16 %v350_v9  ;;  %v352_v15 = vld [vmem:[%s3541_s14 + $0x18] sm:$0xff]  ;;  %v354_v16 = vld [vmem:[%s3541_s14 + $0x28] sm:$0xff]  ;;  %v353_v21 = vld [vmem:[%s3541_s14 + $0x20] sm:$0xff]  ;;  %1460 = vmatprep.subr.bf16.mxu0 %v3028_v46 }
  0x13   : > { %v3559_v17 = vunpack.c.l.bf16 %v351_v10  ;;  %v3561_v18 = vunpack.c.h.bf16 %v351_v10  ;;  %v3563_v19 = vunpack.c.l.bf16 %v352_v15  ;;  %v3565_v20 = vunpack.c.h.bf16 %v352_v15  ;;  %v356_v22 = vld [vmem:[%s3541_s14 + $0x38] sm:$0xff]  ;;  %v355_v28 = vld [vmem:[%s3541_s14 + $0x30] sm:$0xff] }
  0x14   : > { %v373_v24 = vmul.f32 %v3549_v11, %v3549_v11  ;;  %v374_v25 = vmul.f32 %v3551_v12, %v3551_v12  ;;  %v375_v26 = vmul.f32 %v3553_v13, %v3553_v13  ;;  %v376_v27 = vmul.f32 %v3555_v14, %v3555_v14  ;;  %931 = vmatpush1.bf16.msra.mxu1 %v3027_v41  ;;  %v3040_v3 = vld [vmem:[%s4460_s3 + $0xa4] ss:$16 sps:$4 sm:$0xff]   ;;  %v3042_v7 = vld [vmem:[%s4460_s3 + $0xa0] ss:$16 sps:$4 sm:$0xff]  }
  0x15   : > { %v377_v30 = vmul.f32 %v3559_v17, %v3559_v17  ;;  %v378_v31 = vmul.f32 %v3561_v18, %v3561_v18  ;;  %v379_v32 = vmul.f32 %v3563_v19, %v3563_v19  ;;  %v380_v33 = vmul.f32 %v3565_v20, %v3565_v20  ;;  %932 = vmatprep.subr.bf16.mxu1 %v3031_v56  ;;  %v3043_v5 = vld [vmem:[%s4459_s2 + $0xc4] ss:$16 sps:$4 sm:$0xff]   ;;  %v3045_v10 = vld [vmem:[%s4459_s2 + $0xc0] ss:$16 sps:$4 sm:$0xff]  }
  0x16   : > { %v389_v36 = vadd.f32 %v374_v25, %v373_v24  ;;  %v392_v37 = vadd.f32 %v376_v27, %v375_v26  ;;  %v3598_v38 = vunpack.c.l.bf16 %v354_v16  ;;  %v3600_v39 = vunpack.c.h.bf16 %v354_v16  ;;  %1461 = vmatpush1.bf16.msra.mxu0 %v3030_v51  ;;  %v3046_v9 = vld [vmem:[%s4460_s3 + $0xc4] ss:$16 sps:$4 sm:$0xff]   ;;  %v3048_v16 = vld [vmem:[%s4460_s3 + $0xc0] ss:$16 sps:$4 sm:$0xff]  }
  0x17   : > { %v395_v42 = vadd.f32 %v378_v31, %v377_v30  ;;  %v398_v43 = vadd.f32 %v380_v33, %v379_v32  ;;  %v3608_v44 = vunpack.c.l.bf16 %v353_v21  ;;  %v3610_v45 = vunpack.c.h.bf16 %v353_v21  ;;  %1462 = vmatprep.subr.bf16.mxu0 %v3034_v58  ;;  %v3049_v15 = vld [vmem:[%s4459_s2 + $0xe4] ss:$16 sps:$4 sm:$0xff]   ;;  %v3054_v24 = vld [vmem:[%s4460_s3 + $0xe0] ss:$16 sps:$4 sm:$0xff]  }
  0x18   : > { %390 = vadd.xlane.f32.xlu0 %v389_v36  ;;  %v383_v47 = vmul.f32 %v3598_v38, %v3598_v38  ;;  %v384_v48 = vmul.f32 %v3600_v39, %v3600_v39  ;;  %v3619_v49 = vunpack.c.l.bf16 %v356_v22  ;;  %v3621_v50 = vunpack.c.h.bf16 %v356_v22  ;;  %933 = vmatpush1.bf16.msra.mxu1 %v3033_v57  ;;  %v3052_v21 = vld [vmem:[%s4460_s3 + $0xe4] ss:$16 sps:$4 sm:$0xff]   ;;  %v3051_v22 = vld [vmem:[%s4459_s2 + $0xe0] ss:$16 sps:$4 sm:$0xff]  }
  0x19   : > { %396 = vadd.xlane.f32.xlu1 %v395_v42  ;;  %v381_v52 = vmul.f32 %v3608_v44, %v3608_v44  ;;  %v382_v53 = vmul.f32 %v3610_v45, %v3610_v45  ;;  %v3630_v54 = vunpack.c.l.bf16 %v355_v28  ;;  %v3632_v55 = vunpack.c.h.bf16 %v355_v28  ;;  %934 = vmatprep.subr.bf16.mxu1 %v3037_v59  ;;  %v3055_v23 = vld [vmem:[%s4459_s2 + $0x104] ss:$16 sps:$4 sm:$0xff]   ;;  %v3057_v26 = vld [vmem:[%s4459_s2 + $0x100] ss:$16 sps:$4 sm:$0xff]  }
  0x1a   : > { %v404_v0 = vadd.f32 %v384_v48, %v383_v47  ;;  %v387_v1 = vmul.f32 %v3619_v49, %v3619_v49  ;;  %v388_v2 = vmul.f32 %v3621_v50, %v3621_v50  ;;  %1463 = vmatpush1.bf16.msra.mxu0 %v3036_v63  ;;  %v3058_v25 = vld [vmem:[%s4460_s3 + $0x104] ss:$16 sps:$4 sm:$0xff]   ;;  %v3060_v28 = vld [vmem:[%s4460_s3 + $0x100] ss:$16 sps:$4 sm:$0xff]   ;;  %v3105_v63 = vld [vmem:[%s4459_s2 + $0xc] ss:$16 sps:$4 sm:$0xff]  }
  0x1b   : > { %v401_v60 = vadd.f32 %v382_v53, %v381_v52  ;;  %v385_v61 = vmul.f32 %v3630_v54, %v3630_v54  ;;  %v386_v62 = vmul.f32 %v3632_v55, %v3632_v55  ;;  %1464 = vmatprep.subr.bf16.mxu0 %v3040_v3  ;;  %v3061_v27 = vld [vmem:[%s4459_s2 + $0x124] ss:$16 sps:$4 sm:$0xff]   ;;  %v3063_v30 = vld [vmem:[%s4459_s2 + $0x120] ss:$16 sps:$4 sm:$0xff]   ;;  %v475_v3 = vlaneseq }
  0x1c   : > { %393 = vadd.xlane.f32.xlu0 %v392_v37  ;;  %v410_v8 = vadd.f32 %v388_v2, %v387_v1  ;;  %935 = vmatpush1.bf16.msra.mxu1 %v3039_v4  ;;  %v3064_v29 = vld [vmem:[%s4460_s3 + $0x124] ss:$16 sps:$4 sm:$0xff]   ;;  %v3066_v32 = vld [vmem:[%s4460_s3 + $0x120] ss:$16 sps:$4 sm:$0xff]   ;;  %v3463_v1 = vmov 1966171168  }
  0x1d   : > { %399 = vadd.xlane.f32.xlu1 %v398_v43  ;;  %v407_v6 = vadd.f32 %v386_v62, %v385_v61  ;;  %936 = vmatprep.subr.bf16.mxu1 %v3043_v5  ;;  %v3067_v31 = vld [vmem:[%s4459_s2 + $0x144] ss:$16 sps:$4 sm:$0xff]   ;;  %v3069_v34 = vld [vmem:[%s4459_s2 + $0x140] ss:$16 sps:$4 sm:$0xff]   ;;  %v473_v2 = vunpack.c.l.s4 %v3463_v1 }
  0x1e   : > { %1465 = vmatpush1.bf16.msra.mxu0 %v3042_v7  ;;  %v3070_v33 = vld [vmem:[%s4460_s3 + $0x144] ss:$16 sps:$4 sm:$0xff]   ;;  %v3072_v36 = vld [vmem:[%s4460_s3 + $0x140] ss:$16 sps:$4 sm:$0xff]  }
  0x1f   : > { %1466 = vmatprep.subr.bf16.mxu0 %v3046_v9  ;;  %v3073_v35 = vld [vmem:[%s4459_s2 + $0x164] ss:$16 sps:$4 sm:$0xff]   ;;  %v3075_v40 = vld [vmem:[%s4459_s2 + $0x160] ss:$16 sps:$4 sm:$0xff]   ;;  %v474_v9 = vunpack.c.0.s8 %v473_v2 }
  0x20   : > { %402 = vadd.xlane.f32.xlu0 %v401_v60  ;;  %937 = vmatpush1.bf16.msra.mxu1 %v3045_v10  ;;  %v3076_v37 = vld [vmem:[%s4460_s3 + $0x164] ss:$16 sps:$4 sm:$0xff]   ;;  %v3078_v42 = vld [vmem:[%s4460_s3 + $0x160] ss:$16 sps:$4 sm:$0xff]   ;;  %v476_v10 = vshrl.u32 %v475_v3, 7 }
  0x21   : > { %405 = vadd.xlane.f32.xlu1 %v404_v0  ;;  %938 = vmatprep.subr.bf16.mxu1 %v3049_v15  ;;  %v3079_v41 = vld [vmem:[%s4459_s2 + $0x184] ss:$16 sps:$4 sm:$0xff]   ;;  %v3081_v43 = vld [vmem:[%s4459_s2 + $0x180] ss:$16 sps:$4 sm:$0xff]  }
  0x22   : > { %1467 = vmatpush1.bf16.msra.mxu0 %v3048_v16  ;;  %v3082_v46 = vld [vmem:[%s4460_s3 + $0x184] ss:$16 sps:$4 sm:$0xff]   ;;  %v3084_v48 = vld [vmem:[%s4460_s3 + $0x180] ss:$16 sps:$4 sm:$0xff]  }
  0x23   : > { %1468 = vmatprep.subr.bf16.mxu0 %v3052_v21  ;;  %v3085_v47 = vld [vmem:[%s4459_s2 + $0x1a4] ss:$16 sps:$4 sm:$0xff]   ;;  %v3087_v51 = vld [vmem:[%s4459_s2 + $0x1a0] ss:$16 sps:$4 sm:$0xff]  }
  0x24   : > { %408 = vadd.xlane.f32.xlu0 %v407_v6  ;;  %939 = vmatpush1.bf16.msra.mxu1 %v3051_v22  ;;  %v3088_v52 = vld [vmem:[%s4460_s3 + $0x1a4] ss:$16 sps:$4 sm:$0xff]   ;;  %v3090_v53 = vld [vmem:[%s4460_s3 + $0x1a0] ss:$16 sps:$4 sm:$0xff]  }
  0x25   : > { %411 = vadd.xlane.f32.xlu1 %v410_v8  ;;  %940 = vmatprep.subr.bf16.mxu1 %v3055_v23  ;;  %v3091_v56 = vld [vmem:[%s4459_s2 + $0x1c4] ss:$16 sps:$4 sm:$0xff]   ;;  %v3093_v57 = vld [vmem:[%s4459_s2 + $0x1c0] ss:$16 sps:$4 sm:$0xff]  }
  0x26   : > { %1469 = vmatpush1.bf16.msra.mxu0 %v3054_v24  ;;  %v3094_v58 = vld [vmem:[%s4460_s3 + $0x1c4] ss:$16 sps:$4 sm:$0xff]   ;;  %v3096_v60 = vld [vmem:[%s4460_s3 + $0x1c0] ss:$16 sps:$4 sm:$0xff]  }
  0x27   : > { %1470 = vmatprep.subr.bf16.mxu0 %v3058_v25  ;;  %v3097_v59 = vld [vmem:[%s4459_s2 + $0x1e4] ss:$16 sps:$4 sm:$0xff]   ;;  %v3099_v61 = vld [vmem:[%s4459_s2 + $0x1e0] ss:$16 sps:$4 sm:$0xff]  }
  0x28   : > { %941 = vmatpush1.bf16.msra.mxu1 %v3057_v26  ;;  %v3100_v62 = vld [vmem:[%s4460_s3 + $0x1e4] ss:$16 sps:$4 sm:$0xff]   ;;  %v3102_v0 = vld [vmem:[%s4460_s3 + $0x1e0] ss:$16 sps:$4 sm:$0xff]  }
  0x29   : > { %942 = vmatprep.subr.bf16.mxu1 %v3061_v27  ;;  %v2721_v21 = vld.sshfl [vmem:[%s4458_s1] sm:$0x11 pattern:$0x75316420]  ;;  %v477_v27 = vsub.s32 %v474_v9, %v476_v10 }
  0x2a   : > { %1471 = vmatpush1.bf16.msra.mxu0 %v3060_v28  ;;  %v471_v26 = vcombine.high %v2721_v21, %v2721_v21 }
  0x2b   : > { %1472 = vmatprep.subr.bf16.mxu0 %v3064_v29 }
  0x2c   : > { %943 = vmatpush1.bf16.msra.mxu1 %v3063_v30 }
  0x2d   : > { %944 = vmatprep.subr.bf16.mxu1 %v3067_v31 }
  0x2e   : > { %1473 = vmatpush1.bf16.msra.mxu0 %v3066_v32 }
  0x2f   : > { %1474 = vmatprep.subr.bf16.mxu0 %v3070_v33 }
  0x30   : > { %945 = vmatpush1.bf16.msra.mxu1 %v3069_v34  ;;  %v485_v34 = vrot.slane %v471_v26, %v477_v27 }
  0x31   : > { %946 = vmatprep.subr.bf16.mxu1 %v3073_v35  ;;  %v478_v35 = vrot.slane %v2721_v21, %v477_v27  ;;  %v3114_v27 = vld [vmem:[%s4459_s2 + $0x6c] ss:$16 sps:$4 sm:$0xff]  }
  0x32   : > { %1475 = vmatpush1.bf16.msra.mxu0 %v3072_v36 }
  0x33   : > { %1476 = vmatprep.subr.bf16.mxu0 %v3076_v37 }
  0x34   : > { %947 = vmatpush1.bf16.msra.mxu1 %v3075_v40 }
  0x35   : > { %948 = vmatprep.subr.bf16.mxu1 %v3079_v41 }
  0x36   : > { %1477 = vmatpush1.bf16.msra.mxu0 %v3078_v42 }
  0x37   : > { %1478 = vmatprep.subr.bf16.mxu0 %v3082_v46  ;;  %v494_v46 = vpack.i.b16 %v485_v34, %v485_v34 }
  0x38   : > { %949 = vmatpush1.bf16.msra.mxu1 %v3081_v43  ;;  %v491_v43 = vsub.s32 0, %v476_v10 }
  0x39   : > { %950 = vmatprep.subr.bf16.mxu1 %v3085_v47  ;;  %v487_v47 = vpack.i.b16 %v478_v35, %v478_v35 }
  0x3a   : > { %1479 = vmatpush1.bf16.msra.mxu0 %v3084_v48 }
  0x3b   : > { %1480 = vmatprep.subr.bf16.mxu0 %v3088_v52 }
  0x3c   : > { %951 = vmatpush1.bf16.msra.mxu1 %v3087_v51 }
  0x3d   : > { %952 = vmatprep.subr.bf16.mxu1 %v3091_v56 }
  0x3e   : > { %1481 = vmatpush1.bf16.msra.mxu0 %v3090_v53 }
  0x3f   : > { %1482 = vmatprep.subr.bf16.mxu0 %v3094_v58  ;;  %v3794_v58 = vrot.slane %v487_v47, %v491_v43  ;;  %v3202_v47 = vld [vmem:[%s4461_s4 + $0x10] ss:$8 sps:$4 sm:$0xff]  }
  0x40   : > { %953 = vmatpush1.bf16.msra.mxu1 %v3093_v57  ;;  %v3792_v57 = vrot.slane %v494_v46, %v491_v43  ;;  %v3204_v43 = vld [vmem:[%s4461_s4 + $0x14] ss:$8 sps:$4 sm:$0xff]  }
  0x41   : > { %954 = vmatprep.subr.bf16.mxu1 %v3097_v59  ;;  %v3129_v46 = vld [vmem:[%s4459_s2 + $0x10c] ss:$16 sps:$4 sm:$0xff]  }
  0x42   : > { %1483 = vmatpush1.bf16.msra.mxu0 %v3096_v60 }
  0x43   : > { %1484 = vmatprep.subr.bf16.mxu0 %v3100_v62 }
  0x44   : > { %955 = vmatpush1.bf16.msra.mxu1 %v3099_v61 }
  0x45   : > { %997 = vmatprep.subr.bf16.mxu1 %v3105_v63 }
  0x46   : > { %1485 = vmatpush1.bf16.msra.mxu0 %v3102_v0 }
  0xa5   : > { %v391_v4 = vpop.xlane.xlu0 %390 }
  0xa6   : > { %v414_v5 = vmul.f32 0.00390625, %v391_v4  ;;  %v397_v6 = vpop.xlane.xlu1 %396 }
  0xa7   : > { %v416_v7 = vmul.f32 0.00390625, %v397_v6 }
  0xa8   : > { %v422_v8 = vadd.f32 1e-06, %v414_v5 }
  0xa9   : > { %v394_v15 = vpop.xlane.xlu0 %393  ;;  %v424_v16 = vadd.f32 1e-06, %v416_v7 }
  0xaa   : > { %v415_v22 = vmul.f32 0.00390625, %v394_v15  ;;  %v400_v23 = vpop.xlane.xlu1 %399 }
  0xab   : > { %3295 = vrsqrt.f32 %v424_v16  ;;  %v417_v24 = vmul.f32 0.00390625, %v400_v23  ;;  %v3109_v23 = vld [vmem:[%s4459_s2 + $0x48] ss:$16 sps:$4 sm:$0xff]  }
  0xac   : > { %3297 = vrsqrt.f32 %v422_v8  ;;  %v423_v25 = vadd.f32 1e-06, %v415_v22 }
  0xad   : > { %v425_v28 = vadd.f32 1e-06, %v417_v24  ;;  %v403_v29 = vpop.xlane.xlu0 %402 }
  0xae   : > { %3299 = vrsqrt.f32 %v423_v25  ;;  %v406_v30 = vpop.xlane.xlu1 %405  ;;  %v418_v31 = vmul.f32 0.00390625, %v403_v29 }
  0xaf   : > { %3301 = vrsqrt.f32 %v425_v28  ;;  %v419_v32 = vmul.f32 0.00390625, %v406_v30 }
  0xb0   : > { %v426_v33 = vadd.f32 1e-06, %v418_v31  ;;  %v3115_v31 = vld [vmem:[%s4459_s2 + $0x88] ss:$16 sps:$4 sm:$0xff]  }
  0xb1   : > { %v427_v36 = vadd.f32 1e-06, %v419_v32  ;;  %v409_v37 = vpop.xlane.xlu0 %408 }
  0xb2   : > { %3303 = vrsqrt.f32 %v426_v33  ;;  %v412_v40 = vpop.xlane.xlu1 %411  ;;  %v420_v41 = vmul.f32 0.00390625, %v409_v37  ;;  %v3120_v33 = vld [vmem:[%s4459_s2 + $0xac] ss:$16 sps:$4 sm:$0xff]  }
  0xb3   : > { %3305 = vrsqrt.f32 %v427_v36  ;;  %v421_v42 = vmul.f32 0.00390625, %v412_v40  ;;  %v3121_v36 = vld [vmem:[%s4459_s2 + $0xc8] ss:$16 sps:$4 sm:$0xff]   ;;  %v3126_v37 = vld [vmem:[%s4459_s2 + $0xec] ss:$16 sps:$4 sm:$0xff]  }
  0xb4   : > { %v428_v48 = vadd.f32 1e-06, %v420_v41  ;;  %v3199_v40 = vld [vmem:[%s4461_s4] ss:$8 sps:$4 sm:$0xff]   ;;  %v3201_v41 = vld [vmem:[%s4461_s4 + $0x4] ss:$8 sps:$4 sm:$0xff]  }
  0xb5   : > { %v3296_v51 = vpop.eup %3295  ;;  %v429_v52 = vadd.f32 1e-06, %v421_v42  ;;  %v3124_v42 = vld [vmem:[%s4459_s2 + $0xe8] ss:$16 sps:$4 sm:$0xff]   ;;  %2272 = vmatprep.subr.bf16.mxu0 %v3201_v41 }
  0xb6   : > { %v3298_v53 = vpop.eup %3297  ;;  %3307 = vrsqrt.f32 %v428_v48  ;;  %v443_v59 = vmul.f32 %v3296_v51, %v3561_v18  ;;  %v442_v6 = vmul.f32 %v3296_v51, %v3559_v17  ;;  %v3207_v48 = vld [vmem:[%s4461_s4 + $0x24] ss:$8 sps:$4 sm:$0xff]   ;;  %v3127_v51 = vld [vmem:[%s4459_s2 + $0x108] ss:$16 sps:$4 sm:$0xff]  }
  0xb7   : > { %3309 = vrsqrt.f32 %v429_v52  ;;  %v439_v61 = vmul.f32 %v3298_v53, %v3551_v12  ;;  %v438_v63 = vmul.f32 %v3298_v53, %v3549_v11  ;;  %v3103_v11 = vld [vmem:[%s4459_s2 + $0x8] ss:$16 sps:$4 sm:$0xff]   ;;  %v3132_v52 = vld [vmem:[%s4459_s2 + $0x12c] ss:$16 sps:$4 sm:$0xff]  }
  0xb8   : > { %v3300_v56 = vpop.eup %3299  ;;  %v3205_v53 = vld [vmem:[%s4461_s4 + $0x20] ss:$8 sps:$4 sm:$0xff]  }
  0xb9   : > { %v3302_v60 = vpop.eup %3301  ;;  %v441_v62 = vmul.f32 %v3300_v56, %v3555_v14  ;;  %v440_v0 = vmul.f32 %v3300_v56, %v3553_v13  ;;  %v3108_v14 = vld [vmem:[%s4459_s2 + $0x2c] ss:$16 sps:$4 sm:$0xff]   ;;  %v3178_v41 = vld [vmem:[%s4460_s3 + $0x128] ss:$16 sps:$4 sm:$0xff]  }
  0xba   : > { %v445_v1 = vmul.f32 %v3302_v60, %v3565_v20  ;;  %v444_v7 = vmul.f32 %v3302_v60, %v3563_v19  ;;  %v3210_v56 = vld [vmem:[%s4461_s4 + $0x34] ss:$8 sps:$4 sm:$0xff]   ;;  %v3213_v60 = vld [vmem:[%s4461_s4 + $0x44] ss:$8 sps:$4 sm:$0xff]  }
  0xbb   : > { %v455_v2 = vpack.c.bf16 %v441_v62, %v439_v61  ;;  %v454_v3 = vpack.c.bf16 %v440_v0, %v438_v63  ;;  %v3133_v61 = vld [vmem:[%s4459_s2 + $0x148] ss:$16 sps:$4 sm:$0xff]   ;;  %v3138_v62 = vld [vmem:[%s4459_s2 + $0x16c] ss:$16 sps:$4 sm:$0xff]  }
  0xbc   : > { %v3304_v4 = vpop.eup %3303  ;;  %v457_v5 = vpack.c.bf16 %v445_v1, %v443_v59  ;;  %v456_v20 = vpack.c.bf16 %v444_v7, %v442_v6  ;;  %v3208_v59 = vld [vmem:[%s4461_s4 + $0x30] ss:$8 sps:$4 sm:$0xff]   ;;  %v3211_v63 = vld [vmem:[%s4461_s4 + $0x40] ss:$8 sps:$4 sm:$0xff]   ;;  %v3216_v0 = vld [vmem:[%s4461_s4 + $0x54] ss:$8 sps:$4 sm:$0xff]  }
  0xbd   : > { %v3306_v18 = vpop.eup %3305  ;;  %v3805_v8 = vmul.bf16 %v3792_v57, %v455_v2  ;;  %v3811_v12 = vmul.bf16 %v3794_v58, %v454_v3  ;;  %v447_v13 = vmul.f32 %v3304_v4, %v3610_v45  ;;  %v3106_v45 = vld [vmem:[%s4459_s2 + $0x28] ss:$16 sps:$4 sm:$0xff]   ;;  %v446_v21 = vmul.f32 %v3304_v4, %v3608_v44  ;;  %v3141_v2 = vld [vmem:[%s4459_s2 + $0x18c] ss:$16 sps:$4 sm:$0xff]  }
  0xbe   : > { %v3818_v17 = vmul.bf16 %v3792_v57, %v457_v5  ;;  %v449_v19 = vmul.f32 %v3306_v18, %v3600_v39  ;;  %v3111_v39 = vld [vmem:[%s4459_s2 + $0x4c] ss:$16 sps:$4 sm:$0xff]   ;;  %v3834_v16 = vmul.bf16 %v3794_v58, %v456_v20  ;;  %v448_v22 = vmul.f32 %v3306_v18, %v3598_v38  ;;  %v3112_v44 = vld [vmem:[%s4459_s2 + $0x68] ss:$16 sps:$4 sm:$0xff]  }
  0xbf   : > { %956 = vmatprep.mubr.bf16.mxu1 %v3805_v8  ;;  %1486 = vmatprep.mubr.bf16.mxu0 %v3805_v8  ;;  %v3136_v1 = vld [vmem:[%s4459_s2 + $0x168] ss:$16 sps:$4 sm:$0xff]   ;;  %v3219_v4 = vld [vmem:[%s4461_s4 + $0x64] ss:$8 sps:$4 sm:$0xff]  }
  0xc0   : > { %957 = vmatmul.mubr.bf16.vlgmr.msra.gmra.mrb[0].mxu1 %v3811_v12  ;;  %1487 = vmatmul.mubr.bf16.vlgmr.msra.gmra.mrb[0].mxu0 %v3811_v12  ;;  %v3308_v9 = vpop.eup %3307  ;;  %v459_v10 = vpack.c.bf16 %v449_v19, %v447_v13  ;;  %v458_v38 = vpack.c.bf16 %v448_v22, %v446_v21  ;;  %v3214_v3 = vld [vmem:[%s4461_s4 + $0x50] ss:$8 sps:$4 sm:$0xff]   ;;  %v3144_v6 = vld [vmem:[%s4459_s2 + $0x1ac] ss:$16 sps:$4 sm:$0xff]   ;;  %v3217_v7 = vld [vmem:[%s4461_s4 + $0x60] ss:$8 sps:$4 sm:$0xff]  }
  0xc1   : > { %998 = vmatpush1.bf16.msra.mxu1 %v3103_v11  ;;  %966 = vmatprep.mubr.bf16.mxu1 %v3818_v17  ;;  %v3310_v15 = vpop.eup %3309  ;;  %v451_v25 = vmul.f32 %v3308_v9, %v3632_v55  ;;  %v450_v29 = vmul.f32 %v3308_v9, %v3630_v54  ;;  %v3123_v54 = vld [vmem:[%s4459_s2 + $0xcc] ss:$16 sps:$4 sm:$0xff]   ;;  %v3139_v5 = vld [vmem:[%s4459_s2 + $0x188] ss:$16 sps:$4 sm:$0xff]  }
  0xc2   : > { %999 = vmatprep.subr.bf16.mxu1 %v3108_v14  ;;  %1496 = vmatprep.mubr.bf16.mxu0 %v3818_v17  ;;  %v3842_v24 = vmul.bf16 %v3792_v57, %v459_v10  ;;  %v453_v26 = vmul.f32 %v3310_v15, %v3621_v50  ;;  %v3117_v50 = vld [vmem:[%s4459_s2 + $0x8c] ss:$16 sps:$4 sm:$0xff]   ;;  %v3860_v28 = vmul.bf16 %v3794_v58, %v458_v38  ;;  %v3142_v18 = vld [vmem:[%s4459_s2 + $0x1a8] ss:$16 sps:$4 sm:$0xff]  }
  0xc3   : > { %v452_v30 = vmul.f32 %v3310_v15, %v3619_v49  ;;  %v3118_v49 = vld [vmem:[%s4459_s2 + $0xa8] ss:$16 sps:$4 sm:$0xff]   ;;  %2273 = vmatpush1.bf16.msra.mxu0 %v3199_v40  ;;  %v3147_v11 = vld [vmem:[%s4459_s2 + $0x1cc] ss:$16 sps:$4 sm:$0xff]  }
  0xc4   : > { %v461_v55 = vpack.c.bf16 %v453_v26, %v451_v25  ;;  %2274 = vmatprep.subr.bf16.mxu0 %v3204_v43  ;;  %v3145_v13 = vld [vmem:[%s4459_s2 + $0x1c8] ss:$16 sps:$4 sm:$0xff]   ;;  %v3150_v14 = vld [vmem:[%s4459_s2 + $0x1ec] ss:$16 sps:$4 sm:$0xff]  }
  0xc5   : > { %1000 = vmatpush1.bf16.msra.mxu1 %v3106_v45  ;;  %v460_v34 = vpack.c.bf16 %v452_v30, %v450_v29  ;;  %v3148_v19 = vld [vmem:[%s4459_s2 + $0x1e8] ss:$16 sps:$4 sm:$0xff]   ;;  %v3153_v20 = vld [vmem:[%s4460_s3 + $0xc] ss:$16 sps:$4 sm:$0xff]  }
  0xc6   : > { %1001 = vmatprep.subr.bf16.mxu1 %v3111_v39  ;;  %v3868_v32 = vmul.bf16 %v3792_v57, %v461_v55  ;;  %v3130_v57 = vld [vmem:[%s4459_s2 + $0x128] ss:$16 sps:$4 sm:$0xff]   ;;  %v3156_v45 = vld [vmem:[%s4460_s3 + $0x2c] ss:$16 sps:$4 sm:$0xff]  }
  0xc7   : > { %v3884_v35 = vmul.bf16 %v3794_v58, %v460_v34  ;;  %2275 = vmatpush1.bf16.msra.mxu0 %v3202_v47  ;;  %v3135_v58 = vld [vmem:[%s4459_s2 + $0x14c] ss:$16 sps:$4 sm:$0xff]   ;;  %v3151_v9 = vld [vmem:[%s4460_s3 + $0x8] ss:$16 sps:$4 sm:$0xff]  }
  0xc8   : > { %967 = vmatmul.mubr.bf16.gmra.mrb[4].mxu1 %v3834_v16  ;;  %1497 = vmatmul.mubr.bf16.gmra.mrb[4].mxu0 %v3834_v16  ;;  %v3154_v10 = vld [vmem:[%s4460_s3 + $0x28] ss:$16 sps:$4 sm:$0xff]   ;;  %v3159_v15 = vld [vmem:[%s4460_s3 + $0x4c] ss:$16 sps:$4 sm:$0xff]  }
  0xc9   : > { %1002 = vmatpush1.bf16.msra.mxu1 %v3109_v23  ;;  %976 = vmatprep.mubr.bf16.mxu1 %v3842_v24  ;;  %v3157_v39 = vld [vmem:[%s4460_s3 + $0x48] ss:$16 sps:$4 sm:$0xff]   ;;  %v3162_v21 = vld [vmem:[%s4460_s3 + $0x6c] ss:$16 sps:$4 sm:$0xff]  }
  0xca   : > { %1003 = vmatprep.subr.bf16.mxu1 %v3114_v27  ;;  %1506 = vmatprep.mubr.bf16.mxu0 %v3842_v24  ;;  %v3160_v22 = vld [vmem:[%s4460_s3 + $0x68] ss:$16 sps:$4 sm:$0xff]   ;;  %v3165_v23 = vld [vmem:[%s4460_s3 + $0x8c] ss:$16 sps:$4 sm:$0xff]  }
  0xcb   : > { %2276 = vmatprep.subr.bf16.mxu0 %v3207_v48  ;;  %v3163_v25 = vld [vmem:[%s4460_s3 + $0x88] ss:$16 sps:$4 sm:$0xff]   ;;  %v3168_v26 = vld [vmem:[%s4460_s3 + $0xac] ss:$16 sps:$4 sm:$0xff]  }
  0xcc   : > { %2277 = vmatpush1.bf16.msra.mxu0 %v3205_v53  ;;  %v3166_v27 = vld [vmem:[%s4460_s3 + $0xa8] ss:$16 sps:$4 sm:$0xff]   ;;  %v3171_v38 = vld [vmem:[%s4460_s3 + $0xcc] ss:$16 sps:$4 sm:$0xff]  }
  0xcd   : > { %1004 = vmatpush1.bf16.msra.mxu1 %v3112_v44  ;;  %2278 = vmatprep.subr.bf16.mxu0 %v3210_v56  ;;  %v3222_v44 = vld [vmem:[%s4461_s4 + $0x74] ss:$8 sps:$4 sm:$0xff]   ;;  %v3220_v55 = vld [vmem:[%s4461_s4 + $0x70] ss:$8 sps:$4 sm:$0xff]   ;;  %v3225_v30 = vld [vmem:[%s4461_s4 + $0x84] ss:$8 sps:$4 sm:$0xff]  }
  0xce   : > { %1005 = vmatprep.subr.bf16.mxu1 %v3117_v50  ;;  %v3169_v50 = vld [vmem:[%s4460_s3 + $0xc8] ss:$16 sps:$4 sm:$0xff]   ;;  %v3174_v29 = vld [vmem:[%s4460_s3 + $0xec] ss:$16 sps:$4 sm:$0xff]  }
  0xcf   : > { %v3177_v34 = vld [vmem:[%s4460_s3 + $0x10c] ss:$16 sps:$4 sm:$0xff]   ;;  %v3229_v40 = vld [vmem:[%s4461_s4 + $0xa0] ss:$8 sps:$4 sm:$0xff]  }
  0xd0   : > { %977 = vmatmul.mubr.bf16.gmra.mrb[8].mxu1 %v3860_v28  ;;  %1507 = vmatmul.mubr.bf16.gmra.mrb[8].mxu0 %v3860_v28  ;;  %v3234_v43 = vld [vmem:[%s4461_s4 + $0xb4] ss:$8 sps:$4 sm:$0xff]   ;;  %v3181_v47 = vld [vmem:[%s4460_s3 + $0x148] ss:$16 sps:$4 sm:$0xff]  }
  0xd1   : > { %1006 = vmatpush1.bf16.msra.mxu1 %v3115_v31  ;;  %986 = vmatprep.mubr.bf16.mxu1 %v3868_v32  ;;  %v3223_v31 = vld [vmem:[%s4461_s4 + $0x80] ss:$8 sps:$4 sm:$0xff]   ;;  %v3186_v48 = vld [vmem:[%s4460_s3 + $0x16c] ss:$16 sps:$4 sm:$0xff]  }
  0xd2   : > { %1007 = vmatprep.subr.bf16.mxu1 %v3120_v33  ;;  %1516 = vmatprep.mubr.bf16.mxu0 %v3868_v32  ;;  %v3172_v33 = vld [vmem:[%s4460_s3 + $0xe8] ss:$16 sps:$4 sm:$0xff]   ;;  %v3189_v56 = vld [vmem:[%s4460_s3 + $0x18c] ss:$16 sps:$4 sm:$0xff]  }
  0xd3   : > { %2279 = vmatpush1.bf16.msra.mxu0 %v3208_v59  ;;  %v3184_v53 = vld [vmem:[%s4460_s3 + $0x168] ss:$16 sps:$4 sm:$0xff]  }
  0xd4   : > { %2280 = vmatprep.subr.bf16.mxu0 %v3213_v60  ;;  %v3187_v59 = vld [vmem:[%s4460_s3 + $0x188] ss:$16 sps:$4 sm:$0xff]   ;;  %v3192_v60 = vld [vmem:[%s4460_s3 + $0x1ac] ss:$16 sps:$4 sm:$0xff]  }
  0xd5   : > { %1008 = vmatpush1.bf16.msra.mxu1 %v3118_v49  ;;  %v3228_v49 = vld [vmem:[%s4461_s4 + $0x94] ss:$8 sps:$4 sm:$0xff]  }
  0xd6   : > { %1009 = vmatprep.subr.bf16.mxu1 %v3123_v54  ;;  %v3226_v54 = vld [vmem:[%s4461_s4 + $0x90] ss:$8 sps:$4 sm:$0xff]  }
  0xd7   : > { %2281 = vmatpush1.bf16.msra.mxu0 %v3211_v63  ;;  %v3190_v63 = vld [vmem:[%s4460_s3 + $0x1a8] ss:$16 sps:$4 sm:$0xff]  }
  0xd8   : > { %987 = vmatmul.mubr.bf16.gmra.mrb[12].mxu1 %v3884_v35  ;;  %1517 = vmatmul.mubr.bf16.gmra.mrb[12].mxu0 %v3884_v35 }
  0xd9   : > { %1010 = vmatpush1.bf16.msra.mxu1 %v3121_v36  ;;  %1029 = vmatprep.mubr.bf16.mxu1 %v3805_v8  ;;  %v3180_v36 = vld [vmem:[%s4460_s3 + $0x12c] ss:$16 sps:$4 sm:$0xff]  }
  0xda   : > { %1011 = vmatprep.subr.bf16.mxu1 %v3126_v37  ;;  %2282 = vmatprep.subr.bf16.mxu0 %v3216_v0  ;;  %v3231_v37 = vld [vmem:[%s4461_s4 + $0xa4] ss:$8 sps:$4 sm:$0xff]  }
  0xdb   : > { %2283 = vmatpush1.bf16.msra.mxu0 %v3214_v3  ;;  %v3195_v0 = vld [vmem:[%s4460_s3 + $0x1cc] ss:$16 sps:$4 sm:$0xff]   ;;  %v3193_v3 = vld [vmem:[%s4460_s3 + $0x1c8] ss:$16 sps:$4 sm:$0xff]  }
  0xdc   : > { %2284 = vmatprep.subr.bf16.mxu0 %v3219_v4  ;;  %v3198_v4 = vld [vmem:[%s4460_s3 + $0x1ec] ss:$16 sps:$4 sm:$0xff]  }
  0xdd   : > { %1012 = vmatpush1.bf16.msra.mxu1 %v3124_v42  ;;  %v3183_v42 = vld [vmem:[%s4460_s3 + $0x14c] ss:$16 sps:$4 sm:$0xff]  }
  0xde   : > { %1013 = vmatprep.subr.bf16.mxu1 %v3129_v46  ;;  %v3232_v46 = vld [vmem:[%s4461_s4 + $0xb0] ss:$8 sps:$4 sm:$0xff]  }
  0xdf   : > { %2285 = vmatpush1.bf16.msra.mxu0 %v3217_v7 }
  0xe0   : > { %2286 = vmatprep.subr.bf16.mxu0 %v3222_v44 }
  0xe1   : > { %1014 = vmatpush1.bf16.msra.mxu1 %v3127_v51  ;;  %v3237_v51 = vld [vmem:[%s4461_s4 + $0xc4] ss:$8 sps:$4 sm:$0xff]  }
  0xe2   : > { %1015 = vmatprep.subr.bf16.mxu1 %v3132_v52  ;;  %v3235_v52 = vld [vmem:[%s4461_s4 + $0xc0] ss:$8 sps:$4 sm:$0xff]  }
  0xe3   : > { %2287 = vmatpush1.bf16.msra.mxu0 %v3220_v55 }
  0xe4   : > { %2288 = vmatprep.subr.bf16.mxu0 %v3225_v30 }
  0xe5   : > { %1016 = vmatpush1.bf16.msra.mxu1 %v3130_v57  ;;  %v3240_v57 = vld [vmem:[%s4461_s4 + $0xd4] ss:$8 sps:$4 sm:$0xff]  }
  0xe6   : > { %1017 = vmatprep.subr.bf16.mxu1 %v3135_v58  ;;  %v3238_v58 = vld [vmem:[%s4461_s4 + $0xd0] ss:$8 sps:$4 sm:$0xff]  }
  0xe7   : > { %2289 = vmatpush1.bf16.msra.mxu0 %v3223_v31 }
  0xe8   : > { %2290 = vmatprep.subr.bf16.mxu0 %v3228_v49 }
  0xe9   : > { %1018 = vmatpush1.bf16.msra.mxu1 %v3133_v61  ;;  %v3243_v61 = vld [vmem:[%s4461_s4 + $0xe4] ss:$8 sps:$4 sm:$0xff]  }
  0xea   : > { %1019 = vmatprep.subr.bf16.mxu1 %v3138_v62  ;;  %v3241_v62 = vld [vmem:[%s4461_s4 + $0xe0] ss:$8 sps:$4 sm:$0xff]  }
  0xeb   : > { %2291 = vmatpush1.bf16.msra.mxu0 %v3226_v54 }
  0xec   : > { %2292 = vmatprep.subr.bf16.mxu0 %v3231_v37 }
  0xed   : > { %1020 = vmatpush1.bf16.msra.mxu1 %v3136_v1  ;;  %v3246_v1 = vld [vmem:[%s4461_s4 + $0xf4] ss:$8 sps:$4 sm:$0xff]  }
  0xee   : > { %1021 = vmatprep.subr.bf16.mxu1 %v3141_v2  ;;  %v3244_v2 = vld [vmem:[%s4461_s4 + $0xf0] ss:$8 sps:$4 sm:$0xff]  }
  0xef   : > { %2293 = vmatpush1.bf16.msra.mxu0 %v3229_v40 }
  0xf0   : > { %2294 = vmatprep.subr.bf16.mxu0 %v3234_v43 }
  0xf1   : > { %1022 = vmatpush1.bf16.msra.mxu1 %v3139_v5  ;;  %v3196_v5 = vld [vmem:[%s4460_s3 + $0x1e8] ss:$16 sps:$4 sm:$0xff]  }
  0xf2   : > { %1023 = vmatprep.subr.bf16.mxu1 %v3144_v6  ;;  %v3249_v6 = vld [vmem:[%s4461_s4 + $0x104] ss:$8 sps:$4 sm:$0xff]  }
  0xf3   : > { %2295 = vmatpush1.bf16.msra.mxu0 %v3232_v46 }
  0xf4   : > { %2296 = vmatprep.subr.bf16.mxu0 %v3237_v51 }
  0xf5   : > { %1024 = vmatpush1.bf16.msra.mxu1 %v3142_v18 }
  0xf6   : > { %1025 = vmatprep.subr.bf16.mxu1 %v3147_v11 }
  0xf7   : > { %2297 = vmatpush1.bf16.msra.mxu0 %v3235_v52 }
  0xf8   : > { %2298 = vmatprep.subr.bf16.mxu0 %v3240_v57 }
  0xf9   : > { %1026 = vmatpush1.bf16.msra.mxu1 %v3145_v13 }
  0xfa   : > { %1027 = vmatprep.subr.bf16.mxu1 %v3150_v14 }
  0xfb   : > { %2299 = vmatpush1.bf16.msra.mxu0 %v3238_v58 }
  0xfc   : > { %2300 = vmatprep.subr.bf16.mxu0 %v3243_v61 }
  0xfd   : > { %1028 = vmatpush1.bf16.msra.mxu1 %v3148_v19 }
  0xfe   : > { %1527 = vmatprep.subr.bf16.mxu1 %v3153_v20 }
  0xff   : > { %2301 = vmatpush1.bf16.msra.mxu0 %v3241_v62 }
 0x100   : > { %1030 = vmatmul.mubr.bf16.vlgmr.msra.gmra.mrb[16].mxu1 %v3811_v12  ;;  %2302 = vmatprep.subr.bf16.mxu0 %v3246_v1 }
 0x101   : > { %1039 = vmatprep.mubr.bf16.mxu1 %v3818_v17  ;;  %1528 = vmatpush1.bf16.msra.mxu1 %v3151_v9 }
 0x102   : > { %1529 = vmatprep.subr.bf16.mxu1 %v3156_v45 }
 0x103   : > { %2303 = vmatpush1.bf16.msra.mxu0 %v3244_v2 }
 0x104   : > { %2345 = vmatprep.subr.bf16.mxu0 %v3249_v6 }
 0x105   : > { %1530 = vmatpush1.bf16.msra.mxu1 %v3154_v10 }
 0x106   : > { %1531 = vmatprep.subr.bf16.mxu1 %v3159_v15 }
 0x108   : > { %1040 = vmatmul.mubr.bf16.gmra.mrb[20].mxu1 %v3834_v16 }
 0x109   : > { %1049 = vmatprep.mubr.bf16.mxu1 %v3842_v24  ;;  %1532 = vmatpush1.bf16.msra.mxu1 %v3157_v39 }
 0x10a   : > { %1533 = vmatprep.subr.bf16.mxu1 %v3162_v21 }
 0x10d   : > { %1534 = vmatpush1.bf16.msra.mxu1 %v3160_v22 }
 0x10e   : > { %1535 = vmatprep.subr.bf16.mxu1 %v3165_v23 }
 0x110   : > { %1050 = vmatmul.mubr.bf16.gmra.mrb[24].mxu1 %v3860_v28 }
 0x111   : > { %1059 = vmatprep.mubr.bf16.mxu1 %v3868_v32  ;;  %1536 = vmatpush1.bf16.msra.mxu1 %v3163_v25 }
 0x112   : > { %1537 = vmatprep.subr.bf16.mxu1 %v3168_v26 }
 0x115   : > { %1538 = vmatpush1.bf16.msra.mxu1 %v3166_v27 }
 0x116   : > { %1539 = vmatprep.subr.bf16.mxu1 %v3171_v38 }
 0x118   : > { %1060 = vmatmul.mubr.bf16.gmra.mrb[28].mxu1 %v3884_v35 }
 0x119   : > { %1540 = vmatpush1.bf16.msra.mxu1 %v3169_v50  ;;  %1559 = vmatprep.mubr.bf16.mxu1 %v3805_v8  ;;  %v3175_v8 = vld [vmem:[%s4460_s3 + $0x108] ss:$16 sps:$4 sm:$0xff]  }
 0x11a   : > { %1541 = vmatprep.subr.bf16.mxu1 %v3174_v29 }
 0x11d   : > { %1542 = vmatpush1.bf16.msra.mxu1 %v3172_v33 }
 0x11e   : > { %1543 = vmatprep.subr.bf16.mxu1 %v3177_v34 }
 0x121   : > { %1544 = vmatpush1.bf16.msra.mxu1 %v3175_v8 }
 0x122   : > { %1545 = vmatprep.subr.bf16.mxu1 %v3180_v36 }
 0x125   : > { %1546 = vmatpush1.bf16.msra.mxu1 %v3178_v41 }
 0x126   : > { %1547 = vmatprep.subr.bf16.mxu1 %v3183_v42 }
 0x129   : > { %1548 = vmatpush1.bf16.msra.mxu1 %v3181_v47 }
 0x12a   : > { %1549 = vmatprep.subr.bf16.mxu1 %v3186_v48 }
 0x12d   : > { %1550 = vmatpush1.bf16.msra.mxu1 %v3184_v53 }
 0x12e   : > { %1551 = vmatprep.subr.bf16.mxu1 %v3189_v56 }
 0x131   : > { %1552 = vmatpush1.bf16.msra.mxu1 %v3187_v59 }
 0x132   : > { %1553 = vmatprep.subr.bf16.mxu1 %v3192_v60 }
 0x135   : > { %1554 = vmatpush1.bf16.msra.mxu1 %v3190_v63 }
 0x136   : > { %1555 = vmatprep.subr.bf16.mxu1 %v3195_v0 }
 0x139   : > { %1556 = vmatpush1.bf16.msra.mxu1 %v3193_v3 }
 0x13a   : > { %1557 = vmatprep.subr.bf16.mxu1 %v3198_v4 }
 0x13d   : > { %1558 = vmatpush1.bf16.msra.mxu1 %v3196_v5 }
 0x140   : > { %1560 = vmatmul.mubr.bf16.vlgmr.msra.gmra.mrb[32].mxu1 %v3811_v12 }
 0x141   : > { %1569 = vmatprep.mubr.bf16.mxu1 %v3818_v17 }
 0x148   : > { %1570 = vmatmul.mubr.bf16.gmra.mrb[36].mxu1 %v3834_v16 }
 0x149   : > { %1579 = vmatprep.mubr.bf16.mxu1 %v3842_v24 }
 0x150   : > { %1580 = vmatmul.mubr.bf16.gmra.mrb[40].mxu1 %v3860_v28 }
 0x151   : > { %1589 = vmatprep.mubr.bf16.mxu1 %v3868_v32 }
 0x158   : > { %1590 = vmatmul.mubr.bf16.gmra.mrb[44].mxu1 %v3884_v35 }
 0x193   : > { %v4156_v7 = vpop.f32.mrb[0].mxu1  ;;  %v4158_v12 = vpop.f32.mrb[0].mxu0 }
 0x194   : > { %v2850_v17 = vmul.f32 -1.442695, %v4156_v7  ;;  %v4161_v16 = vpop.f32.mrb[1].mxu1  ;;  %v4163_v24 = vpop.f32.mrb[1].mxu0 }
 0x195   : > { %v2851_v28 = vmul.f32 -1.442695, %v4161_v16  ;;  %v4166_v32 = vpop.f32.mrb[2].mxu1  ;;  %v4168_v35 = vpop.f32.mrb[2].mxu0 }
 0x196   : > { %3311 = vpow2.f32 %v2850_v17  ;;  %v2854_v18 = vmul.f32 -1.442695, %v4166_v32  ;;  %v4171_v11 = vpop.f32.mrb[3].mxu1  ;;  %v4173_v13 = vpop.f32.mrb[3].mxu0 }
 0x197   : > { %3313 = vpow2.f32 %v2851_v28  ;;  %v2855_v14 = vmul.f32 -1.442695, %v4171_v11 }
 0x198   : > { %3315 = vpow2.f32 %v2854_v18 }
 0x199   : > { %3317 = vpow2.f32 %v2855_v14 }
 0x19b   : > { %v4176_v19 = vpop.f32.mrb[4].mxu1  ;;  %v4178_v20 = vpop.f32.mrb[4].mxu0 }
 0x19c   : > { %v2858_v9 = vmul.f32 -1.442695, %v4176_v19  ;;  %v4181_v45 = vpop.f32.mrb[5].mxu1  ;;  %v4183_v10 = vpop.f32.mrb[5].mxu0 }
 0x19d   : > { %v2859_v15 = vmul.f32 -1.442695, %v4181_v45  ;;  %v4186_v39 = vpop.f32.mrb[6].mxu1  ;;  %v4188_v21 = vpop.f32.mrb[6].mxu0 }
 0x19e   : > { %3319 = vpow2.f32 %v2858_v9  ;;  %v2862_v22 = vmul.f32 -1.442695, %v4186_v39  ;;  %v4191_v23 = vpop.f32.mrb[7].mxu1  ;;  %v4193_v25 = vpop.f32.mrb[7].mxu0 }
 0x19f   : > { %3321 = vpow2.f32 %v2859_v15  ;;  %v2863_v26 = vmul.f32 -1.442695, %v4191_v23 }
 0x1a0   : > { %v3312_v27 = vpop.eup %3311  ;;  %3323 = vpow2.f32 %v2862_v22 }
 0x1a1   : > { %v3314_v38 = vpop.eup %3313  ;;  %v1696_v44 = vadd.f32 1.0, %v3312_v27  ;;  %3325 = vpow2.f32 %v2863_v26 }
 0x1a2   : > { %v3316_v55 = vpop.eup %3315  ;;  %v1697_v50 = vadd.f32 1.0, %v3314_v38 }
 0x1a3   : > { %v3318_v29 = vpop.eup %3317  ;;  %3327 = vrcp.f32 %v1696_v44  ;;  %v1700_v30 = vadd.f32 1.0, %v3316_v55  ;;  %v4196_v31 = vpop.f32.mrb[8].mxu1 }
 0x1a4   : > { %v4198_v33 = vpop.f32.mrb[8].mxu0  ;;  %3329 = vrcp.f32 %v1697_v50  ;;  %v1701_v34 = vadd.f32 1.0, %v3318_v29  ;;  %v2866_v49 = vmul.f32 -1.442695, %v4196_v31  ;;  %v4201_v54 = vpop.f32.mrb[9].mxu1 }
 0x1a5   : > { %v4203_v8 = vpop.f32.mrb[9].mxu0  ;;  %3331 = vrcp.f32 %v1700_v30  ;;  %v2867_v36 = vmul.f32 -1.442695, %v4201_v54  ;;  %v4206_v37 = vpop.f32.mrb[10].mxu1 }
 0x1a6   : > { %v4208_v40 = vpop.f32.mrb[10].mxu0  ;;  %3333 = vrcp.f32 %v1701_v34  ;;  %v2870_v41 = vmul.f32 -1.442695, %v4206_v37  ;;  %v4211_v42 = vpop.f32.mrb[11].mxu1 }
 0x1a7   : > { %v4213_v43 = vpop.f32.mrb[11].mxu0  ;;  %3335 = vpow2.f32 %v2866_v49  ;;  %v2871_v46 = vmul.f32 -1.442695, %v4211_v42 }
 0x1a8   : > { %v3320_v47 = vpop.eup %3319  ;;  %3337 = vpow2.f32 %v2867_v36 }
 0x1a9   : > { %v3322_v48 = vpop.eup %3321  ;;  %v1704_v51 = vadd.f32 1.0, %v3320_v47  ;;  %3339 = vpow2.f32 %v2870_v41 }
 0x1aa   : > { %v3324_v52 = vpop.eup %3323  ;;  %v1705_v53 = vadd.f32 1.0, %v3322_v48  ;;  %3341 = vpow2.f32 %v2871_v46 }
 0x1ab   : > { %v3326_v56 = vpop.eup %3325  ;;  %3343 = vrcp.f32 %v1704_v51  ;;  %v1708_v57 = vadd.f32 1.0, %v3324_v52  ;;  %v4216_v58 = vpop.f32.mrb[12].mxu1 }
 0x1ac   : > { %v4218_v59 = vpop.f32.mrb[12].mxu0  ;;  %3345 = vrcp.f32 %v1705_v53  ;;  %v1709_v60 = vadd.f32 1.0, %v3326_v56  ;;  %v2874_v61 = vmul.f32 -1.442695, %v4216_v58  ;;  %v4221_v62 = vpop.f32.mrb[13].mxu1 }
 0x1ad   : > { %v4223_v63 = vpop.f32.mrb[13].mxu0  ;;  %v3328_v0 = vpop.eup %3327  ;;  %3347 = vrcp.f32 %v1708_v57  ;;  %v2875_v1 = vmul.f32 -1.442695, %v4221_v62  ;;  %v3250_v57 = vld [vmem:[%s4461_s4 + $0x110] ss:$8 sps:$4 sm:$0xff]  }
 0x1ae   : > { %v4226_v2 = vpop.f32.mrb[14].mxu1  ;;  %v4228_v3 = vpop.f32.mrb[14].mxu0  ;;  %v1792_v5 = vmul.f32 %v3328_v0, %v4156_v7  ;;  %3349 = vrcp.f32 %v1709_v60 }
 0x1af   : > { %v3330_v4 = vpop.eup %3329  ;;  %v2878_v6 = vmul.f32 -1.442695, %v4226_v2  ;;  %v4232_v17 = vpop.f32.mrb[15].mxu1  ;;  %3351 = vpow2.f32 %v2874_v61 }
 0x1b0   : > { %v4234_v28 = vpop.f32.mrb[15].mxu0  ;;  %v3332_v18 = vpop.eup %3331  ;;  %v1793_v14 = vmul.f32 %v3330_v4, %v4161_v16  ;;  %v2879_v9 = vmul.f32 -1.442695, %v4232_v17  ;;  %v1824_v22 = vmul.f32 %v1792_v5, %v4158_v12  ;;  %3353 = vpow2.f32 %v2875_v1 }
 0x1b1   : > { %v3334_v15 = vpop.eup %3333  ;;  %v1796_v26 = vmul.f32 %v3332_v18, %v4166_v32  ;;  %3355 = vpow2.f32 %v2878_v6 }
 0x1b2   : > { %v3336_v7 = vpop.eup %3335  ;;  %v1825_v27 = vmul.f32 %v1793_v14, %v4163_v24  ;;  %v1797_v38 = vmul.f32 %v3334_v15, %v4171_v11  ;;  %3357 = vpow2.f32 %v2879_v9  ;;  %v3247_v11 = vld [vmem:[%s4461_s4 + $0x100] ss:$8 sps:$4 sm:$0xff]   ;;  %v3258_v14 = vld [vmem:[%s4461_s4 + $0x134] ss:$8 sps:$4 sm:$0xff]  }
 0x1b3   : > { %v3338_v44 = vpop.eup %3337  ;;  %v1828_v55 = vmul.f32 %v1796_v26, %v4168_v35  ;;  %v1712_v50 = vadd.f32 1.0, %v3336_v7 }
 0x1b4   : > { %v3340_v16 = vpop.eup %3339  ;;  %v1829_v29 = vmul.f32 %v1797_v38, %v4173_v13  ;;  %v1713_v30 = vadd.f32 1.0, %v3338_v44  ;;  %v3252_v13 = vld [vmem:[%s4461_s4 + $0x114] ss:$8 sps:$4 sm:$0xff]   ;;  %v3256_v38 = vld [vmem:[%s4461_s4 + $0x130] ss:$8 sps:$4 sm:$0xff]  }
 0x1b5   : > { %v3342_v34 = vpop.eup %3341  ;;  %v1856_v12 = vpack.c.bf16 %v1828_v55, %v1824_v22  ;;  %3359 = vrcp.f32 %v1712_v50  ;;  %v1716_v32 = vadd.f32 1.0, %v3340_v16 }
 0x1b6   : > { %v3344_v49 = vpop.eup %3343  ;;  %v1857_v36 = vpack.c.bf16 %v1829_v29, %v1825_v27  ;;  %3361 = vrcp.f32 %v1713_v30  ;;  %v1717_v24 = vadd.f32 1.0, %v3342_v34  ;;  %v3259_v29 = vld [vmem:[%s4461_s4 + $0x140] ss:$8 sps:$4 sm:$0xff]   ;;  %v3264_v30 = vld [vmem:[%s4461_s4 + $0x154] ss:$8 sps:$4 sm:$0xff]  }
 0x1b7   : > { %v3346_v41 = vpop.eup %3345  ;;  %v1800_v35 = vmul.f32 %v3344_v49, %v4176_v19  ;;  %3363 = vrcp.f32 %v1716_v32 }
 0x1b8   : > { %v3348_v46 = vpop.eup %3347  ;;  %v1801_v47 = vmul.f32 %v3346_v41, %v4181_v45  ;;  %3365 = vrcp.f32 %v1717_v24  ;;  %2304 = vmatprep.mubr.bf16.mxu0 %v1857_v36  ;;  %v3273_v41 = vld [vmem:[%s4461_s4 + $0x184] ss:$8 sps:$4 sm:$0xff]  }
 0x1b9   : > { %v3350_v48 = vpop.eup %3349  ;;  %v1804_v51 = vmul.f32 %v3348_v46, %v4186_v39  ;;  %v1832_v52 = vmul.f32 %v1800_v35, %v4178_v20  ;;  %2305 = vmatmul.mubr.bf16.vlgmr.msra.gmra.mrb[16].mxu0 %v1856_v12  ;;  %v3255_v20 = vld [vmem:[%s4461_s4 + $0x124] ss:$8 sps:$4 sm:$0xff]  }
 0x1ba   : > { %v3352_v53 = vpop.eup %3351  ;;  %v1805_v56 = vmul.f32 %v3350_v48, %v4191_v23  ;;  %v1833_v19 = vmul.f32 %v1801_v47, %v4183_v10  ;;  %2346 = vmatpush1.bf16.msra.mxu0 %v3247_v11  ;;  %v3271_v47 = vld [vmem:[%s4461_s4 + $0x180] ss:$8 sps:$4 sm:$0xff]   ;;  %v3276_v48 = vld [vmem:[%s4461_s4 + $0x194] ss:$8 sps:$4 sm:$0xff]  }
 0x1bb   : > { %v3354_v60 = vpop.eup %3353  ;;  %v1720_v45 = vadd.f32 1.0, %v3352_v53  ;;  %v1836_v61 = vmul.f32 %v1804_v51, %v4188_v21  ;;  %2347 = vmatprep.subr.bf16.mxu0 %v3252_v13  ;;  %v3253_v21 = vld [vmem:[%s4461_s4 + $0x120] ss:$8 sps:$4 sm:$0xff]   ;;  %v3274_v51 = vld [vmem:[%s4461_s4 + $0x190] ss:$8 sps:$4 sm:$0xff]  }
 0x1bc   : > { %v3356_v39 = vpop.eup %3355  ;;  %v1721_v0 = vadd.f32 1.0, %v3354_v60  ;;  %v1837_v23 = vmul.f32 %v1805_v56, %v4193_v25  ;;  %v3279_v53 = vld [vmem:[%s4461_s4 + $0x1a4] ss:$8 sps:$4 sm:$0xff]   ;;  %v3277_v60 = vld [vmem:[%s4461_s4 + $0x1a0] ss:$8 sps:$4 sm:$0xff]  }
 0x1bd   : > { %v3358_v1 = vpop.eup %3357  ;;  %3367 = vrcp.f32 %v1720_v45  ;;  %v1724_v10 = vadd.f32 1.0, %v3356_v39  ;;  %v1860_v4 = vpack.c.bf16 %v1836_v61, %v1832_v52  ;;  %v3282_v45 = vld [vmem:[%s4461_s4 + $0x1b4] ss:$8 sps:$4 sm:$0xff]   ;;  %v3280_v61 = vld [vmem:[%s4461_s4 + $0x1b0] ss:$8 sps:$4 sm:$0xff]  }
 0x1be   : > { %3369 = vrcp.f32 %v1721_v0  ;;  %v1725_v5 = vadd.f32 1.0, %v3358_v1  ;;  %v1861_v6 = vpack.c.bf16 %v1837_v23, %v1833_v19  ;;  %2348 = vmatpush1.bf16.msra.mxu0 %v3250_v57  ;;  %v3285_v39 = vld [vmem:[%s4461_s4 + $0x1c4] ss:$8 sps:$4 sm:$0xff]  }
 0x1bf   : > { %v3360_v18 = vpop.eup %3359  ;;  %3371 = vrcp.f32 %v1724_v10  ;;  %2349 = vmatprep.subr.bf16.mxu0 %v3255_v20  ;;  %v3283_v10 = vld [vmem:[%s4461_s4 + $0x1c0] ss:$8 sps:$4 sm:$0xff]  }
 0x1c0   : > { %v3362_v25 = vpop.eup %3361  ;;  %v1808_v9 = vmul.f32 %v3360_v18, %v4196_v31  ;;  %3373 = vrcp.f32 %v1725_v5  ;;  %2314 = vmatprep.mubr.bf16.mxu0 %v1861_v6  ;;  %v3286_v5 = vld [vmem:[%s4461_s4 + $0x1d0] ss:$8 sps:$4 sm:$0xff]  }
 0x1c1   : > { %v3364_v15 = vpop.eup %3363  ;;  %v1809_v22 = vmul.f32 %v3362_v25, %v4201_v54  ;;  %2315 = vmatmul.mubr.bf16.gmra.mrb[20].mxu0 %v1860_v4  ;;  %v3261_v54 = vld [vmem:[%s4461_s4 + $0x144] ss:$8 sps:$4 sm:$0xff]   ;;  %v3288_v4 = vld [vmem:[%s4461_s4 + $0x1d4] ss:$8 sps:$4 sm:$0xff]  }
 0x1c2   : > { %v3366_v26 = vpop.eup %3365  ;;  %v1812_v7 = vmul.f32 %v3364_v15, %v4206_v37  ;;  %v1840_v27 = vmul.f32 %v1808_v9, %v4198_v33  ;;  %2350 = vmatpush1.bf16.msra.mxu0 %v3253_v21  ;;  %v3291_v21 = vld [vmem:[%s4461_s4 + $0x1e4] ss:$8 sps:$4 sm:$0xff]  }
 0x1c3   : > { %v1813_v44 = vmul.f32 %v3366_v26, %v4211_v42  ;;  %v1841_v31 = vmul.f32 %v1809_v22, %v4203_v8  ;;  %2351 = vmatprep.subr.bf16.mxu0 %v3258_v14  ;;  %v3289_v26 = vld [vmem:[%s4461_s4 + $0x1e0] ss:$8 sps:$4 sm:$0xff]  }
 0x1c4   : > { %v1844_v55 = vmul.f32 %v1812_v7, %v4208_v40  ;;  %v3294_v7 = vld [vmem:[%s4461_s4 + $0x1f4] ss:$8 sps:$4 sm:$0xff]  }
 0x1c5   : > { %v1845_v37 = vmul.f32 %v1813_v44, %v4213_v43 }
 0x1c6   : > { %v1864_v50 = vpack.c.bf16 %v1844_v55, %v1840_v27  ;;  %2352 = vmatpush1.bf16.msra.mxu0 %v3256_v38  ;;  %v3292_v27 = vld [vmem:[%s4461_s4 + $0x1f0] ss:$8 sps:$4 sm:$0xff]  }
 0x1c7   : > { %v3368_v33 = vpop.eup %3367  ;;  %v1865_v16 = vpack.c.bf16 %v1845_v37, %v1841_v31  ;;  %2353 = vmatprep.subr.bf16.mxu0 %v3261_v54 }
 0x1c8   : > { %v3370_v42 = vpop.eup %3369  ;;  %v1816_v8 = vmul.f32 %v3368_v33, %v4216_v58  ;;  %v3262_v58 = vld [vmem:[%s4461_s4 + $0x150] ss:$8 sps:$4 sm:$0xff]  }
 0x1c9   : > { %v3372_v34 = vpop.eup %3371  ;;  %v1817_v40 = vmul.f32 %v3370_v42, %v4221_v62  ;;  %2324 = vmatprep.mubr.bf16.mxu0 %v1865_v16  ;;  %v3267_v62 = vld [vmem:[%s4461_s4 + $0x164] ss:$8 sps:$4 sm:$0xff]  }
 0x1ca   : > { %v3374_v43 = vpop.eup %3373  ;;  %v1820_v12 = vmul.f32 %v3372_v34, %v4226_v2  ;;  %v1848_v32 = vmul.f32 %v1816_v8, %v4218_v59  ;;  %2325 = vmatmul.mubr.bf16.gmra.mrb[24].mxu0 %v1864_v50 }
 0x1cb   : > { %v1821_v49 = vmul.f32 %v3374_v43, %v4232_v17  ;;  %v1849_v36 = vmul.f32 %v1817_v40, %v4223_v63  ;;  %2354 = vmatpush1.bf16.msra.mxu0 %v3259_v29  ;;  %v3265_v63 = vld [vmem:[%s4461_s4 + $0x160] ss:$8 sps:$4 sm:$0xff]   ;;  %v3270_v17 = vld [vmem:[%s4461_s4 + $0x174] ss:$8 sps:$4 sm:$0xff]  }
 0x1cc   : > { %v1852_v24 = vmul.f32 %v1820_v12, %v4228_v3  ;;  %2355 = vmatprep.subr.bf16.mxu0 %v3264_v30  ;;  %v3268_v3 = vld [vmem:[%s4461_s4 + $0x170] ss:$8 sps:$4 sm:$0xff]  }
 0x1cd   : > { %v1853_v2 = vmul.f32 %v1821_v49, %v4234_v28 }
 0x1ce   : > { %v1868_v59 = vpack.c.bf16 %v1852_v24, %v1848_v32 }
 0x1cf   : > { %v1869_v11 = vpack.c.bf16 %v1853_v2, %v1849_v36  ;;  %2356 = vmatpush1.bf16.msra.mxu0 %v3262_v58 }
 0x1d0   : > { %2357 = vmatprep.subr.bf16.mxu0 %v3267_v62 }
 0x1d1   : > { %2334 = vmatprep.mubr.bf16.mxu0 %v1869_v11 }
 0x1d2   : > { %2335 = vmatmul.mubr.bf16.gmra.mrb[28].mxu0 %v1868_v59 }
 0x1d3   : > { %2358 = vmatpush1.bf16.msra.mxu0 %v3265_v63  ;;  %v4313_v28 = vpop.f32.mrb[16].mxu1 }
 0x1d4   : > { %2359 = vmatprep.subr.bf16.mxu0 %v3270_v17  ;;  %v4318_v35 = vpop.f32.mrb[17].mxu1  ;;  %v2852_v18 = vmul.f32 -1.442695, %v4313_v28 }
 0x1d5   : > { %v4320_v13 = vpop.f32.mrb[18].mxu1  ;;  %v2853_v25 = vmul.f32 -1.442695, %v4318_v35 }
 0x1d6   : > { %v4322_v46 = vpop.f32.mrb[19].mxu1  ;;  %v2856_v15 = vmul.f32 -1.442695, %v4320_v13  ;;  %3375 = vpow2.f32 %v2852_v18 }
 0x1d7   : > { %2360 = vmatpush1.bf16.msra.mxu0 %v3268_v3  ;;  %3377 = vpow2.f32 %v2853_v25  ;;  %v2857_v38 = vmul.f32 -1.442695, %v4322_v46 }
 0x1d8   : > { %2361 = vmatprep.subr.bf16.mxu0 %v3273_v41  ;;  %3379 = vpow2.f32 %v2856_v15 }
 0x1d9   : > { %3381 = vpow2.f32 %v2857_v38 }
 0x1db   : > { %2362 = vmatpush1.bf16.msra.mxu0 %v3271_v47  ;;  %v4333_v52 = vpop.f32.mrb[20].mxu1 }
 0x1dc   : > { %2363 = vmatprep.subr.bf16.mxu0 %v3276_v48  ;;  %v4338_v56 = vpop.f32.mrb[21].mxu1  ;;  %v2860_v44 = vmul.f32 -1.442695, %v4333_v52 }
 0x1dd   : > { %v4340_v19 = vpop.f32.mrb[22].mxu1  ;;  %v2861_v31 = vmul.f32 -1.442695, %v4338_v56 }
 0x1de   : > { %v4342_v57 = vpop.f32.mrb[23].mxu1  ;;  %v2864_v54 = vmul.f32 -1.442695, %v4340_v19  ;;  %3383 = vpow2.f32 %v2860_v44 }
 0x1df   : > { %2364 = vmatpush1.bf16.msra.mxu0 %v3274_v51  ;;  %3385 = vpow2.f32 %v2861_v31  ;;  %v2865_v50 = vmul.f32 -1.442695, %v4342_v57 }
 0x1e0   : > { %2365 = vmatprep.subr.bf16.mxu0 %v3279_v53  ;;  %v3376_v55 = vpop.eup %3375  ;;  %3387 = vpow2.f32 %v2864_v54 }
 0x1e1   : > { %v3378_v37 = vpop.eup %3377  ;;  %v1698_v16 = vadd.f32 1.0, %v3376_v55  ;;  %3389 = vpow2.f32 %v2865_v50 }
 0x1e2   : > { %v3380_v33 = vpop.eup %3379  ;;  %v1699_v29 = vadd.f32 1.0, %v3378_v37 }
 0x1e3   : > { %2366 = vmatpush1.bf16.msra.mxu0 %v3277_v60  ;;  %v4353_v20 = vpop.f32.mrb[24].mxu1  ;;  %v1702_v42 = vadd.f32 1.0, %v3380_v33  ;;  %v3382_v30 = vpop.eup %3381  ;;  %3391 = vrcp.f32 %v1698_v16 }
 0x1e4   : > { %2367 = vmatprep.subr.bf16.mxu0 %v3282_v45  ;;  %v4358_v0 = vpop.f32.mrb[25].mxu1  ;;  %v2868_v8 = vmul.f32 -1.442695, %v4353_v20  ;;  %3393 = vrcp.f32 %v1699_v29  ;;  %v1703_v36 = vadd.f32 1.0, %v3382_v30 }
 0x1e5   : > { %v4360_v23 = vpop.f32.mrb[26].mxu1  ;;  %v2869_v34 = vmul.f32 -1.442695, %v4358_v0  ;;  %3395 = vrcp.f32 %v1702_v42 }
 0x1e6   : > { %v4362_v1 = vpop.f32.mrb[27].mxu1  ;;  %v2872_v43 = vmul.f32 -1.442695, %v4360_v23  ;;  %3397 = vpow2.f32 %v2868_v8 }
 0x1e7   : > { %2368 = vmatpush1.bf16.msra.mxu0 %v3280_v61  ;;  %v2873_v32 = vmul.f32 -1.442695, %v4362_v1  ;;  %3399 = vpow2.f32 %v2869_v34 }
 0x1e8   : > { %2369 = vmatprep.subr.bf16.mxu0 %v3285_v39  ;;  %v3384_v40 = vpop.eup %3383  ;;  %3401 = vpow2.f32 %v2872_v43 }
 0x1e9   : > { %v3386_v12 = vpop.eup %3385  ;;  %v1706_v58 = vadd.f32 1.0, %v3384_v40  ;;  %3403 = vpow2.f32 %v2873_v32 }
 0x1ea   : > { %v3388_v49 = vpop.eup %3387  ;;  %v1707_v24 = vadd.f32 1.0, %v3386_v12  ;;  %3405 = vrcp.f32 %v1703_v36 }
 0x1eb   : > { %2370 = vmatpush1.bf16.msra.mxu0 %v3283_v10  ;;  %v4373_v6 = vpop.f32.mrb[28].mxu1  ;;  %v1710_v62 = vadd.f32 1.0, %v3388_v49  ;;  %v3390_v59 = vpop.eup %3389  ;;  %3407 = vrcp.f32 %v1706_v58 }
 0x1ec   : > { %2371 = vmatprep.subr.bf16.mxu0 %v3288_v4  ;;  %v4379_v14 = vpop.f32.mrb[29].mxu1  ;;  %v2876_v2 = vmul.f32 -1.442695, %v4373_v6  ;;  %3409 = vrcp.f32 %v1707_v24  ;;  %v1711_v47 = vadd.f32 1.0, %v3390_v59 }
 0x1ed   : > { %v4382_v9 = vpop.f32.mrb[30].mxu1  ;;  %v2877_v11 = vmul.f32 -1.442695, %v4379_v14  ;;  %v3392_v17 = vpop.eup %3391  ;;  %3411 = vrcp.f32 %v1710_v62 }
 0x1ee   : > { %v4385_v22 = vpop.f32.mrb[31].mxu1  ;;  %v2880_v63 = vmul.f32 -1.442695, %v4382_v9  ;;  %v3394_v41 = vpop.eup %3393  ;;  %3413 = vpow2.f32 %v2876_v2  ;;  %v1794_v10 = vmul.f32 %v3392_v17, %v4313_v28 }
 0x1ef   : > { %2372 = vmatpush1.bf16.msra.mxu0 %v3286_v5  ;;  %v2881_v3 = vmul.f32 -1.442695, %v4385_v22  ;;  %v3396_v48 = vpop.eup %3395  ;;  %3415 = vpow2.f32 %v2877_v11 }
 0x1f0   : > { %2373 = vmatprep.subr.bf16.mxu0 %v3291_v21  ;;  %v3398_v51 = vpop.eup %3397  ;;  %3417 = vpow2.f32 %v2880_v63  ;;  %v1795_v21 = vmul.f32 %v3394_v41, %v4318_v35 }
 0x1f1   : > { %v3400_v53 = vpop.eup %3399  ;;  %3419 = vpow2.f32 %v2881_v3  ;;  %v1714_v61 = vadd.f32 1.0, %v3398_v51 }
 0x1f2   : > { %v3402_v60 = vpop.eup %3401  ;;  %3421 = vrcp.f32 %v1711_v47  ;;  %v1715_v4 = vadd.f32 1.0, %v3400_v53 }
 0x1f3   : > { %2374 = vmatpush1.bf16.msra.mxu0 %v3289_v26  ;;  %v3404_v45 = vpop.eup %3403  ;;  %v1718_v18 = vadd.f32 1.0, %v3402_v60  ;;  %v1798_v26 = vmul.f32 %v3396_v48, %v4320_v13  ;;  %3423 = vrcp.f32 %v1714_v61 }
 0x1f4   : > { %2375 = vmatprep.subr.bf16.mxu0 %v3294_v7  ;;  %v3406_v39 = vpop.eup %3405  ;;  %v1719_v7 = vadd.f32 1.0, %v3404_v45  ;;  %3425 = vrcp.f32 %v1715_v4 }
 0x1f5   : > { %v3408_v5 = vpop.eup %3407  ;;  %v1799_v31 = vmul.f32 %v3406_v39, %v4322_v46  ;;  %3427 = vrcp.f32 %v1718_v18 }
 0x1f6   : > { %v3410_v15 = vpop.eup %3409  ;;  %3429 = vrcp.f32 %v1719_v7  ;;  %v1802_v34 = vmul.f32 %v3408_v5, %v4333_v52 }
 0x1f7   : > { %2376 = vmatpush1.bf16.msra.mxu0 %v3292_v27  ;;  %v3412_v44 = vpop.eup %3411  ;;  %v1803_v40 = vmul.f32 %v3410_v15, %v4338_v56 }
 0x1f8   : > { %v3414_v37 = vpop.eup %3413  ;;  %v1806_v32 = vmul.f32 %v3412_v44, %v4340_v19 }
 0x1f9   : > { %v3416_v33 = vpop.eup %3415  ;;  %v1722_v42 = vadd.f32 1.0, %v3414_v37 }
 0x1fa   : > { %v3418_v16 = vpop.eup %3417  ;;  %v1723_v46 = vadd.f32 1.0, %v3416_v33  ;;  %v2454_v33 = vld [vmem:[%s3541_s14 + $0x8] sm:$0xff] }
 0x1fb   : > { %v3420_v13 = vpop.eup %3419  ;;  %v1726_v43 = vadd.f32 1.0, %v3418_v16  ;;  %3431 = vrcp.f32 %v1722_v42  ;;  %v2463_v16 = vunpack.c.l.bf16 %v2454_v33 }
 0x1fc   : > { %v3422_v30 = vpop.eup %3421  ;;  %v1727_v49 = vadd.f32 1.0, %v3420_v13  ;;  %3433 = vrcp.f32 %v1723_v46  ;;  %v2464_v13 = vunpack.c.h.bf16 %v2454_v33 }
 0x1fd   : > { %v1807_v24 = vmul.f32 %v3422_v30, %v4342_v57  ;;  %v3424_v11 = vpop.eup %3423  ;;  %3435 = vrcp.f32 %v1726_v43 }
 0x1fe   : > { %v3426_v63 = vpop.eup %3425  ;;  %3437 = vrcp.f32 %v1727_v49  ;;  %v1810_v47 = vmul.f32 %v3424_v11, %v4353_v20 }
 0x1ff   : > { %v3428_v3 = vpop.eup %3427  ;;  %v1811_v48 = vmul.f32 %v3426_v63, %v4358_v0  ;;  %v2457_v63 = vld [vmem:[%s3541_s14 + $0x20] sm:$0xff] }
 0x200   : > { %v3430_v41 = vpop.eup %3429  ;;  %v1814_v51 = vmul.f32 %v3428_v3, %v4360_v23 }
 0x201   : > { %v1815_v45 = vmul.f32 %v3430_v41, %v4362_v1 }
 0x205   : > { %v3432_v5 = vpop.eup %3431 }
 0x206   : > { %v3434_v18 = vpop.eup %3433 }
 0x207   : > { %v3436_v20 = vpop.eup %3435  ;;  %v1819_v23 = vmul.f32 %v3434_v18, %v4379_v14 }
 0x208   : > { %v3438_v0 = vpop.eup %3437  ;;  %v1822_v1 = vmul.f32 %v3436_v20, %v4382_v9 }
 0x209   : > { %v1823_v44 = vmul.f32 %v3438_v0, %v4385_v22 }
 0x213   : > { %v1561_v25 = vpop.f32.mrb[32].mxu1 }
 0x214   : > { %v1826_v27 = vmul.f32 %v1794_v10, %v1561_v25  ;;  %v1563_v38 = vpop.f32.mrb[33].mxu1 }
 0x215   : > { %v1827_v54 = vmul.f32 %v1795_v21, %v1563_v38  ;;  %v1565_v55 = vpop.f32.mrb[34].mxu1 }
 0x216   : > { %v1830_v28 = vmul.f32 %v1798_v26, %v1565_v55  ;;  %v1567_v50 = vpop.f32.mrb[35].mxu1  ;;  %v1818_v26 = vmul.f32 %v3432_v5, %v4373_v6  ;;  %v2459_v5 = vld [vmem:[%s3541_s14 + $0x30] sm:$0xff] }
 0x217   : > { %v1831_v35 = vmul.f32 %v1799_v31, %v1567_v50  ;;  %v2453_v50 = vld [vmem:[%s3541_s14] sm:$0xff]  ;;  %v2473_v0 = vunpack.c.l.bf16 %v2459_v5 }
 0x218   : > { %v1858_v29 = vpack.c.bf16 %v1830_v28, %v1826_v27  ;;  %v2461_v9 = vunpack.c.l.bf16 %v2453_v50 }
 0x219   : > { %v1859_v8 = vpack.c.bf16 %v1831_v35, %v1827_v54  ;;  %v2462_v35 = vunpack.c.h.bf16 %v2453_v50 }
 0x21b   : > { %v1571_v12 = vpop.f32.mrb[36].mxu1  ;;  %2377 = vmatprep.mubr.bf16.mxu0 %v1859_v8 }
 0x21c   : > { %v1834_v36 = vmul.f32 %v1802_v34, %v1571_v12  ;;  %v1573_v58 = vpop.f32.mrb[37].mxu1  ;;  %2378 = vmatmul.mubr.bf16.vlgmr.msra.gmra.mrb[16].mxu0 %v1858_v29  ;;  %v2455_v34 = vld [vmem:[%s3541_s14 + $0x10] sm:$0xff] }
 0x21d   : > { %v1835_v62 = vmul.f32 %v1803_v40, %v1573_v58  ;;  %v1575_v2 = vpop.f32.mrb[38].mxu1  ;;  %v2465_v49 = vunpack.c.l.bf16 %v2455_v34  ;;  %v2466_v58 = vunpack.c.h.bf16 %v2455_v34 }
 0x21e   : > { %v1838_v59 = vmul.f32 %v1806_v32, %v1575_v2  ;;  %v1577_v52 = vpop.f32.mrb[39].mxu1  ;;  %v2456_v32 = vld [vmem:[%s3541_s14 + $0x18] sm:$0xff] }
 0x21f   : > { %v1839_v56 = vmul.f32 %v1807_v24, %v1577_v52  ;;  %v2467_v24 = vunpack.c.l.bf16 %v2456_v32  ;;  %v2468_v2 = vunpack.c.h.bf16 %v2456_v32 }
 0x220   : > { %v1862_v17 = vpack.c.bf16 %v1838_v59, %v1834_v36 }
 0x221   : > { %v1863_v19 = vpack.c.bf16 %v1839_v56, %v1835_v62 }
 0x223   : > { %v1581_v57 = vpop.f32.mrb[40].mxu1  ;;  %2387 = vmatprep.mubr.bf16.mxu0 %v1863_v19 }
 0x224   : > { %v1842_v53 = vmul.f32 %v1810_v47, %v1581_v57  ;;  %v1583_v60 = vpop.f32.mrb[41].mxu1  ;;  %2388 = vmatmul.mubr.bf16.gmra.mrb[20].mxu0 %v1862_v17  ;;  %v2458_v47 = vld [vmem:[%s3541_s14 + $0x28] sm:$0xff] }
 0x225   : > { %v1843_v61 = vmul.f32 %v1811_v48, %v1583_v60  ;;  %v1585_v39 = vpop.f32.mrb[42].mxu1  ;;  %v2469_v48 = vunpack.c.l.bf16 %v2457_v63 }
 0x226   : > { %v1846_v10 = vmul.f32 %v1814_v51, %v1585_v39  ;;  %v1587_v4 = vpop.f32.mrb[43].mxu1  ;;  %v2470_v51 = vunpack.c.h.bf16 %v2457_v63 }
 0x227   : > { %v1847_v21 = vmul.f32 %v1815_v45, %v1587_v4  ;;  %v2472_v45 = vunpack.c.h.bf16 %v2458_v47 }
 0x228   : > { %v1866_v25 = vpack.c.bf16 %v1846_v10, %v1842_v53  ;;  %v2471_v53 = vunpack.c.l.bf16 %v2458_v47 }
 0x229   : > { %v1867_v15 = vpack.c.bf16 %v1847_v21, %v1843_v61 }
 0x22b   : > { %v1591_v7 = vpop.f32.mrb[44].mxu1  ;;  %2397 = vmatprep.mubr.bf16.mxu0 %v1867_v15  ;;  %v2460_v15 = vld [vmem:[%s3541_s14 + $0x38] sm:$0xff] }
 0x22c   : > { %v1850_v27 = vmul.f32 %v1818_v26, %v1591_v7  ;;  %v1593_v38 = vpop.f32.mrb[45].mxu1  ;;  %2398 = vmatmul.mubr.bf16.gmra.mrb[24].mxu0 %v1866_v25  ;;  %v2475_v7 = vunpack.c.l.bf16 %v2460_v15 }
 0x22d   : > { %v1851_v31 = vmul.f32 %v1819_v23, %v1593_v38  ;;  %v1595_v54 = vpop.f32.mrb[46].mxu1  ;;  %v2474_v23 = vunpack.c.h.bf16 %v2459_v5 }
 0x22e   : > { %v1854_v55 = vmul.f32 %v1822_v1, %v1595_v54  ;;  %v1597_v37 = vpop.f32.mrb[47].mxu1 }
 0x22f   : > { %v1855_v28 = vmul.f32 %v1823_v44, %v1597_v37 }
 0x230   : > { %v1870_v6 = vpack.c.bf16 %v1854_v55, %v1850_v27  ;;  %v2476_v27 = vunpack.c.h.bf16 %v2460_v15 }
 0x231   : > { %v1871_v14 = vpack.c.bf16 %v1855_v28, %v1851_v31 }
 0x233   : > { %2407 = vmatprep.mubr.bf16.mxu0 %v1871_v14 }
 0x234   : > { %2408 = vmatmul.mubr.bf16.gmra.mrb[28].mxu0 %v1870_v6 }
 0x2ef   : > { %v2379_v29 = vpop.f32.mrb[16].mxu0 }
 0x2f0   : > { %v2493_v22 = vadd.f32 %v2461_v9, %v2379_v29  ;;  %v2381_v42 = vpop.f32.mrb[17].mxu0 }
 0x2f1   : > { %v2494_v8 = vadd.f32 %v2462_v35, %v2381_v42  ;;  %v2383_v30 = vpop.f32.mrb[18].mxu0 }
 0x2f2   : > { %v2495_v46 = vadd.f32 %v2463_v16, %v2383_v30  ;;  %v2385_v40 = vpop.f32.mrb[19].mxu0 }
 0x2f3   : > { %v2958_v43 = vpack.c.bf16 %v2494_v8, %v2493_v22  ;;  %v2496_v12 = vadd.f32 %v2464_v13, %v2385_v40 }
 0x2f5   : > { %2557 = vst [vmem:[%s4433_s7] sm:$0xff] %v2958_v43  ;;  %v2959_v36 = vpack.c.bf16 %v2496_v12, %v2495_v46 }
 0x2f7   : > { %2558 = vst [vmem:[%s4433_s7 + $0x8] sm:$0xff] %v2959_v36  ;;  %v2389_v62 = vpop.f32.mrb[20].mxu0 }
 0x2f8   : > { %v2497_v59 = vadd.f32 %v2465_v49, %v2389_v62  ;;  %v2391_v52 = vpop.f32.mrb[21].mxu0 }
 0x2f9   : > { %v2498_v11 = vadd.f32 %v2466_v58, %v2391_v52  ;;  %v2393_v56 = vpop.f32.mrb[22].mxu0 }
 0x2fa   : > { %v2499_v17 = vadd.f32 %v2467_v24, %v2393_v56  ;;  %v2395_v3 = vpop.f32.mrb[23].mxu0 }
 0x2fb   : > { %v2960_v19 = vpack.c.bf16 %v2498_v11, %v2497_v59  ;;  %v2500_v41 = vadd.f32 %v2468_v2, %v2395_v3 }
 0x2fd   : > { %2559 = vst [vmem:[%s4433_s7 + $0x10] sm:$0xff] %v2960_v19  ;;  %v2961_v57 = vpack.c.bf16 %v2500_v41, %v2499_v17 }
 0x2ff   : > { %2560 = vst [vmem:[%s4433_s7 + $0x18] sm:$0xff] %v2961_v57  ;;  %v2399_v60 = vpop.f32.mrb[24].mxu0 }
 0x300   : > { %v2501_v61 = vadd.f32 %v2469_v48, %v2399_v60  ;;  %v2401_v39 = vpop.f32.mrb[25].mxu0 }
 0x301   : > { %v2502_v10 = vadd.f32 %v2470_v51, %v2401_v39  ;;  %v2403_v4 = vpop.f32.mrb[26].mxu0 }
 0x302   : > { %v2503_v21 = vadd.f32 %v2471_v53, %v2403_v4  ;;  %v2405_v18 = vpop.f32.mrb[27].mxu0 }
 0x303   : > { %v2962_v25 = vpack.c.bf16 %v2502_v10, %v2501_v61  ;;  %v2504_v20 = vadd.f32 %v2472_v45, %v2405_v18 }
 0x305   : > { %2561 = vst [vmem:[%s4433_s7 + $0x20] sm:$0xff] %v2962_v25  ;;  %v2963_v26 = vpack.c.bf16 %v2504_v20, %v2503_v21 }
 0x307   : > { %2562 = vst [vmem:[%s4433_s7 + $0x28] sm:$0xff] %v2963_v26  ;;  %v2409_v1 = vpop.f32.mrb[28].mxu0 }
 0x308   : > { %v2505_v38 = vadd.f32 %v2473_v0, %v2409_v1  ;;  %v2411_v44 = vpop.f32.mrb[29].mxu0 }
 0x309   : > { %v2506_v31 = vadd.f32 %v2474_v23, %v2411_v44  ;;  %v2413_v54 = vpop.f32.mrb[30].mxu0 }
 0x30a   : > { %v2507_v55 = vadd.f32 %v2475_v7, %v2413_v54  ;;  %v2415_v37 = vpop.f32.mrb[31].mxu0 }
 0x30b   : > { %v2964_v28 = vpack.c.bf16 %v2506_v31, %v2505_v38  ;;  %v2508_v6 = vadd.f32 %v2476_v27, %v2415_v37 }
 0x30d   : > { %2563 = vst [vmem:[%s4433_s7 + $0x30] sm:$0xff] %v2964_v28  ;;  %v2965_v14 = vpack.c.bf16 %v2508_v6, %v2507_v55 }
 0x30f   : > { %2564 = vst [vmem:[%s4433_s7 + $0x38] sm:$0xff] %v2965_v14 }
 0x310 PF: > { %s15_s20 = sadd.s32 1, %s3461_s20   ;;  %s4463_s18 = smov %s3457_s19 }
 0x311   : > { %p12_p5 = scmp.ge.s32.totalorder %s15_s20, 4   ;;  %s4464_s19 = smov %s4466_s21 }
 0x313   :  { %14 = sbr.rel (!%p12_p5) target bundleno = 2 (0x2), region = 87 }

// kernel: context_embd_forward.13
= control target key start
LH: loop header
LB: loop body
LE: loop exit
PB: predicated region body
PF: predicated region fallthrough
CT: control target
= control target key end

     0   :  { %s979_s0 = inlined_call_operand.vmem [shape: bf16[64,256], index: 0, kind: input, shape index: {}]   ;;  %s980_s1 = inlined_call_operand.vmem [shape: bf16[1,256], index: 1, kind: input, shape index: {}]   ;;  %s981_s2 = inlined_call_operand.vmem [shape: bf16[256,256], index: 2, kind: input, shape index: {}]   ;;  %s982_s3 = inlined_call_operand.vmem [shape: bf16[1,256], index: 3, kind: input, shape index: {}]   ;;  %s983_s4 = inlined_call_operand.hbm [shape: bf16[64,256], index: 4, kind: output, shape index: {}]  }
   0x1   :  { %v22_v0 = vld [vmem:[%s979_s0 + $0x20] sm:$0xff]  ;;  %v23_v2 = vld [vmem:[%s979_s0 + $0x28] sm:$0xff]  ;;  %v21_v8 = vld [vmem:[%s979_s0 + $0x18] sm:$0xff] }
   0x2   :  { %v18_v1 = vld [vmem:[%s979_s0] sm:$0xff]  ;;  %v746_v3 = vunpack.c.l.bf16 %v22_v0  ;;  %v748_v4 = vunpack.c.h.bf16 %v22_v0  ;;  %v19_v7 = vld [vmem:[%s979_s0 + $0x8] sm:$0xff]  ;;  %v760_v9 = vunpack.c.l.bf16 %v23_v2  ;;  %v762_v10 = vunpack.c.h.bf16 %v23_v2  ;;  %v20_v13 = vld [vmem:[%s979_s0 + $0x10] sm:$0xff] }
   0x3   :  { %v750_v5 = vunpack.c.l.bf16 %v18_v1  ;;  %v752_v6 = vunpack.c.h.bf16 %v18_v1  ;;  %v764_v11 = vunpack.c.l.bf16 %v19_v7  ;;  %v766_v12 = vunpack.c.h.bf16 %v19_v7  ;;  %v25_v14 = vld [vmem:[%s979_s0 + $0x38] sm:$0xff]  ;;  %v620_v19 = vld [vmem:[%s981_s2 + $0x4] ss:$8 sps:$4 sm:$0xff]   ;;  %v622_v20 = vld [vmem:[%s981_s2] ss:$8 sps:$4 sm:$0xff]  }
   0x4   :  { %v50_v15 = vmul.f32 %v746_v3, %v746_v3  ;;  %v51_v16 = vmul.f32 %v748_v4, %v748_v4  ;;  %v52_v21 = vmul.f32 %v760_v9, %v760_v9  ;;  %v53_v22 = vmul.f32 %v762_v10, %v762_v10  ;;  %v623_v25 = vld [vmem:[%s981_s2 + $0x14] ss:$8 sps:$4 sm:$0xff]   ;;  %390 = vmatprep.subr.bf16.mxu0 %v620_v19  ;;  %v625_v35 = vld [vmem:[%s981_s2 + $0x10] ss:$8 sps:$4 sm:$0xff]   ;;  %v626_v44 = vld [vmem:[%s981_s2 + $0x24] ss:$8 sps:$4 sm:$0xff]  }
   0x5   :  { %v42_v17 = vmul.f32 %v750_v5, %v750_v5  ;;  %v43_v18 = vmul.f32 %v752_v6, %v752_v6  ;;  %v44_v23 = vmul.f32 %v764_v11, %v764_v11  ;;  %v45_v24 = vmul.f32 %v766_v12, %v766_v12  ;;  %v24_v30 = vld [vmem:[%s979_s0 + $0x30] sm:$0xff]  ;;  %584 = vmatprep.subr.bf16.mxu1 %v620_v19  ;;  %v628_v48 = vld [vmem:[%s981_s2 + $0x20] ss:$8 sps:$4 sm:$0xff]   ;;  %v632_v56 = vld [vmem:[%s981_s2 + $0x44] ss:$8 sps:$4 sm:$0xff]  }
   0x6   :  { %v70_v26 = vadd.f32 %v51_v16, %v50_v15  ;;  %v799_v28 = vunpack.c.l.bf16 %v21_v8  ;;  %v801_v29 = vunpack.c.h.bf16 %v21_v8  ;;  %v73_v31 = vadd.f32 %v53_v22, %v52_v21  ;;  %391 = vmatpush1.bf16.msra.mxu0 %v622_v20  ;;  %600 = vmatpush1.bf16.msra.mxu1 %v622_v20  ;;  %v629_v52 = vld [vmem:[%s981_s2 + $0x34] ss:$8 sps:$4 sm:$0xff]   ;;  %v631_v53 = vld [vmem:[%s981_s2 + $0x30] ss:$8 sps:$4 sm:$0xff]   ;;  %v634_v57 = vld [vmem:[%s981_s2 + $0x40] ss:$8 sps:$4 sm:$0xff]  }
   0x7   :  { %v58_v27 = vadd.f32 %v43_v18, %v42_v17  ;;  %v61_v32 = vadd.f32 %v45_v24, %v44_v23  ;;  %v806_v33 = vunpack.c.l.bf16 %v20_v13  ;;  %v808_v34 = vunpack.c.h.bf16 %v20_v13  ;;  %392 = vmatprep.subr.bf16.mxu0 %v623_v25  ;;  %585 = vmatprep.subr.bf16.mxu1 %v623_v25  ;;  %v635_v58 = vld [vmem:[%s981_s2 + $0x54] ss:$8 sps:$4 sm:$0xff]  }
   0x8   :  { %71 = vadd.xlane.f32.xlu1 %v70_v26  ;;  %v48_v36 = vmul.f32 %v799_v28, %v799_v28  ;;  %v49_v37 = vmul.f32 %v801_v29, %v801_v29  ;;  %v817_v38 = vunpack.c.l.bf16 %v25_v14  ;;  %v819_v39 = vunpack.c.h.bf16 %v25_v14 }
   0x9   :  { %59 = vadd.xlane.f32.xlu0 %v58_v27  ;;  %v46_v40 = vmul.f32 %v806_v33, %v806_v33  ;;  %v47_v41 = vmul.f32 %v808_v34, %v808_v34  ;;  %v825_v42 = vunpack.c.l.bf16 %v24_v30  ;;  %v827_v43 = vunpack.c.h.bf16 %v24_v30 }
   0xa   :  { %v67_v45 = vadd.f32 %v49_v37, %v48_v36  ;;  %v56_v46 = vmul.f32 %v817_v38, %v817_v38  ;;  %v57_v47 = vmul.f32 %v819_v39, %v819_v39  ;;  %393 = vmatpush1.bf16.msra.mxu0 %v625_v35  ;;  %601 = vmatpush1.bf16.msra.mxu1 %v625_v35 }
   0xb   :  { %v64_v49 = vadd.f32 %v47_v41, %v46_v40  ;;  %v54_v50 = vmul.f32 %v825_v42, %v825_v42  ;;  %v55_v51 = vmul.f32 %v827_v43, %v827_v43  ;;  %394 = vmatprep.subr.bf16.mxu0 %v626_v44  ;;  %586 = vmatprep.subr.bf16.mxu1 %v626_v44 }
   0xc   :  { %74 = vadd.xlane.f32.xlu1 %v73_v31  ;;  %v79_v54 = vadd.f32 %v57_v47, %v56_v46 }
   0xd   :  { %62 = vadd.xlane.f32.xlu0 %v61_v32  ;;  %v76_v55 = vadd.f32 %v55_v51, %v54_v50 }
   0xe   :  { %395 = vmatpush1.bf16.msra.mxu0 %v628_v48  ;;  %602 = vmatpush1.bf16.msra.mxu1 %v628_v48 }
   0xf   :  { %396 = vmatprep.subr.bf16.mxu0 %v629_v52  ;;  %587 = vmatprep.subr.bf16.mxu1 %v629_v52 }
  0x10   :  { %68 = vadd.xlane.f32.xlu1 %v67_v45 }
  0x11   :  { %65 = vadd.xlane.f32.xlu0 %v64_v49 }
  0x12   :  { %397 = vmatpush1.bf16.msra.mxu0 %v631_v53  ;;  %603 = vmatpush1.bf16.msra.mxu1 %v631_v53 }
  0x13   :  { %398 = vmatprep.subr.bf16.mxu0 %v632_v56  ;;  %588 = vmatprep.subr.bf16.mxu1 %v632_v56 }
  0x14   :  { %80 = vadd.xlane.f32.xlu1 %v79_v54 }
  0x15   :  { %77 = vadd.xlane.f32.xlu0 %v76_v55 }
  0x16   :  { %9 = vsyncpa [#allocation3], 0  ;;  %399 = vmatpush1.bf16.msra.mxu0 %v634_v57  ;;  %604 = vmatpush1.bf16.msra.mxu1 %v634_v57  ;;  %v637_v59 = vld [vmem:[%s981_s2 + $0x50] ss:$8 sps:$4 sm:$0xff]   ;;  %v638_v60 = vld [vmem:[%s981_s2 + $0x64] ss:$8 sps:$4 sm:$0xff]   ;;  %v144_v13 = vlaneseq }
  0x17   :  { %400 = vmatprep.subr.bf16.mxu0 %v635_v58  ;;  %589 = vmatprep.subr.bf16.mxu1 %v635_v58  ;;  %v640_v61 = vld [vmem:[%s981_s2 + $0x60] ss:$8 sps:$4 sm:$0xff]   ;;  %v641_v62 = vld [vmem:[%s981_s2 + $0x74] ss:$8 sps:$4 sm:$0xff]   ;;  %v643_v63 = vld [vmem:[%s981_s2 + $0x70] ss:$8 sps:$4 sm:$0xff]  }
  0x18   :  { %v644_v0 = vld [vmem:[%s981_s2 + $0x84] ss:$8 sps:$4 sm:$0xff]   ;;  %v646_v1 = vld [vmem:[%s981_s2 + $0x80] ss:$8 sps:$4 sm:$0xff]   ;;  %v647_v2 = vld [vmem:[%s981_s2 + $0x94] ss:$8 sps:$4 sm:$0xff]  }
  0x19   :  { %v649_v7 = vld [vmem:[%s981_s2 + $0x90] ss:$8 sps:$4 sm:$0xff]   ;;  %v650_v8 = vld [vmem:[%s981_s2 + $0xa4] ss:$8 sps:$4 sm:$0xff]   ;;  %v652_v14 = vld [vmem:[%s981_s2 + $0xa0] ss:$8 sps:$4 sm:$0xff]  }
  0x1a   :  { %401 = vmatpush1.bf16.msra.mxu0 %v637_v59  ;;  %605 = vmatpush1.bf16.msra.mxu1 %v637_v59  ;;  %v653_v15 = vld [vmem:[%s981_s2 + $0xb4] ss:$8 sps:$4 sm:$0xff]   ;;  %v145_v16 = vshrl.u32 %v144_v13, 7  ;;  %v897_v17 = vld [vmem:[%s982_s3] sm:$0x3] }
  0x1b   :  { %402 = vmatprep.subr.bf16.mxu0 %v638_v60  ;;  %590 = vmatprep.subr.bf16.mxu1 %v638_v60  ;;  %v655_v19 = vld [vmem:[%s981_s2 + $0xb0] ss:$8 sps:$4 sm:$0xff]   ;;  %v210_v20 = vunpack.c.l.bf16 %v897_v17  ;;  %v656_v21 = vld [vmem:[%s981_s2 + $0xc4] ss:$8 sps:$4 sm:$0xff]   ;;  %v658_v24 = vld [vmem:[%s981_s2 + $0xc0] ss:$8 sps:$4 sm:$0xff]  }
  0x1c   :  { %v218_v18 = vsub.s32 2, %v145_v16  ;;  %v906_v22 = vsub.s32 0, %v145_v16  ;;  %v659_v26 = vld [vmem:[%s981_s2 + $0xd4] ss:$8 sps:$4 sm:$0xff]   ;;  %v661_v27 = vld [vmem:[%s981_s2 + $0xd0] ss:$8 sps:$4 sm:$0xff]  }
  0x1d   :  { %v662_v30 = vld [vmem:[%s981_s2 + $0xe4] ss:$8 sps:$4 sm:$0xff]   ;;  %v664_v31 = vld [vmem:[%s981_s2 + $0xe0] ss:$8 sps:$4 sm:$0xff]   ;;  %v665_v32 = vld [vmem:[%s981_s2 + $0xf4] ss:$8 sps:$4 sm:$0xff]  }
  0x1e   :  { %403 = vmatpush1.bf16.msra.mxu0 %v640_v61  ;;  %606 = vmatpush1.bf16.msra.mxu1 %v640_v61  ;;  %v219_v23 = vrot.slane %v210_v20, %v218_v18  ;;  %v667_v35 = vld [vmem:[%s981_s2 + $0xf0] ss:$8 sps:$4 sm:$0xff]   ;;  %v708_v36 = vmov 1966171168  }
  0x1f   :  { %404 = vmatprep.subr.bf16.mxu0 %v641_v62  ;;  %591 = vmatprep.subr.bf16.mxu1 %v641_v62  ;;  %v142_v37 = vunpack.c.l.s4 %v708_v36  ;;  %v535_v47 = vld.sshfl [vmem:[%s980_s1] sm:$0x11 pattern:$0x75316420]  ;;  %s709_s1 = smov [#allocation2]  }
  0x20   :  { %v914_v25 = vrot.slane %v219_v23, %v906_v22  ;;  %v140_v54 = vcombine.high %v535_v47, %v535_v47  ;;  %s524_s2 = sshll.u32 %s709_s1, 4  ;;  %s525_s2 = int_to_ptr.vmem [resolvable:$true] %s524_s2 }
  0x21   :  { %v143_v48 = vunpack.c.0.s8 %v142_v37  ;;  %s684_s17 = scalar_lea.vmem %s525_s2, 1024  ;;  %p689_p1 = scmp.lt.s32.totalorder %s525_s2, %s525_s2 }
  0x22   :  { %405 = vmatpush1.bf16.msra.mxu0 %v643_v63  ;;  %607 = vmatpush1.bf16.msra.mxu1 %v643_v63  ;;  %p685_p0 = scmp.ne.s32.totalorder %s525_s2, %s684_s17  ;;  %p690_p2 = scmp.lt.s32.totalorder %s684_s17, %s684_s17 }
  0x23   :  { %406 = vmatprep.subr.bf16.mxu0 %v644_v0  ;;  %592 = vmatprep.subr.bf16.mxu1 %v644_v0  ;;  %v146_v57 = vsub.s32 %v143_v48, %v145_v16 }
  0x24   :  { %p691_p3 = por %p690_p2, %p689_p1 }
  0x25   :  { %v154_v0 = vrot.slane %v140_v54, %v146_v57 }
  0x26   :  { %407 = vmatpush1.bf16.msra.mxu0 %v646_v1  ;;  %608 = vmatpush1.bf16.msra.mxu1 %v646_v1  ;;  %v147_v1 = vrot.slane %v535_v47, %v146_v57  ;;  %p692_p4 = pnand %p691_p3, %p685_p0 }
  0x27   :  { %408 = vmatprep.subr.bf16.mxu0 %v647_v2  ;;  %593 = vmatprep.subr.bf16.mxu1 %v647_v2  ;;  %v163_v16 = vpack.i.b16 %v154_v0, %v154_v0 }
  0x28   :  { %v156_v18 = vpack.i.b16 %v147_v1, %v147_v1 }
  0x2a   :  { %409 = vmatpush1.bf16.msra.mxu0 %v649_v7  ;;  %609 = vmatpush1.bf16.msra.mxu1 %v649_v7 }
  0x2b   :  { %410 = vmatprep.subr.bf16.mxu0 %v650_v8  ;;  %594 = vmatprep.subr.bf16.mxu1 %v650_v8 }
  0x2e   :  { %411 = vmatpush1.bf16.msra.mxu0 %v652_v14  ;;  %610 = vmatpush1.bf16.msra.mxu1 %v652_v14 }
  0x2f   :  { %412 = vmatprep.subr.bf16.mxu0 %v653_v15  ;;  %595 = vmatprep.subr.bf16.mxu1 %v653_v15 }
  0x32   :  { %413 = vmatpush1.bf16.msra.mxu0 %v655_v19  ;;  %611 = vmatpush1.bf16.msra.mxu1 %v655_v19 }
  0x33   :  { %414 = vmatprep.subr.bf16.mxu0 %v656_v21  ;;  %596 = vmatprep.subr.bf16.mxu1 %v656_v21 }
  0x36   :  { %415 = vmatpush1.bf16.msra.mxu0 %v658_v24  ;;  %612 = vmatpush1.bf16.msra.mxu1 %v658_v24  ;;  %v168_v24 = vrot.slane %v163_v16, %v906_v22 }
  0x37   :  { %416 = vmatprep.subr.bf16.mxu0 %v659_v26  ;;  %597 = vmatprep.subr.bf16.mxu1 %v659_v26  ;;  %v161_v26 = vrot.slane %v156_v18, %v906_v22 }
  0x3a   :  { %417 = vmatpush1.bf16.msra.mxu0 %v661_v27  ;;  %613 = vmatpush1.bf16.msra.mxu1 %v661_v27 }
  0x3b   :  { %418 = vmatprep.subr.bf16.mxu0 %v662_v30  ;;  %598 = vmatprep.subr.bf16.mxu1 %v662_v30 }
  0x3e   :  { %419 = vmatpush1.bf16.msra.mxu0 %v664_v31  ;;  %614 = vmatpush1.bf16.msra.mxu1 %v664_v31 }
  0x3f   :  { %420 = vmatprep.subr.bf16.mxu0 %v665_v32  ;;  %599 = vmatprep.subr.bf16.mxu1 %v665_v32 }
  0x42   :  { %421 = vmatpush1.bf16.msra.mxu0 %v667_v35  ;;  %615 = vmatpush1.bf16.msra.mxu1 %v667_v35 }
  0x95   :  { %v72_v40 = vpop.xlane.xlu1 %71 }
  0x96   :  { %v60_v41 = vpop.xlane.xlu0 %59  ;;  %v87_v44 = vmul.f32 0.00390625, %v72_v40 }
  0x97   :  { %v83_v45 = vmul.f32 0.00390625, %v60_v41 }
  0x98   :  { %v95_v46 = vadd.f32 1e-06, %v87_v44 }
  0x99   :  { %v91_v49 = vadd.f32 1e-06, %v83_v45  ;;  %v75_v50 = vpop.xlane.xlu1 %74 }
  0x9a   :  { %v63_v51 = vpop.xlane.xlu0 %62  ;;  %v88_v52 = vmul.f32 0.00390625, %v75_v50  ;;  %668 = vrsqrt.f32 %v95_v46 }
  0x9b   :  { %v84_v53 = vmul.f32 0.00390625, %v63_v51  ;;  %670 = vrsqrt.f32 %v91_v49 }
  0x9c   :  { %v96_v55 = vadd.f32 1e-06, %v88_v52 }
  0x9d   :  { %v92_v56 = vadd.f32 1e-06, %v84_v53  ;;  %v69_v58 = vpop.xlane.xlu1 %68 }
  0x9e   :  { %v66_v59 = vpop.xlane.xlu0 %65  ;;  %672 = vrsqrt.f32 %v96_v55  ;;  %v86_v60 = vmul.f32 0.00390625, %v69_v58 }
  0x9f   :  { %v85_v61 = vmul.f32 0.00390625, %v66_v59  ;;  %674 = vrsqrt.f32 %v92_v56 }
  0xa0   :  { %v94_v62 = vadd.f32 1e-06, %v86_v60 }
  0xa1   :  { %v93_v63 = vadd.f32 1e-06, %v85_v61  ;;  %v81_v2 = vpop.xlane.xlu1 %80 }
  0xa2   :  { %v78_v7 = vpop.xlane.xlu0 %77  ;;  %676 = vrsqrt.f32 %v94_v62  ;;  %v90_v8 = vmul.f32 0.00390625, %v81_v2 }
  0xa3   :  { %v89_v13 = vmul.f32 0.00390625, %v78_v7  ;;  %678 = vrsqrt.f32 %v93_v63 }
  0xa4   :  { %v98_v14 = vadd.f32 1e-06, %v90_v8  ;;  %v669_v19 = vpop.eup %668 }
  0xa5   :  { %v97_v15 = vadd.f32 1e-06, %v89_v13  ;;  %v671_v21 = vpop.eup %670  ;;  %v116_v30 = vmul.f32 %v669_v19, %v748_v4  ;;  %v115_v32 = vmul.f32 %v669_v19, %v746_v3 }
  0xa6   :  { %680 = vrsqrt.f32 %v98_v14  ;;  %v108_v36 = vmul.f32 %v671_v21, %v752_v6  ;;  %v107_v40 = vmul.f32 %v671_v21, %v750_v5 }
  0xa7   :  { %682 = vrsqrt.f32 %v97_v15 }
  0xa8   :  { %v673_v23 = vpop.eup %672 }
  0xa9   :  { %v675_v27 = vpop.eup %674  ;;  %v118_v31 = vmul.f32 %v673_v23, %v762_v10  ;;  %v117_v35 = vmul.f32 %v673_v23, %v760_v9 }
  0xaa   :  { %v110_v37 = vmul.f32 %v675_v27, %v766_v12  ;;  %v109_v41 = vmul.f32 %v675_v27, %v764_v11 }
  0xab   :  { %v128_v44 = vpack.c.bf16 %v118_v31, %v116_v30  ;;  %v127_v45 = vpack.c.bf16 %v117_v35, %v115_v32 }
  0xac   :  { %v677_v46 = vpop.eup %676  ;;  %v124_v47 = vpack.c.bf16 %v110_v37, %v108_v36  ;;  %v123_v48 = vpack.c.bf16 %v109_v41, %v107_v40 }
  0xad   :  { %v679_v4 = vpop.eup %678  ;;  %v174_v49 = vmul.bf16 %v168_v24, %v128_v44  ;;  %v173_v10 = vmul.bf16 %v161_v26, %v127_v45  ;;  %v114_v3 = vmul.f32 %v677_v46, %v801_v29  ;;  %v113_v5 = vmul.f32 %v677_v46, %v799_v28 }
  0xae   :  { %v170_v50 = vmul.bf16 %v168_v24, %v124_v47  ;;  %v169_v9 = vmul.bf16 %v161_v26, %v123_v48  ;;  %v112_v6 = vmul.f32 %v679_v4, %v808_v34  ;;  %v111_v12 = vmul.f32 %v679_v4, %v806_v33 }
  0xaf   :  { %442 = vmatprep.mubr.bf16.mxu1 %v174_v49 }
  0xb0   :  { %v681_v11 = vpop.eup %680  ;;  %422 = vmatprep.mubr.bf16.mxu0 %v170_v50  ;;  %443 = vmatmul.mubr.bf16.vlgmr.msra.gmra.mrb[0].mxu1 %v173_v10  ;;  %v126_v51 = vpack.c.bf16 %v114_v3, %v112_v6  ;;  %v125_v56 = vpack.c.bf16 %v113_v5, %v111_v12 }
  0xb1   :  { %v683_v52 = vpop.eup %682  ;;  %423 = vmatmul.mubr.bf16.vlgmr.msra.gmra.mrb[0].mxu0 %v169_v9  ;;  %v122_v53 = vmul.f32 %v681_v11, %v819_v39  ;;  %v121_v54 = vmul.f32 %v681_v11, %v817_v38  ;;  %v215_v39 = vrot.slane %v210_v20, %v906_v22 }
  0xb2   :  { %v172_v29 = vmul.bf16 %v168_v24, %v126_v51  ;;  %v120_v55 = vmul.f32 %v683_v52, %v827_v43  ;;  %v119_v34 = vmul.f32 %v683_v52, %v825_v42  ;;  %v171_v59 = vmul.bf16 %v161_v26, %v125_v56 }
  0xb3   :  { %v225_v38 = vrot.slane %v215_v39, %v906_v22 }
  0xb4   :  { %432 = vmatprep.mubr.bf16.mxu0 %v172_v29  ;;  %v130_v33 = vpack.c.bf16 %v122_v53, %v120_v55  ;;  %v129_v57 = vpack.c.bf16 %v121_v54, %v119_v34 }
  0xb6   :  { %v176_v28 = vmul.bf16 %v168_v24, %v130_v33  ;;  %v175_v58 = vmul.bf16 %v161_v26, %v129_v57 }
  0xb8   :  { %452 = vmatprep.mubr.bf16.mxu1 %v176_v28 }
  0xb9   :  { %433 = vmatmul.mubr.bf16.gmra.mrb[4].mxu0 %v171_v59  ;;  %453 = vmatmul.mubr.bf16.gmra.mrb[4].mxu1 %v175_v58 }
 0x183   :  { %v444_v60 = vpop.f32.mrb[0].mxu1 }
 0x184   :  { %v424_v43 = vpop.f32.mrb[0].mxu0  ;;  %v445_v61 = vadd.f32 %v444_v60, %v225_v38  ;;  %v446_v42 = vpop.f32.mrb[1].mxu1 }
 0x185   :  { %v425_v62 = vadd.f32 %v424_v43, %v225_v38  ;;  %v426_v63 = vpop.f32.mrb[1].mxu0  ;;  %v447_v0 = vadd.f32 %v446_v42, %v914_v25  ;;  %v448_v1 = vpop.f32.mrb[2].mxu1 }
 0x186   :  { %v427_v2 = vadd.f32 %v426_v63, %v914_v25  ;;  %v428_v7 = vpop.f32.mrb[2].mxu0  ;;  %v449_v8 = vadd.f32 %v448_v1, %v225_v38  ;;  %v450_v13 = vpop.f32.mrb[3].mxu1 }
 0x187   :  { %v580_v14 = vpack.c.bf16 %v447_v0, %v445_v61  ;;  %v429_v15 = vadd.f32 %v428_v7, %v225_v38  ;;  %v430_v17 = vpop.f32.mrb[3].mxu0  ;;  %v451_v20 = vadd.f32 %v450_v13, %v914_v25 }
 0x188   :  { %v576_v22 = vpack.c.bf16 %v427_v2, %v425_v62  ;;  %v431_v16 = vadd.f32 %v430_v17, %v914_v25 }
 0x189   :  { %515 = vst [vmem:[#allocation2 + $0x20] sm:$0xff] %v580_v14  ;;  %v581_v18 = vpack.c.bf16 %v451_v20, %v449_v8 }
 0x18a   :  { %511 = vst [vmem:[#allocation2] sm:$0xff] %v576_v22  ;;  %v577_v19 = vpack.c.bf16 %v431_v16, %v429_v15 }
 0x18b   :  { %516 = vst [vmem:[#allocation2 + $0x28] sm:$0xff] %v581_v18 }
 0x18c   :  { %512 = vst [vmem:[#allocation2 + $0x8] sm:$0xff] %v577_v19  ;;  %v434_v21 = vpop.f32.mrb[4].mxu0  ;;  %v454_v23 = vpop.f32.mrb[4].mxu1 }
 0x18d   :  { %v435_v24 = vadd.f32 %v434_v21, %v225_v38  ;;  %v455_v26 = vadd.f32 %v454_v23, %v225_v38  ;;  %v436_v27 = vpop.f32.mrb[5].mxu0  ;;  %v456_v30 = vpop.f32.mrb[5].mxu1 }
 0x18e   :  { %v437_v31 = vadd.f32 %v436_v27, %v914_v25  ;;  %v457_v32 = vadd.f32 %v456_v30, %v914_v25  ;;  %v438_v35 = vpop.f32.mrb[6].mxu0  ;;  %v458_v36 = vpop.f32.mrb[6].mxu1 }
 0x18f   :  { %v439_v37 = vadd.f32 %v438_v35, %v225_v38  ;;  %v459_v40 = vadd.f32 %v458_v36, %v225_v38  ;;  %v440_v41 = vpop.f32.mrb[7].mxu0  ;;  %v460_v44 = vpop.f32.mrb[7].mxu1 }
 0x190   :  { %v578_v45 = vpack.c.bf16 %v437_v31, %v435_v24  ;;  %v582_v46 = vpack.c.bf16 %v457_v32, %v455_v26  ;;  %v441_v47 = vadd.f32 %v440_v41, %v914_v25  ;;  %v461_v48 = vadd.f32 %v460_v44, %v914_v25 }
 0x192   :  { %513 = vst [vmem:[#allocation2 + $0x10] sm:$0xff] %v578_v45  ;;  %517 = vst [vmem:[#allocation2 + $0x30] sm:$0xff] %v582_v46  ;;  %v579_v4 = vpack.c.bf16 %v441_v47, %v439_v37  ;;  %v583_v49 = vpack.c.bf16 %v461_v48, %v459_v40 }
 0x194   :  { %514 = vst [vmem:[#allocation2 + $0x18] sm:$0xff] %v579_v4  ;;  %518 = vst [vmem:[#allocation2 + $0x38] sm:$0xff] %v583_v49 }
 0x195   :  { %695 = shalt.err (!%p692_p4)
}
 0x196   :  { %s696_s20 = scalar_lea.hbm %s983_s4, 1024 }
 0x197   :  { %p697_p5 = scmp.ne.s32.totalorder %s983_s4, %s696_s20  ;;  %p700_p6 = scmp.lt.u32.totalorder %s696_s20, %s983_s4 }
 0x199   :  { %p702_p7 = pnand %p700_p6, %p697_p5 }
 0x19b   :  { %705 = shalt.err (!%p702_p7)
}
 0x19c   :  { %s710_s25 = smov 128   ;;  %s711_s26 = smov 8  }
 0x19d   :  { %530 = dma.vmem_to_hbm [thread:$0]  %s525_s2, 1024, %s983_s4, [#allocation3], %s710_s25, %s710_s25, %s711_s26  }
 0x19e   :  { %706 = dma.done.wait [#allocation3], 1024  }
 0x19f   :  { %707 = vsyncadd [#allocation3], 4294966272 }
 0x1a0   :  { %534 = vsyncpa [#allocation3], 1 }

</bundles_post_ra>
